<compile_context>
chip_gen: v5e
topology: v5e:2x2
jax: 0.10.0
libtpu: 0.0.40
codegen_flags: <defaults>
</compile_context>

<pallas_src>
import functools

import jax
import jax.numpy as jnp
import numpy as np
from jax.experimental import pallas as pl
from jax.experimental.pallas import tpu as pltpu


def resblock_kernel(alpha_ref, x_ref, w1_ref, w2_ref, out_ref, im2col_ref, *,
                    H, W, NB):
    # alpha_ref : (1,) f32 in SMEM      (single shared PReLU parameter)
    # x_ref     : (NB, C, H*W) f32      (lane-dense: H*W multiple of 128)
    # w*_ref    : (C, 9*C) bf16         (columns ordered (kh, kw, c_in))
    # out_ref   : (NB, C, H*W)
    # im2col_ref: (9*C, NB*H*W) bf16 VMEM scratch (tap-concatenated operand)
    C = out_ref.shape[1]
    HW = H * W
    alpha = alpha_ref[0]

    # Boundary masks: computed once, shared by both convs and all NB images.
    lane = jax.lax.broadcasted_iota(jnp.int32, (C, HW), 1)
    lane_w = lane % W
    keep_not_col0 = lane_w > 0           # source mask for dw = +1 taps
    keep_not_colW = lane_w < (W - 1)     # source mask for dw = -1 taps
    keep_not_row0 = lane >= W            # output-row mask for dh = -1 taps
    keep_not_rowH = lane < (HW - W)      # output-row mask for dh = +1 taps

    def fill_im2col(img, nb):
        # img: (C, HW) f32, one image.  Each 3x3 tap is a circular lane roll
        # (XLU) of a pre-column-masked copy of the image; the pre-mask plus a
        # post-roll row mask make the circular wrap reproduce the zero-padded
        # ('SAME') tap exactly.  Taps go straight into the bf16 scratch.
        src = {
            -1: jnp.where(keep_not_colW, img, 0.0),
            0: img,
            1: jnp.where(keep_not_col0, img, 0.0),
        }
        t = 0
        for dh in (-1, 0, 1):
            for dw in (-1, 0, 1):
                s = dh * W + dw                          # flat spatial shift
                tap = src[dw]
                if s != 0:
                    tap = pltpu.roll(tap, shift=(-s) % HW, axis=1)
                if dh == -1:
                    tap = jnp.where(keep_not_row0, tap, 0.0)
                elif dh == 1:
                    tap = jnp.where(keep_not_rowH, tap, 0.0)
                im2col_ref[pl.ds(t * C, C), pl.ds(nb * HW, HW)] = (
                    tap.astype(im2col_ref.dtype))
                t += 1

    x_f32 = x_ref[...].astype(jnp.float32)               # (NB, C, HW)

    # conv1: ONE MXU matmul (C,9C)bf16 @ (9C,NB*HW)bf16 -> f32, then PReLU.
    for nb in range(NB):
        fill_im2col(x_f32[nb], nb)
    y1 = jnp.dot(w1_ref[...], im2col_ref[...],
                 preferred_element_type=jnp.float32)      # (C, NB*HW) f32
    y1 = jnp.where(y1 > 0, y1, alpha * y1)

    # conv2 (same scratch reused) + residual + PReLU, all f32.
    for nb in range(NB):
        fill_im2col(y1[:, nb * HW:(nb + 1) * HW], nb)
    y2 = jnp.dot(w2_ref[...], im2col_ref[...],
                 preferred_element_type=jnp.float32)      # (C, NB*HW) f32

    for nb in range(NB):
        o = y2[:, nb * HW:(nb + 1) * HW] + x_f32[nb]
        o = jnp.where(o > 0, o, alpha * o)
        out_ref[nb] = o.astype(out_ref.dtype)


def _images_per_step(n):
    """How many images to fold into one grid step.

    Single-TC chips (v5e/v6e): fold the whole batch -- grid=(N,) is a serial
    loop paying ~0.35us/step on a kernel that is only a few us total, and one
    bigger matmul amortizes MXU weight pushes.  v7x (2 TCs/chip): keep >=2
    'parallel' grid steps so both TensorCores get work.
    """
    try:
        kind = jax.devices()[0].device_kind.lower()
    except Exception:
        kind = ""
    target_steps = 2 if ("v7" in kind and n >= 2) else 1
    nb = max(1, min(n // target_steps, 8))     # cap per-step footprint
    while n % nb != 0:                         # keep the grid exact
        nb -= 1
    return nb


def resblock_forward_nchw(x_nchw, w1_oihw, w2_oihw, alpha):
    """x: (N, C, H, W), weights: PyTorch OIHW (C, C, 3, 3), alpha: scalar."""
    N, C, H, W = x_nchw.shape
    HW = H * W
    x_flat = x_nchw.reshape(N, C, HW)                     # free view, no HBM pass
    # OIHW -> (C_out, kh, kw, C_in) -> (C_out, 9*C_in); column k = (kh*3+kw)*C + ci.
    # Cast to bf16 once in HBM: halves weight DMA and feeds the bf16-native MXU.
    w1_cat = jnp.transpose(w1_oihw, (0, 2, 3, 1)).reshape(C, 9 * C).astype(jnp.bfloat16)
    w2_cat = jnp.transpose(w2_oihw, (0, 2, 3, 1)).reshape(C, 9 * C).astype(jnp.bfloat16)
    alpha_arr = jnp.asarray(alpha, dtype=jnp.float32).reshape(1)

    NB = _images_per_step(N)
    grid = (N // NB,)

    # TODO(synk): for large H*W, add a row-tiled grid axis with a 1-row halo --
    # the materialized im2col scales 9x with spatial size and would outgrow
    # v7x's 64 MiB VMEM long before v5e/v6e's 128 MiB.
    out_flat = pl.pallas_call(
        functools.partial(resblock_kernel, H=H, W=W, NB=NB),
        out_shape=jax.ShapeDtypeStruct((N, C, HW), x_nchw.dtype),
        grid_spec=pltpu.PrefetchScalarGridSpec(
            num_scalar_prefetch=0,
            grid=grid,
            in_specs=[
                pl.BlockSpec(memory_space=pltpu.MemorySpace.SMEM),      # alpha
                pl.BlockSpec((NB, C, HW), lambda n: (n, 0, 0)),         # x (lane-dense)
                pl.BlockSpec((C, 9 * C), lambda n: (0, 0)),             # w1 (resident)
                pl.BlockSpec((C, 9 * C), lambda n: (0, 0)),             # w2 (resident)
            ],
            out_specs=pl.BlockSpec((NB, C, HW), lambda n: (n, 0, 0)),   # lane-dense out
            scratch_shapes=[pltpu.VMEM((9 * C, NB * HW), jnp.bfloat16)],
        ),
        compiler_params=pltpu.CompilerParams(
            dimension_semantics=("parallel",)),
    )(alpha_arr, x_flat, w1_cat, w2_cat)
    return out_flat.reshape(N, C, H, W)


def ref_forward_nchw(x, w1, w2, alpha):
    dn = ('NCHW', 'OIHW', 'NCHW')
    y1 = jax.lax.conv_general_dilated(x, w1, (1, 1), 'SAME', dimension_numbers=dn)
    x1 = jnp.where(y1 > 0, y1, alpha * y1)
    y2 = jax.lax.conv_general_dilated(x1, w2, (1, 1), 'SAME', dimension_numbers=dn)
    y2 = y2 + x
    return jnp.where(y2 > 0, y2, alpha * y2)


if __name__ == "__main__":
    N, C, H, W = 2, 32, 16, 16          # n_feats = 32 (module default)
    key = jax.random.PRNGKey(0)
    kx, kw1, kw2 = jax.random.split(key, 3)

    x_nchw = jax.random.normal(kx, (N, C, H, W), dtype=jnp.float32)

    # nn.Conv2d(C, C, 3, padding=1, bias=False) weights, OIHW, kaiming-uniform-like bound.
    bound = 1.0 / np.sqrt(C * 3 * 3)
    w1 = jax.random.uniform(kw1, (C, C, 3, 3), jnp.float32, -bound, bound)
    w2 = jax.random.uniform(kw2, (C, C, 3, 3), jnp.float32, -bound, bound)
    alpha = 0.25                         # nn.PReLU() default, single shared parameter

    out = resblock_forward_nchw(x_nchw, w1, w2, alpha)
    out = jax.block_until_ready(out)

    # Correctness guard against an f32 pure-JAX reference; tolerance relaxed to
    # bf16-operand level (dot operands are bf16, accumulation/activations f32).
    ref = ref_forward_nchw(x_nchw, w1, w2, alpha)
    np.testing.assert_allclose(np.asarray(out), np.asarray(ref),
                               rtol=2e-2, atol=2e-2)

    print("KERNEL_OK")
</pallas_src>

<mosaic_0001>
module attributes {stable_mosaic.version = 11 : i64} {
  func.func @resblock_kernel(%arg0: i32, %arg1: memref<1xf32, #tpu.memory_space<smem>>, %arg2: memref<2x32x256xf32, #tpu.memory_space<vmem>>, %arg3: memref<32x288xbf16, #tpu.memory_space<vmem>>, %arg4: memref<32x288xbf16, #tpu.memory_space<vmem>>, %arg5: memref<2x32x256xf32, #tpu.memory_space<vmem>>, %arg6: memref<288x512xbf16, #tpu.memory_space<vmem>>) attributes {dimension_semantics = [#tpu.dimension_semantics<parallel>], iteration_bounds = array<i64: 1>, scalar_prefetch = 0 : i64, scratch_operands = 1 : i64, tpu.core_type = #tpu.core_type<tc>, window_params = [{transform_indices = @transform_0, window_bounds = array<i64: 1>}, {transform_indices = @transform_1, window_bounds = array<i64: 2, 32, 256>}, {pipeline_mode = #tpu.pipeline_mode<synchronous>, transform_indices = @transform_2, window_bounds = array<i64: 32, 288>}, {pipeline_mode = #tpu.pipeline_mode<synchronous>, transform_indices = @transform_3, window_bounds = array<i64: 32, 288>}, {transform_indices = @transform_4, window_bounds = array<i64: 2, 32, 256>}]} {
    %c0 = arith.constant 0 : index
    %0 = memref.load %arg1[%c0] : memref<1xf32, #tpu.memory_space<smem>>
    %1 = tpu.iota {dimensions = array<i32: 1>} : vector<32x256xi32>
    %c16_i32 = arith.constant 16 : i32
    %c0_i32 = arith.constant 0 : i32
    %2 = arith.cmpi eq, %c16_i32, %c0_i32 : i32
    %c1_i32 = arith.constant 1 : i32
    %3 = arith.select %2, %c1_i32, %c16_i32 : i32
    %4 = vector.broadcast %3 : i32 to vector<32x256xi32>
    %5 = arith.remsi %1, %4 : vector<32x256xi32>
    %c0_i32_0 = arith.constant 0 : i32
    %6 = vector.broadcast %c0_i32_0 : i32 to vector<32x256xi32>
    %7 = arith.cmpi ne, %5, %6 : vector<32x256xi32>
    %c0_i32_1 = arith.constant 0 : i32
    %8 = vector.broadcast %c0_i32_1 : i32 to vector<32x256xi32>
    %9 = arith.cmpi slt, %5, %8 : vector<32x256xi32>
    %c0_i32_2 = arith.constant 0 : i32
    %10 = arith.cmpi slt, %3, %c0_i32_2 : i32
    %11 = vector.broadcast %10 : i1 to vector<32x256xi1>
    %12 = vector.broadcast %11 : vector<32x256xi1> to vector<32x256xi1>
    %13 = arith.xori %9, %12 : vector<32x256xi1>
    %14 = arith.andi %13, %7 : vector<32x256xi1>
    %15 = vector.broadcast %3 : i32 to vector<32x256xi32>
    %16 = arith.addi %5, %15 : vector<32x256xi32>
    %17 = arith.select %14, %16, %5 : vector<32x256xi1>, vector<32x256xi32>
    %c0_i32_3 = arith.constant 0 : i32
    %18 = vector.broadcast %c0_i32_3 : i32 to vector<32x256xi32>
    %19 = arith.cmpi sgt, %17, %18 : vector<32x256xi32>
    %c15_i32 = arith.constant 15 : i32
    %20 = vector.broadcast %c15_i32 : i32 to vector<32x256xi32>
    %21 = arith.cmpi slt, %17, %20 : vector<32x256xi32>
    %c16_i32_4 = arith.constant 16 : i32
    %22 = vector.broadcast %c16_i32_4 : i32 to vector<32x256xi32>
    %23 = arith.cmpi sge, %1, %22 : vector<32x256xi32>
    %c240_i32 = arith.constant 240 : i32
    %24 = vector.broadcast %c240_i32 : i32 to vector<32x256xi32>
    %25 = arith.cmpi slt, %1, %24 : vector<32x256xi32>
    %c0_5 = arith.constant 0 : index
    %c0_6 = arith.constant 0 : index
    %c0_7 = arith.constant 0 : index
    %26 = vector.load %arg2[%c0_5, %c0_6, %c0_7] : memref<2x32x256xf32, #tpu.memory_space<vmem>>, vector<2x32x256xf32>
    %27 = vector.extract_strided_slice %26 {offsets = [0, 0, 0], sizes = [1, 32, 256], strides = [1, 1, 1]} : vector<2x32x256xf32> to vector<1x32x256xf32>
    %28 = vector.shape_cast %27 : vector<1x32x256xf32> to vector<32x256xf32>
    %cst = arith.constant 0.000000e+00 : f32
    %29 = vector.broadcast %cst : f32 to vector<32x256xf32>
    %30 = arith.select %21, %28, %29 : vector<32x256xi1>, vector<32x256xf32>
    %cst_8 = arith.constant 0.000000e+00 : f32
    %31 = vector.broadcast %cst_8 : f32 to vector<32x256xf32>
    %32 = arith.select %19, %28, %31 : vector<32x256xi1>, vector<32x256xf32>
    %c17_i32 = arith.constant 17 : i32
    %33 = tpu.dynamic_rotate %30 by %c17_i32 dim 1 : vector<32x256xf32>, i32 -> vector<32x256xf32>
    %cst_9 = arith.constant 0.000000e+00 : f32
    %34 = vector.broadcast %cst_9 : f32 to vector<32x256xf32>
    %35 = arith.select %23, %33, %34 : vector<32x256xi1>, vector<32x256xf32>
    %36 = arith.truncf %35 : vector<32x256xf32> to vector<32x256xbf16>
    %c0_10 = arith.constant 0 : index
    %c0_11 = arith.constant 0 : index
    %37 = vector.load %arg6[%c0_10, %c0_11] : memref<288x512xbf16, #tpu.memory_space<vmem>>, vector<32x256xbf16>
    tpu.vector_store %arg6[%c0_10, %c0_11], %36 {strides = array<i32>} : memref<288x512xbf16, #tpu.memory_space<vmem>>, vector<32x256xbf16>,
    %c16_i32_12 = arith.constant 16 : i32
    %38 = tpu.dynamic_rotate %28 by %c16_i32_12 dim 1 : vector<32x256xf32>, i32 -> vector<32x256xf32>
    %cst_13 = arith.constant 0.000000e+00 : f32
    %39 = vector.broadcast %cst_13 : f32 to vector<32x256xf32>
    %40 = arith.select %23, %38, %39 : vector<32x256xi1>, vector<32x256xf32>
    %41 = arith.truncf %40 : vector<32x256xf32> to vector<32x256xbf16>
    %c32 = arith.constant 32 : index
    %c0_14 = arith.constant 0 : index
    %42 = vector.load %arg6[%c32, %c0_14] : memref<288x512xbf16, #tpu.memory_space<vmem>>, vector<32x256xbf16>
    tpu.vector_store %arg6[%c32, %c0_14], %41 {strides = array<i32>} : memref<288x512xbf16, #tpu.memory_space<vmem>>, vector<32x256xbf16>,
    %c15_i32_15 = arith.constant 15 : i32
    %43 = tpu.dynamic_rotate %32 by %c15_i32_15 dim 1 : vector<32x256xf32>, i32 -> vector<32x256xf32>
    %cst_16 = arith.constant 0.000000e+00 : f32
    %44 = vector.broadcast %cst_16 : f32 to vector<32x256xf32>
    %45 = arith.select %23, %43, %44 : vector<32x256xi1>, vector<32x256xf32>
    %46 = arith.truncf %45 : vector<32x256xf32> to vector<32x256xbf16>
    %c64 = arith.constant 64 : index
    %c0_17 = arith.constant 0 : index
    %47 = vector.load %arg6[%c64, %c0_17] : memref<288x512xbf16, #tpu.memory_space<vmem>>, vector<32x256xbf16>
    tpu.vector_store %arg6[%c64, %c0_17], %46 {strides = array<i32>} : memref<288x512xbf16, #tpu.memory_space<vmem>>, vector<32x256xbf16>,
    %c1_i32_18 = arith.constant 1 : i32
    %48 = tpu.dynamic_rotate %30 by %c1_i32_18 dim 1 : vector<32x256xf32>, i32 -> vector<32x256xf32>
    %49 = arith.truncf %48 : vector<32x256xf32> to vector<32x256xbf16>
    %c96 = arith.constant 96 : index
    %c0_19 = arith.constant 0 : index
    %50 = vector.load %arg6[%c96, %c0_19] : memref<288x512xbf16, #tpu.memory_space<vmem>>, vector<32x256xbf16>
    tpu.vector_store %arg6[%c96, %c0_19], %49 {strides = array<i32>} : memref<288x512xbf16, #tpu.memory_space<vmem>>, vector<32x256xbf16>,
    %51 = arith.truncf %28 : vector<32x256xf32> to vector<32x256xbf16>
    %c128 = arith.constant 128 : index
    %c0_20 = arith.constant 0 : index
    %52 = vector.load %arg6[%c128, %c0_20] : memref<288x512xbf16, #tpu.memory_space<vmem>>, vector<32x256xbf16>
    tpu.vector_store %arg6[%c128, %c0_20], %51 {strides = array<i32>} : memref<288x512xbf16, #tpu.memory_space<vmem>>, vector<32x256xbf16>,
    %c255_i32 = arith.constant 255 : i32
    %53 = tpu.dynamic_rotate %32 by %c255_i32 dim 1 : vector<32x256xf32>, i32 -> vector<32x256xf32>
    %54 = arith.truncf %53 : vector<32x256xf32> to vector<32x256xbf16>
    %c160 = arith.constant 160 : index
    %c0_21 = arith.constant 0 : index
    %55 = vector.load %arg6[%c160, %c0_21] : memref<288x512xbf16, #tpu.memory_space<vmem>>, vector<32x256xbf16>
    tpu.vector_store %arg6[%c160, %c0_21], %54 {strides = array<i32>} : memref<288x512xbf16, #tpu.memory_space<vmem>>, vector<32x256xbf16>,
    %c241_i32 = arith.constant 241 : i32
    %56 = tpu.dynamic_rotate %30 by %c241_i32 dim 1 : vector<32x256xf32>, i32 -> vector<32x256xf32>
    %cst_22 = arith.constant 0.000000e+00 : f32
    %57 = vector.broadcast %cst_22 : f32 to vector<32x256xf32>
    %58 = arith.select %25, %56, %57 : vector<32x256xi1>, vector<32x256xf32>
    %59 = arith.truncf %58 : vector<32x256xf32> to vector<32x256xbf16>
    %c192 = arith.constant 192 : index
    %c0_23 = arith.constant 0 : index
    %60 = vector.load %arg6[%c192, %c0_23] : memref<288x512xbf16, #tpu.memory_space<vmem>>, vector<32x256xbf16>
    tpu.vector_store %arg6[%c192, %c0_23], %59 {strides = array<i32>} : memref<288x512xbf16, #tpu.memory_space<vmem>>, vector<32x256xbf16>,
    %c240_i32_24 = arith.constant 240 : i32
    %61 = tpu.dynamic_rotate %28 by %c240_i32_24 dim 1 : vector<32x256xf32>, i32 -> vector<32x256xf32>
    %cst_25 = arith.constant 0.000000e+00 : f32
    %62 = vector.broadcast %cst_25 : f32 to vector<32x256xf32>
    %63 = arith.select %25, %61, %62 : vector<32x256xi1>, vector<32x256xf32>
    %64 = arith.truncf %63 : vector<32x256xf32> to vector<32x256xbf16>
    %c224 = arith.constant 224 : index
    %c0_26 = arith.constant 0 : index
    %65 = vector.load %arg6[%c224, %c0_26] : memref<288x512xbf16, #tpu.memory_space<vmem>>, vector<32x256xbf16>
    tpu.vector_store %arg6[%c224, %c0_26], %64 {strides = array<i32>} : memref<288x512xbf16, #tpu.memory_space<vmem>>, vector<32x256xbf16>,
    %c239_i32 = arith.constant 239 : i32
    %66 = tpu.dynamic_rotate %32 by %c239_i32 dim 1 : vector<32x256xf32>, i32 -> vector<32x256xf32>
    %cst_27 = arith.constant 0.000000e+00 : f32
    %67 = vector.broadcast %cst_27 : f32 to vector<32x256xf32>
    %68 = arith.select %25, %66, %67 : vector<32x256xi1>, vector<32x256xf32>
    %69 = arith.truncf %68 : vector<32x256xf32> to vector<32x256xbf16>
    %c256 = arith.constant 256 : index
    %c0_28 = arith.constant 0 : index
    %70 = vector.load %arg6[%c256, %c0_28] : memref<288x512xbf16, #tpu.memory_space<vmem>>, vector<32x256xbf16>
    tpu.vector_store %arg6[%c256, %c0_28], %69 {strides = array<i32>} : memref<288x512xbf16, #tpu.memory_space<vmem>>, vector<32x256xbf16>,
    %71 = vector.extract_strided_slice %26 {offsets = [1, 0, 0], sizes = [1, 32, 256], strides = [1, 1, 1]} : vector<2x32x256xf32> to vector<1x32x256xf32>
    %72 = vector.shape_cast %71 : vector<1x32x256xf32> to vector<32x256xf32>
    %cst_29 = arith.constant 0.000000e+00 : f32
    %73 = vector.broadcast %cst_29 : f32 to vector<32x256xf32>
    %74 = arith.select %21, %72, %73 : vector<32x256xi1>, vector<32x256xf32>
    %cst_30 = arith.constant 0.000000e+00 : f32
    %75 = vector.broadcast %cst_30 : f32 to vector<32x256xf32>
    %76 = arith.select %19, %72, %75 : vector<32x256xi1>, vector<32x256xf32>
    %c17_i32_31 = arith.constant 17 : i32
    %77 = tpu.dynamic_rotate %74 by %c17_i32_31 dim 1 : vector<32x256xf32>, i32 -> vector<32x256xf32>
    %cst_32 = arith.constant 0.000000e+00 : f32
    %78 = vector.broadcast %cst_32 : f32 to vector<32x256xf32>
    %79 = arith.select %23, %77, %78 : vector<32x256xi1>, vector<32x256xf32>
    %80 = arith.truncf %79 : vector<32x256xf32> to vector<32x256xbf16>
    %c0_33 = arith.constant 0 : index
    %c256_34 = arith.constant 256 : index
    %81 = vector.load %arg6[%c0_33, %c256_34] : memref<288x512xbf16, #tpu.memory_space<vmem>>, vector<32x256xbf16>
    tpu.vector_store %arg6[%c0_33, %c256_34], %80 {strides = array<i32>} : memref<288x512xbf16, #tpu.memory_space<vmem>>, vector<32x256xbf16>,
    %c16_i32_35 = arith.constant 16 : i32
    %82 = tpu.dynamic_rotate %72 by %c16_i32_35 dim 1 : vector<32x256xf32>, i32 -> vector<32x256xf32>
    %cst_36 = arith.constant 0.000000e+00 : f32
    %83 = vector.broadcast %cst_36 : f32 to vector<32x256xf32>
    %84 = arith.select %23, %82, %83 : vector<32x256xi1>, vector<32x256xf32>
    %85 = arith.truncf %84 : vector<32x256xf32> to vector<32x256xbf16>
    %c32_37 = arith.constant 32 : index
    %c256_38 = arith.constant 256 : index
    %86 = vector.load %arg6[%c32_37, %c256_38] : memref<288x512xbf16, #tpu.memory_space<vmem>>, vector<32x256xbf16>
    tpu.vector_store %arg6[%c32_37, %c256_38], %85 {strides = array<i32>} : memref<288x512xbf16, #tpu.memory_space<vmem>>, vector<32x256xbf16>,
    %c15_i32_39 = arith.constant 15 : i32
    %87 = tpu.dynamic_rotate %76 by %c15_i32_39 dim 1 : vector<32x256xf32>, i32 -> vector<32x256xf32>
    %cst_40 = arith.constant 0.000000e+00 : f32
    %88 = vector.broadcast %cst_40 : f32 to vector<32x256xf32>
    %89 = arith.select %23, %87, %88 : vector<32x256xi1>, vector<32x256xf32>
    %90 = arith.truncf %89 : vector<32x256xf32> to vector<32x256xbf16>
    %c64_41 = arith.constant 64 : index
    %c256_42 = arith.constant 256 : index
    %91 = vector.load %arg6[%c64_41, %c256_42] : memref<288x512xbf16, #tpu.memory_space<vmem>>, vector<32x256xbf16>
    tpu.vector_store %arg6[%c64_41, %c256_42], %90 {strides = array<i32>} : memref<288x512xbf16, #tpu.memory_space<vmem>>, vector<32x256xbf16>,
    %c1_i32_43 = arith.constant 1 : i32
    %92 = tpu.dynamic_rotate %74 by %c1_i32_43 dim 1 : vector<32x256xf32>, i32 -> vector<32x256xf32>
    %93 = arith.truncf %92 : vector<32x256xf32> to vector<32x256xbf16>
    %c96_44 = arith.constant 96 : index
    %c256_45 = arith.constant 256 : index
    %94 = vector.load %arg6[%c96_44, %c256_45] : memref<288x512xbf16, #tpu.memory_space<vmem>>, vector<32x256xbf16>
    tpu.vector_store %arg6[%c96_44, %c256_45], %93 {strides = array<i32>} : memref<288x512xbf16, #tpu.memory_space<vmem>>, vector<32x256xbf16>,
    %95 = arith.truncf %72 : vector<32x256xf32> to vector<32x256xbf16>
    %c128_46 = arith.constant 128 : index
    %c256_47 = arith.constant 256 : index
    %96 = vector.load %arg6[%c128_46, %c256_47] : memref<288x512xbf16, #tpu.memory_space<vmem>>, vector<32x256xbf16>
    tpu.vector_store %arg6[%c128_46, %c256_47], %95 {strides = array<i32>} : memref<288x512xbf16, #tpu.memory_space<vmem>>, vector<32x256xbf16>,
    %c255_i32_48 = arith.constant 255 : i32
    %97 = tpu.dynamic_rotate %76 by %c255_i32_48 dim 1 : vector<32x256xf32>, i32 -> vector<32x256xf32>
    %98 = arith.truncf %97 : vector<32x256xf32> to vector<32x256xbf16>
    %c160_49 = arith.constant 160 : index
    %c256_50 = arith.constant 256 : index
    %99 = vector.load %arg6[%c160_49, %c256_50] : memref<288x512xbf16, #tpu.memory_space<vmem>>, vector<32x256xbf16>
    tpu.vector_store %arg6[%c160_49, %c256_50], %98 {strides = array<i32>} : memref<288x512xbf16, #tpu.memory_space<vmem>>, vector<32x256xbf16>,
    %c241_i32_51 = arith.constant 241 : i32
    %100 = tpu.dynamic_rotate %74 by %c241_i32_51 dim 1 : vector<32x256xf32>, i32 -> vector<32x256xf32>
    %cst_52 = arith.constant 0.000000e+00 : f32
    %101 = vector.broadcast %cst_52 : f32 to vector<32x256xf32>
    %102 = arith.select %25, %100, %101 : vector<32x256xi1>, vector<32x256xf32>
    %103 = arith.truncf %102 : vector<32x256xf32> to vector<32x256xbf16>
    %c192_53 = arith.constant 192 : index
    %c256_54 = arith.constant 256 : index
    %104 = vector.load %arg6[%c192_53, %c256_54] : memref<288x512xbf16, #tpu.memory_space<vmem>>, vector<32x256xbf16>
    tpu.vector_store %arg6[%c192_53, %c256_54], %103 {strides = array<i32>} : memref<288x512xbf16, #tpu.memory_space<vmem>>, vector<32x256xbf16>,
    %c240_i32_55 = arith.constant 240 : i32
    %105 = tpu.dynamic_rotate %72 by %c240_i32_55 dim 1 : vector<32x256xf32>, i32 -> vector<32x256xf32>
    %cst_56 = arith.constant 0.000000e+00 : f32
    %106 = vector.broadcast %cst_56 : f32 to vector<32x256xf32>
    %107 = arith.select %25, %105, %106 : vector<32x256xi1>, vector<32x256xf32>
    %108 = arith.truncf %107 : vector<32x256xf32> to vector<32x256xbf16>
    %c224_57 = arith.constant 224 : index
    %c256_58 = arith.constant 256 : index
    %109 = vector.load %arg6[%c224_57, %c256_58] : memref<288x512xbf16, #tpu.memory_space<vmem>>, vector<32x256xbf16>
    tpu.vector_store %arg6[%c224_57, %c256_58], %108 {strides = array<i32>} : memref<288x512xbf16, #tpu.memory_space<vmem>>, vector<32x256xbf16>,
    %c239_i32_59 = arith.constant 239 : i32
    %110 = tpu.dynamic_rotate %76 by %c239_i32_59 dim 1 : vector<32x256xf32>, i32 -> vector<32x256xf32>
    %cst_60 = arith.constant 0.000000e+00 : f32
    %111 = vector.broadcast %cst_60 : f32 to vector<32x256xf32>
    %112 = arith.select %25, %110, %111 : vector<32x256xi1>, vector<32x256xf32>
    %113 = arith.truncf %112 : vector<32x256xf32> to vector<32x256xbf16>
    %c256_61 = arith.constant 256 : index
    %c256_62 = arith.constant 256 : index
    %114 = vector.load %arg6[%c256_61, %c256_62] : memref<288x512xbf16, #tpu.memory_space<vmem>>, vector<32x256xbf16>
    tpu.vector_store %arg6[%c256_61, %c256_62], %113 {strides = array<i32>} : memref<288x512xbf16, #tpu.memory_space<vmem>>, vector<32x256xbf16>,
    %c0_63 = arith.constant 0 : index
    %c0_64 = arith.constant 0 : index
    %115 = vector.load %arg3[%c0_63, %c0_64] : memref<32x288xbf16, #tpu.memory_space<vmem>>, vector<32x288xbf16>
    %c0_65 = arith.constant 0 : index
    %c0_66 = arith.constant 0 : index
    %116 = vector.load %arg6[%c0_65, %c0_66] : memref<288x512xbf16, #tpu.memory_space<vmem>>, vector<288x512xbf16>
    %cst_67 = arith.constant dense<0.000000e+00> : vector<32x512xf32>
    %117 = tpu.matmul %115, %116, %cst_67 {dimension_numbers = #tpu.dot_dimension_numbers<[1], [0], [0], [1], [0, 0, 1, 1], [], []>} : vector<32x288xbf16>, vector<288x512xbf16>, vector<32x512xf32> -> vector<32x512xf32>
    %cst_68 = arith.constant 0.000000e+00 : f32
    %118 = vector.broadcast %cst_68 : f32 to vector<32x512xf32>
    %119 = arith.cmpf ogt, %117, %118 : vector<32x512xf32>
    %120 = vector.broadcast %0 : f32 to vector<32x512xf32>
    %121 = arith.mulf %120, %117 : vector<32x512xf32>
    %122 = arith.select %119, %117, %121 : vector<32x512xi1>, vector<32x512xf32>
    %123 = vector.extract_strided_slice %122 {offsets = [0, 0], sizes = [32, 256], strides = [1, 1]} : vector<32x512xf32> to vector<32x256xf32>
    %cst_69 = arith.constant 0.000000e+00 : f32
    %124 = vector.broadcast %cst_69 : f32 to vector<32x256xf32>
    %125 = arith.select %21, %123, %124 : vector<32x256xi1>, vector<32x256xf32>
    %cst_70 = arith.constant 0.000000e+00 : f32
    %126 = vector.broadcast %cst_70 : f32 to vector<32x256xf32>
    %127 = arith.select %19, %123, %126 : vector<32x256xi1>, vector<32x256xf32>
    %c17_i32_71 = arith.constant 17 : i32
    %128 = tpu.dynamic_rotate %125 by %c17_i32_71 dim 1 : vector<32x256xf32>, i32 -> vector<32x256xf32>
    %cst_72 = arith.constant 0.000000e+00 : f32
    %129 = vector.broadcast %cst_72 : f32 to vector<32x256xf32>
    %130 = arith.select %23, %128, %129 : vector<32x256xi1>, vector<32x256xf32>
    %131 = arith.truncf %130 : vector<32x256xf32> to vector<32x256xbf16>
    %c0_73 = arith.constant 0 : index
    %c0_74 = arith.constant 0 : index
    %132 = vector.load %arg6[%c0_73, %c0_74] : memref<288x512xbf16, #tpu.memory_space<vmem>>, vector<32x256xbf16>
    tpu.vector_store %arg6[%c0_73, %c0_74], %131 {strides = array<i32>} : memref<288x512xbf16, #tpu.memory_space<vmem>>, vector<32x256xbf16>,
    %c16_i32_75 = arith.constant 16 : i32
    %133 = tpu.dynamic_rotate %123 by %c16_i32_75 dim 1 : vector<32x256xf32>, i32 -> vector<32x256xf32>
    %cst_76 = arith.constant 0.000000e+00 : f32
    %134 = vector.broadcast %cst_76 : f32 to vector<32x256xf32>
    %135 = arith.select %23, %133, %134 : vector<32x256xi1>, vector<32x256xf32>
    %136 = arith.truncf %135 : vector<32x256xf32> to vector<32x256xbf16>
    %c32_77 = arith.constant 32 : index
    %c0_78 = arith.constant 0 : index
    %137 = vector.load %arg6[%c32_77, %c0_78] : memref<288x512xbf16, #tpu.memory_space<vmem>>, vector<32x256xbf16>
    tpu.vector_store %arg6[%c32_77, %c0_78], %136 {strides = array<i32>} : memref<288x512xbf16, #tpu.memory_space<vmem>>, vector<32x256xbf16>,
    %c15_i32_79 = arith.constant 15 : i32
    %138 = tpu.dynamic_rotate %127 by %c15_i32_79 dim 1 : vector<32x256xf32>, i32 -> vector<32x256xf32>
    %cst_80 = arith.constant 0.000000e+00 : f32
    %139 = vector.broadcast %cst_80 : f32 to vector<32x256xf32>
    %140 = arith.select %23, %138, %139 : vector<32x256xi1>, vector<32x256xf32>
    %141 = arith.truncf %140 : vector<32x256xf32> to vector<32x256xbf16>
    %c64_81 = arith.constant 64 : index
    %c0_82 = arith.constant 0 : index
    %142 = vector.load %arg6[%c64_81, %c0_82] : memref<288x512xbf16, #tpu.memory_space<vmem>>, vector<32x256xbf16>
    tpu.vector_store %arg6[%c64_81, %c0_82], %141 {strides = array<i32>} : memref<288x512xbf16, #tpu.memory_space<vmem>>, vector<32x256xbf16>,
    %c1_i32_83 = arith.constant 1 : i32
    %143 = tpu.dynamic_rotate %125 by %c1_i32_83 dim 1 : vector<32x256xf32>, i32 -> vector<32x256xf32>
    %144 = arith.truncf %143 : vector<32x256xf32> to vector<32x256xbf16>
    %c96_84 = arith.constant 96 : index
    %c0_85 = arith.constant 0 : index
    %145 = vector.load %arg6[%c96_84, %c0_85] : memref<288x512xbf16, #tpu.memory_space<vmem>>, vector<32x256xbf16>
    tpu.vector_store %arg6[%c96_84, %c0_85], %144 {strides = array<i32>} : memref<288x512xbf16, #tpu.memory_space<vmem>>, vector<32x256xbf16>,
    %146 = arith.truncf %123 : vector<32x256xf32> to vector<32x256xbf16>
    %c128_86 = arith.constant 128 : index
    %c0_87 = arith.constant 0 : index
    %147 = vector.load %arg6[%c128_86, %c0_87] : memref<288x512xbf16, #tpu.memory_space<vmem>>, vector<32x256xbf16>
    tpu.vector_store %arg6[%c128_86, %c0_87], %146 {strides = array<i32>} : memref<288x512xbf16, #tpu.memory_space<vmem>>, vector<32x256xbf16>,
    %c255_i32_88 = arith.constant 255 : i32
    %148 = tpu.dynamic_rotate %127 by %c255_i32_88 dim 1 : vector<32x256xf32>, i32 -> vector<32x256xf32>
    %149 = arith.truncf %148 : vector<32x256xf32> to vector<32x256xbf16>
    %c160_89 = arith.constant 160 : index
    %c0_90 = arith.constant 0 : index
    %150 = vector.load %arg6[%c160_89, %c0_90] : memref<288x512xbf16, #tpu.memory_space<vmem>>, vector<32x256xbf16>
    tpu.vector_store %arg6[%c160_89, %c0_90], %149 {strides = array<i32>} : memref<288x512xbf16, #tpu.memory_space<vmem>>, vector<32x256xbf16>,
    %c241_i32_91 = arith.constant 241 : i32
    %151 = tpu.dynamic_rotate %125 by %c241_i32_91 dim 1 : vector<32x256xf32>, i32 -> vector<32x256xf32>
    %cst_92 = arith.constant 0.000000e+00 : f32
    %152 = vector.broadcast %cst_92 : f32 to vector<32x256xf32>
    %153 = arith.select %25, %151, %152 : vector<32x256xi1>, vector<32x256xf32>
    %154 = arith.truncf %153 : vector<32x256xf32> to vector<32x256xbf16>
    %c192_93 = arith.constant 192 : index
    %c0_94 = arith.constant 0 : index
    %155 = vector.load %arg6[%c192_93, %c0_94] : memref<288x512xbf16, #tpu.memory_space<vmem>>, vector<32x256xbf16>
    tpu.vector_store %arg6[%c192_93, %c0_94], %154 {strides = array<i32>} : memref<288x512xbf16, #tpu.memory_space<vmem>>, vector<32x256xbf16>,
    %c240_i32_95 = arith.constant 240 : i32
    %156 = tpu.dynamic_rotate %123 by %c240_i32_95 dim 1 : vector<32x256xf32>, i32 -> vector<32x256xf32>
    %cst_96 = arith.constant 0.000000e+00 : f32
    %157 = vector.broadcast %cst_96 : f32 to vector<32x256xf32>
    %158 = arith.select %25, %156, %157 : vector<32x256xi1>, vector<32x256xf32>
    %159 = arith.truncf %158 : vector<32x256xf32> to vector<32x256xbf16>
    %c224_97 = arith.constant 224 : index
    %c0_98 = arith.constant 0 : index
    %160 = vector.load %arg6[%c224_97, %c0_98] : memref<288x512xbf16, #tpu.memory_space<vmem>>, vector<32x256xbf16>
    tpu.vector_store %arg6[%c224_97, %c0_98], %159 {strides = array<i32>} : memref<288x512xbf16, #tpu.memory_space<vmem>>, vector<32x256xbf16>,
    %c239_i32_99 = arith.constant 239 : i32
    %161 = tpu.dynamic_rotate %127 by %c239_i32_99 dim 1 : vector<32x256xf32>, i32 -> vector<32x256xf32>
    %cst_100 = arith.constant 0.000000e+00 : f32
    %162 = vector.broadcast %cst_100 : f32 to vector<32x256xf32>
    %163 = arith.select %25, %161, %162 : vector<32x256xi1>, vector<32x256xf32>
    %164 = arith.truncf %163 : vector<32x256xf32> to vector<32x256xbf16>
    %c256_101 = arith.constant 256 : index
    %c0_102 = arith.constant 0 : index
    %165 = vector.load %arg6[%c256_101, %c0_102] : memref<288x512xbf16, #tpu.memory_space<vmem>>, vector<32x256xbf16>
    tpu.vector_store %arg6[%c256_101, %c0_102], %164 {strides = array<i32>} : memref<288x512xbf16, #tpu.memory_space<vmem>>, vector<32x256xbf16>,
    %166 = vector.extract_strided_slice %122 {offsets = [0, 256], sizes = [32, 256], strides = [1, 1]} : vector<32x512xf32> to vector<32x256xf32>
    %cst_103 = arith.constant 0.000000e+00 : f32
    %167 = vector.broadcast %cst_103 : f32 to vector<32x256xf32>
    %168 = arith.select %21, %166, %167 : vector<32x256xi1>, vector<32x256xf32>
    %cst_104 = arith.constant 0.000000e+00 : f32
    %169 = vector.broadcast %cst_104 : f32 to vector<32x256xf32>
    %170 = arith.select %19, %166, %169 : vector<32x256xi1>, vector<32x256xf32>
    %c17_i32_105 = arith.constant 17 : i32
    %171 = tpu.dynamic_rotate %168 by %c17_i32_105 dim 1 : vector<32x256xf32>, i32 -> vector<32x256xf32>
    %cst_106 = arith.constant 0.000000e+00 : f32
    %172 = vector.broadcast %cst_106 : f32 to vector<32x256xf32>
    %173 = arith.select %23, %171, %172 : vector<32x256xi1>, vector<32x256xf32>
    %174 = arith.truncf %173 : vector<32x256xf32> to vector<32x256xbf16>
    %c0_107 = arith.constant 0 : index
    %c256_108 = arith.constant 256 : index
    %175 = vector.load %arg6[%c0_107, %c256_108] : memref<288x512xbf16, #tpu.memory_space<vmem>>, vector<32x256xbf16>
    tpu.vector_store %arg6[%c0_107, %c256_108], %174 {strides = array<i32>} : memref<288x512xbf16, #tpu.memory_space<vmem>>, vector<32x256xbf16>,
    %c16_i32_109 = arith.constant 16 : i32
    %176 = tpu.dynamic_rotate %166 by %c16_i32_109 dim 1 : vector<32x256xf32>, i32 -> vector<32x256xf32>
    %cst_110 = arith.constant 0.000000e+00 : f32
    %177 = vector.broadcast %cst_110 : f32 to vector<32x256xf32>
    %178 = arith.select %23, %176, %177 : vector<32x256xi1>, vector<32x256xf32>
    %179 = arith.truncf %178 : vector<32x256xf32> to vector<32x256xbf16>
    %c32_111 = arith.constant 32 : index
    %c256_112 = arith.constant 256 : index
    %180 = vector.load %arg6[%c32_111, %c256_112] : memref<288x512xbf16, #tpu.memory_space<vmem>>, vector<32x256xbf16>
    tpu.vector_store %arg6[%c32_111, %c256_112], %179 {strides = array<i32>} : memref<288x512xbf16, #tpu.memory_space<vmem>>, vector<32x256xbf16>,
    %c15_i32_113 = arith.constant 15 : i32
    %181 = tpu.dynamic_rotate %170 by %c15_i32_113 dim 1 : vector<32x256xf32>, i32 -> vector<32x256xf32>
    %cst_114 = arith.constant 0.000000e+00 : f32
    %182 = vector.broadcast %cst_114 : f32 to vector<32x256xf32>
    %183 = arith.select %23, %181, %182 : vector<32x256xi1>, vector<32x256xf32>
    %184 = arith.truncf %183 : vector<32x256xf32> to vector<32x256xbf16>
    %c64_115 = arith.constant 64 : index
    %c256_116 = arith.constant 256 : index
    %185 = vector.load %arg6[%c64_115, %c256_116] : memref<288x512xbf16, #tpu.memory_space<vmem>>, vector<32x256xbf16>
    tpu.vector_store %arg6[%c64_115, %c256_116], %184 {strides = array<i32>} : memref<288x512xbf16, #tpu.memory_space<vmem>>, vector<32x256xbf16>,
    %c1_i32_117 = arith.constant 1 : i32
    %186 = tpu.dynamic_rotate %168 by %c1_i32_117 dim 1 : vector<32x256xf32>, i32 -> vector<32x256xf32>
    %187 = arith.truncf %186 : vector<32x256xf32> to vector<32x256xbf16>
    %c96_118 = arith.constant 96 : index
    %c256_119 = arith.constant 256 : index
    %188 = vector.load %arg6[%c96_118, %c256_119] : memref<288x512xbf16, #tpu.memory_space<vmem>>, vector<32x256xbf16>
    tpu.vector_store %arg6[%c96_118, %c256_119], %187 {strides = array<i32>} : memref<288x512xbf16, #tpu.memory_space<vmem>>, vector<32x256xbf16>,
    %189 = arith.truncf %166 : vector<32x256xf32> to vector<32x256xbf16>
    %c128_120 = arith.constant 128 : index
    %c256_121 = arith.constant 256 : index
    %190 = vector.load %arg6[%c128_120, %c256_121] : memref<288x512xbf16, #tpu.memory_space<vmem>>, vector<32x256xbf16>
    tpu.vector_store %arg6[%c128_120, %c256_121], %189 {strides = array<i32>} : memref<288x512xbf16, #tpu.memory_space<vmem>>, vector<32x256xbf16>,
    %c255_i32_122 = arith.constant 255 : i32
    %191 = tpu.dynamic_rotate %170 by %c255_i32_122 dim 1 : vector<32x256xf32>, i32 -> vector<32x256xf32>
    %192 = arith.truncf %191 : vector<32x256xf32> to vector<32x256xbf16>
    %c160_123 = arith.constant 160 : index
    %c256_124 = arith.constant 256 : index
    %193 = vector.load %arg6[%c160_123, %c256_124] : memref<288x512xbf16, #tpu.memory_space<vmem>>, vector<32x256xbf16>
    tpu.vector_store %arg6[%c160_123, %c256_124], %192 {strides = array<i32>} : memref<288x512xbf16, #tpu.memory_space<vmem>>, vector<32x256xbf16>,
    %c241_i32_125 = arith.constant 241 : i32
    %194 = tpu.dynamic_rotate %168 by %c241_i32_125 dim 1 : vector<32x256xf32>, i32 -> vector<32x256xf32>
    %cst_126 = arith.constant 0.000000e+00 : f32
    %195 = vector.broadcast %cst_126 : f32 to vector<32x256xf32>
    %196 = arith.select %25, %194, %195 : vector<32x256xi1>, vector<32x256xf32>
    %197 = arith.truncf %196 : vector<32x256xf32> to vector<32x256xbf16>
    %c192_127 = arith.constant 192 : index
    %c256_128 = arith.constant 256 : index
    %198 = vector.load %arg6[%c192_127, %c256_128] : memref<288x512xbf16, #tpu.memory_space<vmem>>, vector<32x256xbf16>
    tpu.vector_store %arg6[%c192_127, %c256_128], %197 {strides = array<i32>} : memref<288x512xbf16, #tpu.memory_space<vmem>>, vector<32x256xbf16>,
    %c240_i32_129 = arith.constant 240 : i32
    %199 = tpu.dynamic_rotate %166 by %c240_i32_129 dim 1 : vector<32x256xf32>, i32 -> vector<32x256xf32>
    %cst_130 = arith.constant 0.000000e+00 : f32
    %200 = vector.broadcast %cst_130 : f32 to vector<32x256xf32>
    %201 = arith.select %25, %199, %200 : vector<32x256xi1>, vector<32x256xf32>
    %202 = arith.truncf %201 : vector<32x256xf32> to vector<32x256xbf16>
    %c224_131 = arith.constant 224 : index
    %c256_132 = arith.constant 256 : index
    %203 = vector.load %arg6[%c224_131, %c256_132] : memref<288x512xbf16, #tpu.memory_space<vmem>>, vector<32x256xbf16>
    tpu.vector_store %arg6[%c224_131, %c256_132], %202 {strides = array<i32>} : memref<288x512xbf16, #tpu.memory_space<vmem>>, vector<32x256xbf16>,
    %c239_i32_133 = arith.constant 239 : i32
    %204 = tpu.dynamic_rotate %170 by %c239_i32_133 dim 1 : vector<32x256xf32>, i32 -> vector<32x256xf32>
    %cst_134 = arith.constant 0.000000e+00 : f32
    %205 = vector.broadcast %cst_134 : f32 to vector<32x256xf32>
    %206 = arith.select %25, %204, %205 : vector<32x256xi1>, vector<32x256xf32>
    %207 = arith.truncf %206 : vector<32x256xf32> to vector<32x256xbf16>
    %c256_135 = arith.constant 256 : index
    %c256_136 = arith.constant 256 : index
    %208 = vector.load %arg6[%c256_135, %c256_136] : memref<288x512xbf16, #tpu.memory_space<vmem>>, vector<32x256xbf16>
    tpu.vector_store %arg6[%c256_135, %c256_136], %207 {strides = array<i32>} : memref<288x512xbf16, #tpu.memory_space<vmem>>, vector<32x256xbf16>,
    %c0_137 = arith.constant 0 : index
    %c0_138 = arith.constant 0 : index
    %209 = vector.load %arg4[%c0_137, %c0_138] : memref<32x288xbf16, #tpu.memory_space<vmem>>, vector<32x288xbf16>
    %c0_139 = arith.constant 0 : index
    %c0_140 = arith.constant 0 : index
    %210 = vector.load %arg6[%c0_139, %c0_140] : memref<288x512xbf16, #tpu.memory_space<vmem>>, vector<288x512xbf16>
    %cst_141 = arith.constant dense<0.000000e+00> : vector<32x512xf32>
    %211 = tpu.matmul %209, %210, %cst_141 {dimension_numbers = #tpu.dot_dimension_numbers<[1], [0], [0], [1], [0, 0, 1, 1], [], []>} : vector<32x288xbf16>, vector<288x512xbf16>, vector<32x512xf32> -> vector<32x512xf32>
    %212 = vector.extract_strided_slice %211 {offsets = [0, 0], sizes = [32, 256], strides = [1, 1]} : vector<32x512xf32> to vector<32x256xf32>
    %213 = vector.extract_strided_slice %26 {offsets = [0, 0, 0], sizes = [1, 32, 256], strides = [1, 1, 1]} : vector<2x32x256xf32> to vector<1x32x256xf32>
    %214 = vector.shape_cast %213 : vector<1x32x256xf32> to vector<32x256xf32>
    %215 = arith.addf %212, %214 : vector<32x256xf32>
    %cst_142 = arith.constant 0.000000e+00 : f32
    %216 = vector.broadcast %cst_142 : f32 to vector<32x256xf32>
    %217 = arith.cmpf ogt, %215, %216 : vector<32x256xf32>
    %218 = vector.broadcast %0 : f32 to vector<32x256xf32>
    %219 = arith.mulf %218, %215 : vector<32x256xf32>
    %220 = arith.select %217, %215, %219 : vector<32x256xi1>, vector<32x256xf32>
    %c0_143 = arith.constant 0 : index
    %c0_144 = arith.constant 0 : index
    %c0_145 = arith.constant 0 : index
    %221 = vector.load %arg5[%c0_143, %c0_144, %c0_145] : memref<2x32x256xf32, #tpu.memory_space<vmem>>, vector<1x32x256xf32>
    %222 = vector.shape_cast %221 : vector<1x32x256xf32> to vector<32x256xf32>
    %223 = vector.shape_cast %220 : vector<32x256xf32> to vector<1x32x256xf32>
    tpu.vector_store %arg5[%c0_143, %c0_144, %c0_145], %223 {strides = array<i32>} : memref<2x32x256xf32, #tpu.memory_space<vmem>>, vector<1x32x256xf32>,
    %224 = vector.extract_strided_slice %211 {offsets = [0, 256], sizes = [32, 256], strides = [1, 1]} : vector<32x512xf32> to vector<32x256xf32>
    %225 = vector.extract_strided_slice %26 {offsets = [1, 0, 0], sizes = [1, 32, 256], strides = [1, 1, 1]} : vector<2x32x256xf32> to vector<1x32x256xf32>
    %226 = vector.shape_cast %225 : vector<1x32x256xf32> to vector<32x256xf32>
    %227 = arith.addf %224, %226 : vector<32x256xf32>
    %cst_146 = arith.constant 0.000000e+00 : f32
    %228 = vector.broadcast %cst_146 : f32 to vector<32x256xf32>
    %229 = arith.cmpf ogt, %227, %228 : vector<32x256xf32>
    %230 = vector.broadcast %0 : f32 to vector<32x256xf32>
    %231 = arith.mulf %230, %227 : vector<32x256xf32>
    %232 = arith.select %229, %227, %231 : vector<32x256xi1>, vector<32x256xf32>
    %c1 = arith.constant 1 : index
    %c0_147 = arith.constant 0 : index
    %c0_148 = arith.constant 0 : index
    %233 = vector.load %arg5[%c1, %c0_147, %c0_148] : memref<2x32x256xf32, #tpu.memory_space<vmem>>, vector<1x32x256xf32>
    %234 = vector.shape_cast %233 : vector<1x32x256xf32> to vector<32x256xf32>
    %235 = vector.shape_cast %232 : vector<32x256xf32> to vector<1x32x256xf32>
    tpu.vector_store %arg5[%c1, %c0_147, %c0_148], %235 {strides = array<i32>} : memref<2x32x256xf32, #tpu.memory_space<vmem>>, vector<1x32x256xf32>,
    return
  }
  func.func @transform_0(%arg0: i32) -> i32 {
    %c0_i32 = arith.constant 0 : i32
    %c0_i32_0 = arith.constant 0 : i32
    return %c0_i32 : i32
  }
  func.func @transform_1(%arg0: i32) -> (i32, i32, i32) {
    %c0_i32 = arith.constant 0 : i32
    %c0_i32_0 = arith.constant 0 : i32
    %c0_i32_1 = arith.constant 0 : i32
    return %arg0, %c0_i32, %c0_i32_0 : i32, i32, i32
  }
  func.func @transform_2(%arg0: i32) -> (i32, i32) {
    %c0_i32 = arith.constant 0 : i32
    %c0_i32_0 = arith.constant 0 : i32
    %c0_i32_1 = arith.constant 0 : i32
    return %c0_i32, %c0_i32_0 : i32, i32
  }
  func.func @transform_3(%arg0: i32) -> (i32, i32) {
    %c0_i32 = arith.constant 0 : i32
    %c0_i32_0 = arith.constant 0 : i32
    %c0_i32_1 = arith.constant 0 : i32
    return %c0_i32, %c0_i32_0 : i32, i32
  }
  func.func @transform_4(%arg0: i32) -> (i32, i32, i32) {
    %c0_i32 = arith.constant 0 : i32
    %c0_i32_0 = arith.constant 0 : i32
    %c0_i32_1 = arith.constant 0 : i32
    return %arg0, %c0_i32, %c0_i32_0 : i32, i32, i32
  }
}

</mosaic_0001>

<bundles_post_ra>
// kernel: tpu_custom_call.1
= control target key start
LH: loop header
LB: loop body
LE: loop exit
PB: predicated region body
PF: predicated region fallthrough
CT: control target
= control target key end

     0   :  { %10 = vsyncpa [#allocation5], 0  ;;  %s6138_s0 = inlined_call_operand.<no memory space> [shape: f32[1], index: 0, kind: input, shape index: {}]   ;;  %s6139_s1 = inlined_call_operand.hbm [shape: f32[2,32,256], index: 1, kind: input, shape index: {}]   ;;  %s6140_s2 = inlined_call_operand.hbm [shape: bf16[32,288], index: 2, kind: input, shape index: {}]   ;;  %s6141_s3 = inlined_call_operand.hbm [shape: bf16[32,288], index: 3, kind: input, shape index: {}]   ;;  %s6142_s4 = inlined_call_operand.hbm [shape: f32[2,32,256], index: 4, kind: output, shape index: {}]  }
   0x1   :  { %11 = vsyncpa [#allocation8], 0  ;;  %s32_s17 = sshll.u32 %s6140_s2, 4  ;;  %s33_s17 = int_to_ptr.hbm [resolvable:$true] %s32_s17 }
   0x2   :  { %12 = vsyncpa [#allocation6], 0  ;;  %s4575_s18 = smov [#allocation7]   ;;  %s19_s22 = sshll.u32 %s6139_s1, 4  ;;  %s20_s22 = int_to_ptr.hbm [resolvable:$true] %s19_s22 }
   0x3   :  { %s34_s19 = sshll.u32 %s4575_s18, 4  ;;  %s4576_s23 = smov 192   ;;  %s35_s19 = int_to_ptr.vmem [resolvable:$true] %s34_s19 }
   0x4   :  { %s4577_s24 = smov 12   ;;  %s4578_s25 = smov [#allocation4]  }
   0x5   :  { %40 = dma.hbm_to_vmem [thread:$0]  %s33_s17, 768, %s35_s19, [#allocation8], %s4576_s23, %s4576_s23, %s4577_s24  }
   0x6   :  { %s21_s26 = sshll.u32 %s4578_s25, 4  ;;  %s4579_s27 = smov 256   ;;  %s22_s26 = int_to_ptr.vmem [resolvable:$true] %s21_s26 }
   0x7   :  { %s4580_s28 = smov 16   ;;  %s45_s30 = sshll.u32 %s6141_s3, 4  ;;  %s46_s30 = int_to_ptr.hbm [resolvable:$true] %s45_s30 }
   0x8   :  { %27 = dma.hbm_to_vmem [thread:$0]  %s20_s22, 2048, %s22_s26, [#allocation5], %s4579_s27, %s4579_s27, %s4580_s28  }
   0x9   :  { %s4581_s5 = smov [#allocation9]  }
   0xa   :  { %s47_s1 = sshll.u32 %s4581_s5, 4  ;;  %s48_s1 = int_to_ptr.vmem [resolvable:$true] %s47_s1 }
   0xb   :  { %53 = dma.hbm_to_vmem [thread:$0]  %s46_s30, 768, %s48_s1, [#allocation8], %s4576_s23, %s4576_s23, %s4577_s24  }
   0xc   :  { %4569 = dma.done.wait [#allocation5], 2048  }
   0xd   :  { %4570 = vsyncadd [#allocation5], 4294965248 }
   0xe   :  { %4571 = dma.done.wait [#allocation8], 1536  }
   0xf   :  { %4572 = vsyncadd [#allocation8], 4294965760  ;;  %v68_v0 = vlaneseq  ;;  %v103_v5 = vld [vmem:[#allocation4] sm:$0xff]  ;;  %v105_v6 = vld [vmem:[#allocation4 + $0x10] sm:$0xff]  ;;  %s4582_s3 = smov 17   ;;  %s4583_s6 = smov 15  }
  0x10   :  { %v104_v10 = vld [vmem:[#allocation4 + $0x8] sm:$0xff]  ;;  %v106_v11 = vld [vmem:[#allocation4 + $0x18] sm:$0xff]  ;;  %v107_v12 = vld [vmem:[#allocation4 + $0x20] sm:$0xff]  ;;  %v3817_v27 = vpack.i.bf16 %v105_v6, %v103_v5  ;;  %s4584_s7 = smov 1   ;;  %s4585_s8 = smov 127   ;;  %vm6143_vm14 = vcmask 261120  }
  0x11   :  { %v4627_v1 = vand.u32 127, %v68_v0  ;;  %v292_v14 = vpack.c.bf16 %v106_v11, %v105_v6  ;;  %v291_v15 = vpack.c.bf16 %v104_v10, %v103_v5  ;;  %v109_v16 = vld [vmem:[#allocation4 + $0x30] sm:$0xff]  ;;  %v108_v17 = vld [vmem:[#allocation4 + $0x28] sm:$0xff]  ;;  %v110_v18 = vld [vmem:[#allocation4 + $0x38] sm:$0xff]  ;;  %v3837_v33 = vpack.i.bf16 %v106_v11, %v104_v10  ;;  %s4586_s9 = smov 113   ;;  %s4587_s10 = smov 112  }
  0x12   :  { %v294_v20 = vpack.c.bf16 %v110_v18, %v109_v16  ;;  %v293_v21 = vpack.c.bf16 %v108_v17, %v107_v12  ;;  %3818 = vrot.lane.b32.xlu2 %v3817_v27, %s4580_s28  ;;  %v3822_v32 = vpack.i.bf16 %v109_v16, %v107_v12  ;;  %v3852_v37 = vpack.i.bf16 %v110_v18, %v108_v17  ;;  %v4711_v49 = vld [vmem:[#allocation4 + $0x60] sm:$0xff]  ;;  %v4714_v50 = vld [vmem:[#allocation4 + $0x70] sm:$0xff]  ;;  %v4716_v51 = vld [vmem:[#allocation4 + $0x68] sm:$0xff]  ;;  %s4588_s11 = smov 111   ;;  %s2984_s17 = sshll.u32 %s6142_s4, 4  ;;  %s2985_s17 = int_to_ptr.hbm [resolvable:$true] %s2984_s17 }
  0x13   :  { %v75_v2 = vand.u32 15, %v4627_v1  ;;  %v4635_v4 = vadd.s32 128, %v4627_v1  ;;  %296 = vst [vmem:[#allocation2 + $0x110] sm:$0xff] %v292_v14  ;;  %v4718_v52 = vld [vmem:[#allocation4 + $0x78] sm:$0xff]  ;;  %v625_v54 = vpack.c.bf16 %v4716_v51, %v4711_v49  ;;  %v4724_v55 = vld [vmem:[#allocation4 + $0x48] sm:$0xff]  ;;  %v4729_v57 = vld [vmem:[#allocation4 + $0x40] sm:$0xff]  ;;  %v4778_v14 = vpack.i.bf16 %v4714_v50, %v4711_v49 }
  0x14   :  { %295 = vst [vmem:[#allocation2 + $0x100] sm:$0xff] %v291_v15  ;;  %v626_v53 = vpack.c.bf16 %v4718_v52, %v4714_v50  ;;  %v4727_v56 = vld [vmem:[#allocation4 + $0x58] sm:$0xff]  ;;  %v4731_v58 = vld [vmem:[#allocation4 + $0x50] sm:$0xff]  ;;  %v623_v59 = vpack.c.bf16 %v4724_v55, %v4729_v57  ;;  %vm151_vm4 = vcmp.lt.s32.totalorder %v4627_v1, 17  ;;  %vm99_vm5 = vcmp.ge.s32.totalorder %v4627_v1, 16 }
  0x15   :  { %vm4630_vm0 = vcmp.lt.s32.totalorder %v75_v2, 15  ;;  %v82_v9 = vand.u32 15, %v4635_v4  ;;  %298 = vst [vmem:[#allocation2 + $0x130] sm:$0xff] %v294_v20  ;;  %vm4666_vm2 = vcmp.gt.s32.totalorder %v75_v2, 0  ;;  %v624_v60 = vpack.c.bf16 %v4727_v56, %v4731_v58 }
  0x16   :  { %v119_v7 = vsel %vm4630_vm0, %v103_v5, 0.0  ;;  %v121_v8 = vsel %vm4630_vm0, %v105_v6, 0.0  ;;  %v123_v25 = vsel %vm4630_vm0, %v107_v12, 0.0  ;;  %v125_v26 = vsel %vm4630_vm0, %v109_v16, 0.0  ;;  %297 = vst [vmem:[#allocation2 + $0x120] sm:$0xff] %v293_v21 }
  0x17   :  { %v4642_v13 = vpack.i.bf16 %v121_v8, %v119_v7  ;;  %vm4644_vm1 = vcmp.lt.s32.totalorder %v82_v9, 15  ;;  %v3832_v28 = vpack.i.bf16 %v125_v26, %v123_v25  ;;  %v127_v35 = vsel %vm4666_vm2, %v103_v5, 0.0  ;;  %630 = vst [vmem:[#allocation2 + $0x138] sm:$0xff] %v626_v53 }
  0x18   :  { %v120_v22 = vsel %vm4644_vm1, %v104_v10, 0.0  ;;  %v122_v23 = vsel %vm4644_vm1, %v106_v11, 0.0  ;;  %v124_v29 = vsel %vm4644_vm1, %v108_v17, 0.0  ;;  %v126_v30 = vsel %vm4644_vm1, %v110_v18, 0.0  ;;  %629 = vst [vmem:[#allocation2 + $0x128] sm:$0xff] %v625_v54 }
  0x19   :  { %3828 = vrot.lane.b32.xlu0 %v4642_v13, %s4582_s3  ;;  %v3842_v24 = vpack.i.bf16 %v122_v23, %v120_v22  ;;  %v3847_v31 = vpack.i.bf16 %v126_v30, %v124_v29  ;;  %v129_v36 = vsel %vm4666_vm2, %v105_v6, 0.0  ;;  %v131_v39 = vsel %vm4666_vm2, %v107_v12, 0.0  ;;  %627 = vst [vmem:[#allocation2 + $0x108] sm:$0xff] %v623_v59 }
  0x1a   :  { %3823 = vrot.lane.b32.xlu2 %v3822_v32, %s4580_s28  ;;  %v3857_v38 = vpack.i.bf16 %v129_v36, %v127_v35  ;;  %v133_v40 = vsel %vm4666_vm2, %v109_v16, 0.0  ;;  %vm4680_vm3 = vcmp.gt.s32.totalorder %v82_v9, 0  ;;  %628 = vst [vmem:[#allocation2 + $0x118] sm:$0xff] %v624_v60  ;;  %v455_v62 = vsel %vm4630_vm0, %v4729_v57, 0.0 }
  0x1b   :  { %3843 = vrot.lane.b32.xlu1 %v3842_v24, %s4582_s3  ;;  %v3862_v42 = vpack.i.bf16 %v133_v40, %v131_v39  ;;  %v128_v43 = vsel %vm4680_vm3, %v104_v10, 0.0  ;;  %v130_v44 = vsel %vm4680_vm3, %v106_v11, 0.0  ;;  %v132_v45 = vsel %vm4680_vm3, %v108_v17, 0.0 }
  0x1c   :  { %v134_v46 = vsel %vm4680_vm3, %v110_v18, 0.0  ;;  %v3867_v47 = vpack.i.bf16 %v130_v44, %v128_v43  ;;  %v3967_v61 = vpack.i.bf16 %v132_v45, %v128_v43  ;;  %v457_v63 = vsel %vm4630_vm0, %v4731_v58, 0.0 }
  0x1d   :  { %v3872_v48 = vpack.i.bf16 %v134_v46, %v132_v45  ;;  %v3972_v0 = vpack.i.bf16 %v130_v44, %v134_v46  ;;  %v4748_v2 = vpack.i.bf16 %v457_v63, %v455_v62  ;;  %v459_v5 = vsel %vm4630_vm0, %v4711_v49, 0.0 }
  0x1e   :  { %v461_v6 = vsel %vm4630_vm0, %v4714_v50, 0.0  ;;  %v456_v8 = vsel %vm4644_vm1, %v4724_v55, 0.0  ;;  %v458_v9 = vsel %vm4644_vm1, %v4727_v56, 0.0  ;;  %v460_v10 = vsel %vm4644_vm1, %v4716_v51, 0.0 }
  0x1f   :  { %v3982_v7 = vpack.i.bf16 %v461_v6, %v459_v5  ;;  %v462_v11 = vsel %vm4644_vm1, %v4718_v52, 0.0  ;;  %v4771_v12 = vpack.i.bf16 %v458_v9, %v456_v8  ;;  %v4785_v16 = vpack.i.bf16 %v4718_v52, %v4716_v51 }
  0x20   :  { %v4791_v17 = vpack.i.bf16 %v4731_v58, %v4729_v57  ;;  %v4797_v18 = vpack.i.bf16 %v4727_v56, %v4724_v55  ;;  %v467_v23 = vsel %vm4666_vm2, %v4711_v49, 0.0  ;;  %v465_v49 = vsel %vm4666_vm2, %v4731_v58, 0.0 }
  0x21   :  { %3833 = vrot.lane.b32.xlu0 %v3832_v28, %s4582_s3  ;;  %v464_v63 = vsel %vm4680_vm3, %v4724_v55, 0.0  ;;  %vm192_vm6 = vcmp.lt.s32.totalorder %v4627_v1, 16  ;;  %vm233_vm7 = vcmp.lt.s32.totalorder %v4627_v1, 15  ;;  %vm274_vm8 = vcmp.lt.s32.totalorder %v4627_v1, 1 }
  0x22   :  { %3858 = vrot.lane.b32.xlu2 %v3857_v38, %s4583_s6  ;;  %vm6144_vm9 = vcmp.lt.s32.totalorder %v4627_v1, 127  ;;  %vm348_vm10 = vcmp.lt.s32.totalorder %v4627_v1, 113  ;;  %vm102_vm11 = vcmp.lt.s32.totalorder %v4635_v4, 240  ;;  %vm389_vm12 = vcmp.lt.s32.totalorder %v4627_v1, 112 }
  0x23   :  { %3848 = vrot.lane.b32.xlu1 %v3847_v31, %s4582_s3  ;;  %vm6145_vm13 = vcmp.lt.s32.totalorder %v4627_v1, 111 }
  0x29   :  { %3838 = vrot.lane.b32.xlu0 %v3837_v33, %s4580_s28 }
  0x2a   :  { %3873 = vrot.lane.b32.xlu2 %v3872_v48, %s4583_s6 }
  0x2b   :  { %3853 = vrot.lane.b32.xlu1 %v3852_v37, %s4580_s28 }
  0x31   :  { %3863 = vrot.lane.b32.xlu0 %v3862_v42, %s4583_s6 }
  0x32   :  { %3888 = vrot.lane.b32.xlu2 %v3842_v24, %s4584_s7 }
  0x33   :  { %3868 = vrot.lane.b32.xlu1 %v3867_v47, %s4583_s6 }
  0x39   :  { %3878 = vrot.lane.b32.xlu0 %v4642_v13, %s4584_s7 }
  0x3a   :  { %3903 = vrot.lane.b32.xlu2 %v3862_v42, %s4585_s8 }
  0x3b   :  { %3883 = vrot.lane.b32.xlu1 %v3832_v28, %s4584_s7 }
  0x41   :  { %3893 = vrot.lane.b32.xlu0 %v3847_v31, %s4584_s7 }
  0x42   :  { %3918 = vrot.lane.b32.xlu2 %v4642_v13, %s4586_s9  ;;  %v3992_v13 = vpack.i.bf16 %v462_v11, %v460_v10 }
  0x43   :  { %3898 = vrot.lane.b32.xlu1 %v3857_v38, %s4585_s8 }
  0x49   :  { %3908 = vrot.lane.b32.xlu0 %v3867_v47, %s4585_s8 }
  0x4a   :  { %3933 = vrot.lane.b32.xlu2 %v3847_v31, %s4586_s9 }
  0x4b   :  { %3913 = vrot.lane.b32.xlu1 %v3872_v48, %s4585_s8  ;;  %v463_v48 = vsel %vm4666_vm2, %v4729_v57, 0.0 }
  0x4c   :  { %v4859_v54 = vpack.i.bf16 %v465_v49, %v463_v48 }
  0x51   :  { %3923 = vrot.lane.b32.xlu0 %v3832_v28, %s4586_s9  ;;  %v470_v28 = vsel %vm4680_vm3, %v4718_v52, 0.0 }
  0x52   :  { %3948 = vrot.lane.b32.xlu2 %v3837_v33, %s4587_s10 }
  0x53   :  { %3928 = vrot.lane.b32.xlu1 %v3842_v24, %s4586_s9  ;;  %v469_v24 = vsel %vm4666_vm2, %v4714_v50, 0.0 }
  0x54   :  { %v4829_v33 = vpack.i.bf16 %v469_v24, %v467_v23 }
  0x59   :  { %3938 = vrot.lane.b32.xlu0 %v3817_v27, %s4587_s10  ;;  %v468_v27 = vsel %vm4680_vm3, %v4716_v51, 0.0 }
  0x5a   :  { %3963 = vrot.lane.b32.xlu2 %v3862_v42, %s4588_s11  ;;  %v4831_v35 = vpack.i.bf16 %v470_v28, %v468_v27 }
  0x5b   :  { %3943 = vrot.lane.b32.xlu1 %v3822_v32, %s4587_s10 }
  0x61   :  { %3953 = vrot.lane.b32.xlu0 %v3852_v37, %s4587_s10 }
  0x62   :  { %3978 = vrot.lane.b32.xlu2 %v4748_v2, %s4582_s3 }
  0x63   :  { %3958 = vrot.lane.b32.xlu1 %v3857_v38, %s4588_s11 }
  0x69   :  { %3968 = vrot.lane.b32.xlu0 %v3967_v61, %s4588_s11 }
  0x6a   :  { %3993 = vrot.lane.b32.xlu2 %v3992_v13, %s4582_s3 }
  0x6b   :  { %3973 = vrot.lane.b32.xlu1 %v3972_v0, %s4588_s11  ;;  %v466_v0 = vsel %vm4680_vm3, %v4727_v56, 0.0 }
  0x6c   :  { %v4781_v15 = vpop.permute.xlu2 %3818  ;;  %v4888_v56 = vpack.i.bf16 %v466_v0, %v464_v63 }
  0x6d   :  { %v3820_v8 = vunpack.i.l.bf16 %v4781_v15 }
  0x71   :  { %3983 = vrot.lane.b32.xlu0 %v3982_v7, %s4582_s3 }
  0x72   :  { %4008 = vrot.lane.b32.xlu2 %v4791_v17, %s4587_s10 }
  0x73   :  { %3988 = vrot.lane.b32.xlu1 %v4771_v12, %s4582_s3 }
  0x74   :  { %v4801_v20 = vpop.permute.xlu2 %3823 }
  0x75   :  { %v3826_v55 = vunpack.i.h.bf16 %v4801_v20  ;;  %v3825_v11 = vunpack.i.l.bf16 %v4801_v20 }
  0x79   :  { %3998 = vrot.lane.b32.xlu0 %v4778_v14, %s4587_s10 }
  0x7a   :  { %4023 = vrot.lane.b32.xlu2 %v3992_v13, %s4584_s7 }
  0x7b   :  { %4003 = vrot.lane.b32.xlu1 %v4785_v16, %s4587_s10 }
  0x7c   :  { %v4807_v21 = vpop.permute.xlu2 %3858 }
  0x7d   :  { %v3861_v48 = vunpack.i.h.bf16 %v4807_v21  ;;  %v3860_v49 = vunpack.i.l.bf16 %v4807_v21 }
  0x81   :  { %4013 = vrot.lane.b32.xlu0 %v4797_v18, %s4587_s10 }
  0x82   :  { %4038 = vrot.lane.b32.xlu2 %v4748_v2, %s4584_s7 }
  0x83   :  { %4018 = vrot.lane.b32.xlu1 %v3982_v7, %s4584_s7 }
  0x84   :  { %v4827_v32 = vpop.permute.xlu2 %3873 }
  0x89   :  { %4028 = vrot.lane.b32.xlu0 %v3982_v7, %s4586_s9 }
  0x8a   :  { %4053 = vrot.lane.b32.xlu2 %v4831_v35, %s4583_s6 }
  0x8b   :  { %v3829_v22 = vpop.permute.xlu0 %3828  ;;  %4033 = vrot.lane.b32.xlu1 %v3992_v13, %s4586_s9 }
  0x8c   :  { %v3831_v25 = vunpack.i.h.bf16 %v3829_v22  ;;  %v3830_v26 = vunpack.i.l.bf16 %v3829_v22  ;;  %v4857_v53 = vpop.permute.xlu2 %3888 }
  0x8d   :  { %v3844_v29 = vpop.permute.xlu1 %3843 }
  0x8e   :  { %v3846_v30 = vunpack.i.h.bf16 %v3844_v29  ;;  %v3845_v31 = vunpack.i.l.bf16 %v3844_v29 }
  0x90   :  { %v152_v36 = vsel %vm151_vm4, %v3830_v26, %v3845_v31  ;;  %v153_v37 = vsel %vm151_vm4, %v3831_v25, %v3846_v30  ;;  %v156_v38 = vsel %vm151_vm4, %v3845_v31, %v3830_v26  ;;  %v157_v39 = vsel %vm151_vm4, %v3846_v30, %v3831_v25 }
  0x91   :  { %4043 = vrot.lane.b32.xlu0 %v4771_v12, %s4584_s7  ;;  %v160_v40 = vsel %vm99_vm5, %v156_v38, 0.0  ;;  %v162_v42 = vsel %vm99_vm5, %v157_v39, 0.0 }
  0x92   :  { %v168_v43 = vpack.c.bf16 %v152_v36, %v160_v40  ;;  %v169_v44 = vpack.c.bf16 %v153_v37, %v162_v42  ;;  %4068 = vrot.lane.b32.xlu2 %v4859_v54, %s4583_s6  ;;  %v3876_v40 = vunpack.i.h.bf16 %v4827_v32  ;;  %v3875_v42 = vunpack.i.l.bf16 %v4827_v32 }
  0x93   :  { %v3834_v45 = vpop.permute.xlu0 %3833  ;;  %4048 = vrot.lane.b32.xlu1 %v4829_v33, %s4583_s6 }
  0x94   :  { %172 = vst [vmem:[#allocation2] sm:$0xff] %v168_v43  ;;  %v3836_v46 = vunpack.i.h.bf16 %v3834_v45  ;;  %v3835_v47 = vunpack.i.l.bf16 %v3834_v45  ;;  %v4904_v27 = vpop.permute.xlu2 %3903 }
  0x95   :  { %173 = vst [vmem:[#allocation2 + $0x10] sm:$0xff] %v169_v44  ;;  %v3849_v50 = vpop.permute.xlu1 %3848 }
  0x96   :  { %v3851_v51 = vunpack.i.h.bf16 %v3849_v50  ;;  %v3850_v52 = vunpack.i.l.bf16 %v3849_v50 }
  0x98   :  { %v154_v59 = vsel %vm151_vm4, %v3835_v47, %v3850_v52  ;;  %v155_v60 = vsel %vm151_vm4, %v3836_v46, %v3851_v51  ;;  %v158_v57 = vsel %vm151_vm4, %v3850_v52, %v3835_v47  ;;  %v159_v58 = vsel %vm151_vm4, %v3851_v51, %v3836_v46 }
  0x99   :  { %4058 = vrot.lane.b32.xlu0 %v4748_v2, %s4586_s9  ;;  %v164_v61 = vsel %vm99_vm5, %v158_v57, 0.0  ;;  %v166_v62 = vsel %vm99_vm5, %v159_v58, 0.0  ;;  %v3821_v2 = vunpack.i.h.bf16 %v4781_v15 }
  0x9a   :  { %v170_v5 = vpack.c.bf16 %v154_v59, %v164_v61  ;;  %v171_v6 = vpack.c.bf16 %v155_v60, %v166_v62  ;;  %4083 = vrot.lane.b32.xlu2 %v4831_v35, %s4585_s8 }
  0x9b   :  { %v3839_v7 = vpop.permute.xlu0 %3838  ;;  %4063 = vrot.lane.b32.xlu1 %v4771_v12, %s4586_s9 }
  0x9c   :  { %v3841_v9 = vunpack.i.h.bf16 %v3839_v7  ;;  %v3840_v10 = vunpack.i.l.bf16 %v3839_v7  ;;  %174 = vst [vmem:[#allocation2 + $0x20] sm:$0xff] %v170_v5  ;;  %v4941_v61 = vpop.permute.xlu2 %3918 }
  0x9d   :  { %175 = vst [vmem:[#allocation2 + $0x30] sm:$0xff] %v171_v6  ;;  %v3854_v20 = vpop.permute.xlu1 %3853 }
  0x9e   :  { %v194_v13 = vsel %vm192_vm6, %v3821_v2, %v3841_v9  ;;  %v198_v15 = vsel %vm192_vm6, %v3841_v9, %v3821_v2  ;;  %v193_v12 = vsel %vm192_vm6, %v3820_v8, %v3840_v10  ;;  %v197_v22 = vsel %vm192_vm6, %v3840_v10, %v3820_v8 }
  0x9f   :  { %v203_v23 = vsel %vm99_vm5, %v198_v15, 0.0  ;;  %v201_v24 = vsel %vm99_vm5, %v197_v22, 0.0  ;;  %v3856_v25 = vunpack.i.h.bf16 %v3854_v20  ;;  %v3855_v26 = vunpack.i.l.bf16 %v3854_v20 }
  0xa0   :  { %v210_v28 = vpack.c.bf16 %v194_v13, %v203_v23  ;;  %v209_v29 = vpack.c.bf16 %v193_v12, %v201_v24  ;;  %v3891_v9 = vunpack.i.h.bf16 %v4857_v53  ;;  %v3890_v10 = vunpack.i.l.bf16 %v4857_v53 }
  0xa1   :  { %v195_v30 = vsel %vm192_vm6, %v3825_v11, %v3855_v26  ;;  %v196_v31 = vsel %vm192_vm6, %v3826_v55, %v3856_v25  ;;  %v199_v36 = vsel %vm192_vm6, %v3855_v26, %v3825_v11  ;;  %v200_v37 = vsel %vm192_vm6, %v3856_v25, %v3826_v55  ;;  %4073 = vrot.lane.b32.xlu0 %v4888_v56, %s4583_s6 }
  0xa2   :  { %214 = vst [vmem:[#allocation2 + $0x50] sm:$0xff] %v210_v28  ;;  %v205_v38 = vsel %vm99_vm5, %v199_v36, 0.0  ;;  %v207_v39 = vsel %vm99_vm5, %v200_v37, 0.0  ;;  %4098 = vrot.lane.b32.xlu2 %v4859_v54, %s4585_s8 }
  0xa3   :  { %213 = vst [vmem:[#allocation2 + $0x40] sm:$0xff] %v209_v29  ;;  %v211_v43 = vpack.c.bf16 %v195_v30, %v205_v38  ;;  %v212_v44 = vpack.c.bf16 %v196_v31, %v207_v39  ;;  %v3864_v45 = vpop.permute.xlu0 %3863  ;;  %4078 = vrot.lane.b32.xlu1 %v4829_v33, %s4585_s8 }
  0xa4   :  { %v3866_v46 = vunpack.i.h.bf16 %v3864_v45  ;;  %v3865_v47 = vunpack.i.l.bf16 %v3864_v45  ;;  %v4972_v25 = vpop.permute.xlu2 %3933 }
  0xa5   :  { %215 = vst [vmem:[#allocation2 + $0x60] sm:$0xff] %v211_v43  ;;  %v3869_v59 = vpop.permute.xlu1 %3868 }
  0xa6   :  { %216 = vst [vmem:[#allocation2 + $0x70] sm:$0xff] %v212_v44  ;;  %v237_v32 = vsel %vm233_vm7, %v3866_v46, %v3876_v40  ;;  %v241_v50 = vsel %vm233_vm7, %v3876_v40, %v3866_v46  ;;  %v236_v51 = vsel %vm233_vm7, %v3865_v47, %v3875_v42  ;;  %v240_v52 = vsel %vm233_vm7, %v3875_v42, %v3865_v47 }
  0xa7   :  { %v248_v21 = vsel %vm99_vm5, %v241_v50, 0.0  ;;  %v246_v60 = vsel %vm99_vm5, %v240_v52, 0.0  ;;  %v3871_v57 = vunpack.i.h.bf16 %v3869_v59  ;;  %v3870_v58 = vunpack.i.l.bf16 %v3869_v59 }
  0xa8   :  { %v253_v62 = vpack.c.bf16 %v237_v32, %v248_v21  ;;  %v252_v63 = vpack.c.bf16 %v236_v51, %v246_v60 }
  0xa9   :  { %v234_v0 = vsel %vm233_vm7, %v3860_v49, %v3870_v58  ;;  %v235_v5 = vsel %vm233_vm7, %v3861_v48, %v3871_v57  ;;  %v238_v6 = vsel %vm233_vm7, %v3870_v58, %v3860_v49  ;;  %v239_v7 = vsel %vm233_vm7, %v3871_v57, %v3861_v48  ;;  %4088 = vrot.lane.b32.xlu0 %v4778_v14, %s4580_s28 }
  0xaa   :  { %257 = vst [vmem:[#allocation2 + $0xb0] sm:$0xff] %v253_v62  ;;  %v242_v2 = vsel %vm99_vm5, %v238_v6, 0.0  ;;  %v244_v8 = vsel %vm99_vm5, %v239_v7, 0.0  ;;  %4113 = vrot.lane.b32.xlu2 %v4797_v18, %s4580_s28  ;;  %v3906_v48 = vunpack.i.h.bf16 %v4904_v27  ;;  %v3905_v49 = vunpack.i.l.bf16 %v4904_v27 }
  0xab   :  { %256 = vst [vmem:[#allocation2 + $0xa0] sm:$0xff] %v252_v63  ;;  %v250_v55 = vpack.c.bf16 %v234_v0, %v242_v2  ;;  %v251_v11 = vpack.c.bf16 %v235_v5, %v244_v8  ;;  %v3879_v13 = vpop.permute.xlu0 %3878  ;;  %4093 = vrot.lane.b32.xlu1 %v4785_v16, %s4580_s28 }
  0xac   :  { %v3881_v14 = vunpack.i.h.bf16 %v3879_v13  ;;  %v3880_v15 = vunpack.i.l.bf16 %v3879_v13  ;;  %v4988_v43 = vpop.permute.xlu2 %3948 }
  0xad   :  { %254 = vst [vmem:[#allocation2 + $0x80] sm:$0xff] %v250_v55  ;;  %v3884_v16 = vpop.permute.xlu1 %3883  ;;  %v3935_v55 = vunpack.i.l.bf16 %v4972_v25 }
  0xae   :  { %255 = vst [vmem:[#allocation2 + $0x90] sm:$0xff] %v251_v11  ;;  %v276_v12 = vsel %vm274_vm8, %v3881_v14, %v3891_v9  ;;  %v280_v53 = vsel %vm274_vm8, %v3891_v9, %v3881_v14  ;;  %v275_v22 = vsel %vm274_vm8, %v3880_v15, %v3890_v10  ;;  %v279_v20 = vsel %vm274_vm8, %v3890_v10, %v3880_v15 }
  0xaf   :  { %v284_v23 = vpack.c.bf16 %v276_v12, %v280_v53  ;;  %v283_v24 = vpack.c.bf16 %v275_v22, %v279_v20  ;;  %v3886_v28 = vunpack.i.h.bf16 %v3884_v16  ;;  %v3885_v29 = vunpack.i.l.bf16 %v3884_v16 }
  0xb0   :  { %v3921_v20 = vunpack.i.h.bf16 %v4941_v61  ;;  %v3920_v16 = vunpack.i.l.bf16 %v4941_v61 }
  0xb1   :  { %288 = vst [vmem:[#allocation2 + $0xd0] sm:$0xff] %v284_v23  ;;  %4103 = vrot.lane.b32.xlu0 %v4888_v56, %s4585_s8 }
  0xb2   :  { %287 = vst [vmem:[#allocation2 + $0xc0] sm:$0xff] %v283_v24  ;;  %4128 = vrot.lane.b32.xlu2 %v4859_v54, %s4588_s11  ;;  %v3936_v54 = vunpack.i.h.bf16 %v4972_v25  ;;  %v3104_v24 = vld [vmem:[#allocation2 + $0xa0] sm:$0xf]  ;;  %v3666_v25 = vld [vmem:[#allocation2 + $0xac] sm:$0xf0] }
  0xb3   :  { %v3894_v26 = vpop.permute.xlu0 %3893  ;;  %4108 = vrot.lane.b32.xlu1 %v4791_v17, %s4580_s28 }
  0xb4   :  { %v3896_v30 = vunpack.i.h.bf16 %v3894_v26  ;;  %v3895_v31 = vunpack.i.l.bf16 %v3894_v26  ;;  %v5007_v60 = vpop.permute.xlu2 %3963 }
  0xb5   :  { %v3899_v40 = vpop.permute.xlu1 %3898 }
  0xb6   :  { %v278_v36 = vsel %vm274_vm8, %v3886_v28, %v3896_v30  ;;  %v282_v37 = vsel %vm274_vm8, %v3896_v30, %v3886_v28  ;;  %v277_v38 = vsel %vm274_vm8, %v3885_v29, %v3895_v31  ;;  %v281_v39 = vsel %vm274_vm8, %v3895_v31, %v3885_v29 }
  0xb7   :  { %v286_v42 = vpack.c.bf16 %v278_v36, %v282_v37  ;;  %v285_v17 = vpack.c.bf16 %v277_v38, %v281_v39  ;;  %v3901_v44 = vunpack.i.h.bf16 %v3899_v40  ;;  %v3900_v45 = vunpack.i.l.bf16 %v3899_v40 }
  0xb8   :  { %v3670_v62 = vld [vmem:[#allocation2 + $0xcc] sm:$0xf0]  ;;  %v3122_v63 = vld [vmem:[#allocation2 + $0xd0] sm:$0xf0] }
  0xb9   :  { %290 = vst [vmem:[#allocation2 + $0xf0] sm:$0xff] %v286_v42  ;;  %4118 = vrot.lane.b32.xlu0 %v4829_v33, %s4588_s11  ;;  %v3120_v13 = vld [vmem:[#allocation2 + $0xc0] sm:$0xf]  ;;  %v3668_v14 = vld [vmem:[#allocation2 + $0xc4] sm:$0xf]  ;;  %v3105_v42 = vor.u32 %v3666_v25, %v3104_v24 }
  0xba   :  { %289 = vst [vmem:[#allocation2 + $0xe0] sm:$0xff] %v285_v17  ;;  %v3125_v23 = vor.u32 %v3668_v14, %v3122_v63  ;;  %v3664_v17 = vld [vmem:[#allocation2 + $0xa4] sm:$0xf] }
  0xbb   :  { %v3909_v18 = vpop.permute.xlu0 %3908  ;;  %4123 = vrot.lane.b32.xlu1 %v4831_v35, %s4588_s11  ;;  %v3656_v14 = vld [vmem:[#allocation2 + $0x64] sm:$0xf] }
  0xbc   :  { %v3911_v46 = vunpack.i.h.bf16 %v3909_v18  ;;  %v3910_v47 = vunpack.i.l.bf16 %v3909_v18  ;;  %v3106_v18 = vld [vmem:[#allocation2 + $0xb0] sm:$0xf0] }
  0xbd   :  { %v3914_v51 = vpop.permute.xlu1 %3913 }
  0xbe   :  { %v317_v33 = vsel %vm6144_vm9, %v3901_v44, %v3911_v46  ;;  %v321_v32 = vsel %vm6144_vm9, %v3911_v46, %v3901_v44  ;;  %v316_v50 = vsel %vm6144_vm9, %v3900_v45, %v3910_v47  ;;  %v320_v35 = vsel %vm6144_vm9, %v3910_v47, %v3900_v45  ;;  %v5037_v44 = vpop.permute.xlu2 %3978 }
  0xbf   :  { %v325_v52 = vpack.c.bf16 %v321_v32, %v317_v33  ;;  %v324_v59 = vpack.c.bf16 %v320_v35, %v316_v50  ;;  %v3916_v21 = vunpack.i.h.bf16 %v3914_v51  ;;  %v3915_v27 = vunpack.i.l.bf16 %v3914_v51  ;;  %v3662_v51 = vld [vmem:[#allocation2 + $0x8c] sm:$0xf0] }
  0xc0   :  { %v3674_v57 = vld [vmem:[#allocation2 + $0xec] sm:$0xf0]  ;;  %v3138_v58 = vld [vmem:[#allocation2 + $0xf0] sm:$0xf0]  ;;  %v3951_v50 = vunpack.i.h.bf16 %v4988_v43  ;;  %v3950_v35 = vunpack.i.l.bf16 %v4988_v43 }
  0xc1   :  { %329 = vst [vmem:[#allocation2 + $0x150] sm:$0xff] %v325_v52  ;;  %v318_v0 = vsel %vm6144_vm9, %v3905_v49, %v3915_v27  ;;  %v319_v5 = vsel %vm6144_vm9, %v3906_v48, %v3916_v21  ;;  %v322_v6 = vsel %vm6144_vm9, %v3915_v27, %v3905_v49  ;;  %v323_v7 = vsel %vm6144_vm9, %v3916_v21, %v3906_v48  ;;  %v3136_v2 = vld [vmem:[#allocation2 + $0xe0] sm:$0xf]  ;;  %v3672_v8 = vld [vmem:[#allocation2 + $0xe4] sm:$0xf] }
  0xc2   :  { %328 = vst [vmem:[#allocation2 + $0x140] sm:$0xff] %v324_v59  ;;  %v326_v9 = vpack.c.bf16 %v322_v6, %v318_v0  ;;  %v327_v10 = vpack.c.bf16 %v323_v7, %v319_v5  ;;  %4133 = vrot.lane.b32.xlu0 %v4888_v56, %s4588_s11  ;;  %v3137_v11 = vor.u32 %v3674_v57, %v3136_v2  ;;  %v3088_v49 = vld [vmem:[#allocation2 + $0x80] sm:$0xf] }
  0xc3   :  { %v3924_v15 = vpop.permute.xlu0 %3923  ;;  %v3141_v12 = vor.u32 %v3672_v8, %v3138_v58  ;;  %v3121_v56 = vor.u32 %v3670_v62, %v3120_v13  ;;  %v3109_v27 = vor.u32 %v3664_v17, %v3106_v18  ;;  %v3660_v58 = vld [vmem:[#allocation2 + $0x84] sm:$0xf]  ;;  %v3090_v62 = vld [vmem:[#allocation2 + $0x90] sm:$0xf0]  ;;  %v3089_v63 = vor.u32 %v3662_v51, %v3088_v49  ;;  %v3040_v17 = vld [vmem:[#allocation2 + $0x20] sm:$0xf] }
  0xc4   :  { %330 = vst [vmem:[#allocation2 + $0x160] sm:$0xff] %v326_v9  ;;  %v3926_v53 = vunpack.i.h.bf16 %v3924_v15  ;;  %v3925_v22 = vunpack.i.l.bf16 %v3924_v15  ;;  %1260 = vmatpush.bf16.msra.mxu0 %v3137_v11  ;;  %v3093_v9 = vor.u32 %v3660_v58, %v3090_v62  ;;  %v3074_v15 = vld [vmem:[#allocation2 + $0x70] sm:$0xf0]  ;;  %v3650_v18 = vld [vmem:[#allocation2 + $0x2c] sm:$0xf0]  ;;  %v3966_v58 = vunpack.i.h.bf16 %v5007_v60 }
  0xc5   :  { %331 = vst [vmem:[#allocation2 + $0x170] sm:$0xff] %v327_v10  ;;  %1317 = vmatpush.bf16.msra.mxu3 %v3141_v12  ;;  %v3929_v31 = vpop.permute.xlu1 %3928  ;;  %v3072_v10 = vld [vmem:[#allocation2 + $0x60] sm:$0xf]  ;;  %v3026_v51 = vld [vmem:[#allocation2 + $0x10] sm:$0xf0] }
  0xc6   :  { %v352_v26 = vsel %vm348_vm10, %v3926_v53, %v3936_v54  ;;  %v356_v28 = vsel %vm348_vm10, %v3936_v54, %v3926_v53  ;;  %v351_v29 = vsel %vm348_vm10, %v3925_v22, %v3935_v55  ;;  %v355_v30 = vsel %vm348_vm10, %v3935_v55, %v3925_v22  ;;  %v3658_v55 = vld [vmem:[#allocation2 + $0x6c] sm:$0xf0]  ;;  %v3056_v53 = vld [vmem:[#allocation2 + $0x40] sm:$0xf] }
  0xc7   :  { %v364_v61 = vsel %vm102_vm11, %v356_v28, 0.0  ;;  %v362_v36 = vsel %vm102_vm11, %v355_v30, 0.0  ;;  %v3931_v37 = vunpack.i.h.bf16 %v3929_v31  ;;  %v3930_v38 = vunpack.i.l.bf16 %v3929_v31  ;;  %v3654_v22 = vld [vmem:[#allocation2 + $0x4c] sm:$0xf0]  ;;  %v3652_v28 = vld [vmem:[#allocation2 + $0x44] sm:$0xf] }
  0xc8   :  { %v368_v39 = vpack.c.bf16 %v364_v61, %v352_v26  ;;  %v367_v40 = vpack.c.bf16 %v362_v36, %v351_v29  ;;  %1261 = vmatpush.bf16.msra.mxu0 %v3121_v56  ;;  %v3073_v12 = vor.u32 %v3658_v55, %v3072_v10  ;;  %v3077_v56 = vor.u32 %v3656_v14, %v3074_v15  ;;  %v3058_v29 = vld [vmem:[#allocation2 + $0x50] sm:$0xf0]  ;;  %v3024_v49 = vld [vmem:[#allocation2] sm:$0xf]  ;;  %v3639_v15 = vld [vmem:[#allocation7 + $0x8] sm:$0xf0] }
  0xc9   :  { %v349_v45 = vsel %vm348_vm10, %v3920_v16, %v3930_v38  ;;  %v350_v46 = vsel %vm348_vm10, %v3921_v20, %v3931_v37  ;;  %v353_v47 = vsel %vm348_vm10, %v3930_v38, %v3920_v16  ;;  %v354_v48 = vsel %vm348_vm10, %v3931_v37, %v3921_v20  ;;  %1318 = vmatpush.bf16.msra.mxu3 %v3125_v23  ;;  %v5066_v20 = vpop.permute.xlu2 %3993  ;;  %v3000_v14 = vld [vmem:[#allocation7] sm:$0xf] }
  0xca   :  { %372 = vst [vmem:[#allocation2 + $0x1b0] sm:$0xff] %v368_v39  ;;  %v358_v33 = vsel %vm102_vm11, %v353_v47, 0.0  ;;  %v360_v32 = vsel %vm102_vm11, %v354_v48, 0.0  ;;  %v3057_v30 = vor.u32 %v3654_v22, %v3056_v53  ;;  %v3648_v47 = vld [vmem:[#allocation2 + $0x24] sm:$0xf] }
  0xcb   :  { %371 = vst [vmem:[#allocation2 + $0x1a0] sm:$0xff] %v367_v40  ;;  %v365_v52 = vpack.c.bf16 %v358_v33, %v349_v45  ;;  %v366_v59 = vpack.c.bf16 %v360_v32, %v350_v46  ;;  %v3939_v21 = vpop.permute.xlu0 %3938  ;;  %v3042_v48 = vld [vmem:[#allocation2 + $0x30] sm:$0xf0]  ;;  %v3644_v33 = vld [vmem:[#allocation2 + $0x4] sm:$0xf]  ;;  %v3965_v32 = vunpack.i.l.bf16 %v5007_v60 }
  0xcc   :  { %v3941_v54 = vunpack.i.h.bf16 %v3939_v21  ;;  %v3940_v57 = vunpack.i.l.bf16 %v3939_v21  ;;  %1262 = vmatpush.bf16.msra.mxu0 %v3105_v42  ;;  %v3061_v42 = vor.u32 %v3652_v28, %v3058_v29  ;;  %v3995_v28 = vunpack.i.l.bf16 %v5066_v20 }
  0xcd   :  { %369 = vst [vmem:[#allocation2 + $0x180] sm:$0xff] %v365_v52  ;;  %1319 = vmatpush.bf16.msra.mxu3 %v3109_v27  ;;  %v3944_v7 = vpop.permute.xlu1 %3943 }
  0xce   :  { %370 = vst [vmem:[#allocation2 + $0x190] sm:$0xff] %v366_v59  ;;  %v391_v43 = vsel %vm389_vm12, %v3941_v54, %v3951_v50  ;;  %v395_v0 = vsel %vm389_vm12, %v3951_v50, %v3941_v54  ;;  %v390_v5 = vsel %vm389_vm12, %v3940_v57, %v3950_v35  ;;  %v394_v6 = vsel %vm389_vm12, %v3950_v35, %v3940_v57  ;;  %v3646_v35 = vld [vmem:[#allocation2 + $0xc] sm:$0xf0] }
  0xcf   :  { %v401_v2 = vsel %vm102_vm11, %v395_v0, 0.0  ;;  %v399_v8 = vsel %vm102_vm11, %v394_v6, 0.0  ;;  %v3946_v23 = vunpack.i.h.bf16 %v3944_v7  ;;  %v3945_v24 = vunpack.i.l.bf16 %v3944_v7 }
  0xd0   :  { %v407_v11 = vpack.c.bf16 %v401_v2, %v391_v43  ;;  %v406_v13 = vpack.c.bf16 %v399_v8, %v390_v5  ;;  %1263 = vmatpush.bf16.msra.mxu0 %v3089_v63  ;;  %v3041_v50 = vor.u32 %v3650_v18, %v3040_v17  ;;  %v3045_v59 = vor.u32 %v3648_v47, %v3042_v48 }
  0xd1   :  { %1320 = vmatpush.bf16.msra.mxu3 %v3093_v9  ;;  %v5082_v57 = vpop.permute.xlu2 %4008  ;;  %v3025_v63 = vor.u32 %v3646_v35, %v3024_v49  ;;  %v3029_v43 = vor.u32 %v3644_v33, %v3026_v51 }
  0xd2   :  { %411 = vst [vmem:[#allocation2 + $0x1d0] sm:$0xff] %v407_v11  ;;  %v3232_v51 = vld [vmem:[#allocation2 + $0x1a0] sm:$0xf] }
  0xd3   :  { %410 = vst [vmem:[#allocation2 + $0x1c0] sm:$0xff] %v406_v13  ;;  %v3954_v16 = vpop.permute.xlu0 %3953  ;;  %v3996_v13 = vunpack.i.h.bf16 %v5066_v20 }
  0xd4   :  { %v3956_v25 = vunpack.i.h.bf16 %v3954_v16  ;;  %v3955_v26 = vunpack.i.l.bf16 %v3954_v16  ;;  %1264 = vmatpush.bf16.msra.mxu0 %v3073_v12 }
  0xd5   :  { %1321 = vmatpush.bf16.msra.mxu3 %v3077_v56  ;;  %v3959_v38 = vpop.permute.xlu1 %3958 }
  0xd6   :  { %v393_v31 = vsel %vm389_vm12, %v3946_v23, %v3956_v25  ;;  %v397_v61 = vsel %vm389_vm12, %v3956_v25, %v3946_v23  ;;  %v392_v36 = vsel %vm389_vm12, %v3945_v24, %v3955_v26  ;;  %v396_v37 = vsel %vm389_vm12, %v3955_v26, %v3945_v24 }
  0xd7   :  { %v405_v39 = vsel %vm102_vm11, %v397_v61, 0.0  ;;  %v403_v40 = vsel %vm102_vm11, %v396_v37, 0.0  ;;  %v3960_v21 = vunpack.i.l.bf16 %v3959_v38  ;;  %v3961_v62 = vunpack.i.h.bf16 %v3959_v38 }
  0xd8   :  { %v409_v45 = vpack.c.bf16 %v405_v39, %v393_v31  ;;  %v408_v46 = vpack.c.bf16 %v403_v40, %v392_v36  ;;  %1265 = vmatpush.bf16.msra.mxu0 %v3057_v30  ;;  %v5111_v30 = vor.u32 %v3639_v15, %v3000_v14  ;;  %v3981_v40 = vunpack.i.h.bf16 %v5037_v44 }
  0xd9   :  { %1322 = vmatpush.bf16.msra.mxu3 %v3061_v42  ;;  %v3702_v24 = vld [vmem:[#allocation2 + $0x1cc] sm:$0xf0]  ;;  %v3980_v42 = vunpack.i.l.bf16 %v5037_v44  ;;  %v5125_v48 = vpop.permute.xlu2 %4023 }
  0xda   :  { %413 = vst [vmem:[#allocation2 + $0x1f0] sm:$0xff] %v409_v45  ;;  %v3248_v23 = vld [vmem:[#allocation2 + $0x1c0] sm:$0xf] }
  0xdb   :  { %412 = vst [vmem:[#allocation2 + $0x1e0] sm:$0xff] %v408_v46  ;;  %v3969_v52 = vpop.permute.xlu0 %3968  ;;  %v3249_v20 = vor.u32 %v3702_v24, %v3248_v23 }
  0xdc   :  { %v3971_v27 = vunpack.i.h.bf16 %v3969_v52  ;;  %v3970_v54 = vunpack.i.l.bf16 %v3969_v52  ;;  %1266 = vmatpush.bf16.msra.mxu0 %v3041_v50  ;;  %v3698_v52 = vld [vmem:[#allocation2 + $0x1ac] sm:$0xf0] }
  0xdd   :  { %1323 = vmatpush.bf16.msra.mxu3 %v3045_v59  ;;  %v3974_v2 = vpop.permute.xlu1 %3973 }
  0xde   :  { %v433_v0 = vsel %vm6145_vm13, %v3965_v32, %v3971_v27  ;;  %v437_v5 = vsel %vm6145_vm13, %v3971_v27, %v3965_v32  ;;  %v431_v6 = vsel %vm6145_vm13, %v3960_v21, %v3970_v54  ;;  %v435_v7 = vsel %vm6145_vm13, %v3970_v54, %v3960_v21 }
  0xdf   :  { %v444_v60 = vsel %vm102_vm11, %v437_v5, 0.0  ;;  %v440_v8 = vsel %vm102_vm11, %v435_v7, 0.0  ;;  %v3976_v9 = vunpack.i.h.bf16 %v3974_v2  ;;  %v3975_v10 = vunpack.i.l.bf16 %v3974_v2 }
  0xe0   :  { %v449_v55 = vpack.c.bf16 %v444_v60, %v433_v0  ;;  %v447_v11 = vpack.c.bf16 %v440_v8, %v431_v6  ;;  %1267 = vmatpush.bf16.msra.mxu0 %v3025_v63  ;;  %v3216_v63 = vld [vmem:[#allocation2 + $0x180] sm:$0xf]  ;;  %v3233_v6 = vor.u32 %v3698_v52, %v3232_v51  ;;  %v3690_v8 = vld [vmem:[#allocation2 + $0x16c] sm:$0xf0] }
  0xe1   :  { %v432_v12 = vsel %vm6145_vm13, %v3961_v62, %v3976_v9  ;;  %v434_v53 = vsel %vm6145_vm13, %v3966_v58, %v3975_v10  ;;  %v436_v22 = vsel %vm6145_vm13, %v3976_v9, %v3961_v62  ;;  %v438_v16 = vsel %vm6145_vm13, %v3975_v10, %v3966_v58  ;;  %1324 = vmatpush.bf16.msra.mxu3 %v3029_v43  ;;  %v3706_v56 = vld [vmem:[#allocation2 + $0x1ec] sm:$0xf0]  ;;  %v3200_v60 = vld [vmem:[#allocation2 + $0x160] sm:$0xf]  ;;  %v3008_v10 = vld [vmem:[#allocation7 + $0x8] sm:$0xf] }
  0xe2   :  { %453 = vst [vmem:[#allocation2 + $0x220] sm:$0xff] %v449_v55  ;;  %v442_v25 = vsel %vm102_vm11, %v436_v22, 0.0  ;;  %v446_v26 = vsel %vm102_vm11, %v438_v16, 0.0  ;;  %v3264_v29 = vld [vmem:[#allocation2 + $0x1e0] sm:$0xf] }
  0xe3   :  { %451 = vst [vmem:[#allocation2 + $0x200] sm:$0xff] %v447_v11  ;;  %v448_v31 = vpack.c.bf16 %v442_v25, %v432_v12  ;;  %v450_v61 = vpack.c.bf16 %v446_v26, %v434_v53  ;;  %v3984_v36 = vpop.permute.xlu0 %3983  ;;  %v3265_v37 = vor.u32 %v3706_v56, %v3264_v29  ;;  %1268 = vmatmul.bf16.vlgmr.msra.gmra.mxu0 %v5111_v30  ;;  %v3694_v9 = vld [vmem:[#allocation2 + $0x18c] sm:$0xf0]  ;;  %v3640_v55 = vld [vmem:[#allocation7 + $0x10] sm:$0xf0] }
  0xe4   :  { %v3986_v38 = vunpack.i.h.bf16 %v3984_v36  ;;  %v3985_v39 = vunpack.i.l.bf16 %v3984_v36  ;;  %1325 = vmatmul.bf16.vlgmr.msra.gmra.mxu3 %v5111_v30  ;;  %v3266_v56 = vld [vmem:[#allocation2 + $0x1f0] sm:$0xf0]  ;;  %v3217_v25 = vor.u32 %v3694_v9, %v3216_v63  ;;  %v3704_v36 = vld [vmem:[#allocation2 + $0x1e4] sm:$0xf]  ;;  %v3686_v63 = vld [vmem:[#allocation2 + $0x14c] sm:$0xf0] }
  0xe5   :  { %452 = vst [vmem:[#allocation2 + $0x210] sm:$0xff] %v448_v31  ;;  %1279 = vmatpush.bf16.msra.mxu1 %v3265_v37  ;;  %v3989_v47 = vpop.permute.xlu1 %3988  ;;  %v4011_v31 = vunpack.i.h.bf16 %v5082_v57  ;;  %v3201_v37 = vor.u32 %v3690_v8, %v3200_v60  ;;  %v3168_v9 = vld [vmem:[#allocation2 + $0x120] sm:$0xf] }
  0xe6   :  { %454 = vst [vmem:[#allocation2 + $0x230] sm:$0xff] %v450_v61  ;;  %v490_v17 = vsel %vm151_vm4, %v3986_v38, %v3996_v13  ;;  %v494_v18 = vsel %vm151_vm4, %v3996_v13, %v3986_v38  ;;  %v489_v45 = vsel %vm151_vm4, %v3985_v39, %v3995_v28  ;;  %v493_v46 = vsel %vm151_vm4, %v3995_v28, %v3985_v39  ;;  %v5147_v39 = vpop.permute.xlu2 %4038 }
  0xe7   :  { %v501_v44 = vsel %vm99_vm5, %v494_v18, 0.0  ;;  %v499_v49 = vsel %vm99_vm5, %v493_v46, 0.0  ;;  %v3991_v33 = vunpack.i.h.bf16 %v3989_v47  ;;  %v3990_v32 = vunpack.i.l.bf16 %v3989_v47 }
  0xe8   :  { %v506_v50 = vpack.c.bf16 %v490_v17, %v501_v44  ;;  %v505_v35 = vpack.c.bf16 %v489_v45, %v499_v49  ;;  %v4010_v61 = vunpack.i.l.bf16 %v5082_v57  ;;  %v5145_v38 = vor.u32 %v3640_v55, %v3008_v10  ;;  %v3700_v49 = vld [vmem:[#allocation2 + $0x1c4] sm:$0xf]  ;;  %v3682_v10 = vld [vmem:[#allocation2 + $0x12c] sm:$0xf0] }
  0xe9   :  { %v487_v59 = vsel %vm151_vm4, %v3980_v42, %v3990_v32  ;;  %v488_v21 = vsel %vm151_vm4, %v3981_v40, %v3991_v33  ;;  %v491_v27 = vsel %vm151_vm4, %v3990_v32, %v3980_v42  ;;  %v492_v54 = vsel %vm151_vm4, %v3991_v33, %v3981_v40  ;;  %1280 = vmatpush.bf16.msra.mxu1 %v3249_v20  ;;  %v3296_v7 = vld [vmem:[#allocation2 + $0x220] sm:$0xf]  ;;  %v3712_v2 = vld [vmem:[#allocation2 + $0x224] sm:$0xf]  ;;  %v3012_v40 = vld [vmem:[#allocation7 + $0x18] sm:$0xf] }
  0xea   :  { %510 = vst [vmem:[#allocation2 + $0x38] sm:$0xff] %v506_v50  ;;  %v495_v58 = vsel %vm99_vm5, %v491_v27, 0.0  ;;  %v497_v62 = vsel %vm99_vm5, %v492_v54, 0.0  ;;  %v3280_v16 = vld [vmem:[#allocation2 + $0x200] sm:$0xf]  ;;  %v4026_v27 = vunpack.i.h.bf16 %v5125_v48  ;;  %v4025_v54 = vunpack.i.l.bf16 %v5125_v48 }
  0xeb   :  { %509 = vst [vmem:[#allocation2 + $0x28] sm:$0xff] %v505_v35  ;;  %v503_v43 = vpack.c.bf16 %v487_v59, %v495_v58  ;;  %v504_v0 = vpack.c.bf16 %v488_v21, %v497_v62  ;;  %v3999_v5 = vpop.permute.xlu0 %3998  ;;  %v3708_v28 = vld [vmem:[#allocation2 + $0x204] sm:$0xf]  ;;  %v3250_v33 = vld [vmem:[#allocation2 + $0x1d0] sm:$0xf0]  ;;  %v3269_v35 = vor.u32 %v3704_v36, %v3266_v56 }
  0xec   :  { %v4001_v11 = vunpack.i.h.bf16 %v3999_v5  ;;  %v4000_v13 = vunpack.i.l.bf16 %v3999_v5  ;;  %v3710_v26 = vld [vmem:[#allocation2 + $0x20c] sm:$0xf0]  ;;  %v3282_v29 = vld [vmem:[#allocation2 + $0x210] sm:$0xf0]  ;;  %v3642_v42 = vld [vmem:[#allocation7 + $0x20] sm:$0xf0]  ;;  %v3253_v58 = vor.u32 %v3700_v49, %v3250_v33 }
  0xed   :  { %507 = vst [vmem:[#allocation2 + $0x8] sm:$0xff] %v503_v43  ;;  %1281 = vmatpush.bf16.msra.mxu1 %v3233_v6  ;;  %v3714_v14 = vld [vmem:[#allocation2 + $0x22c] sm:$0xf0]  ;;  %v3298_v15 = vld [vmem:[#allocation2 + $0x230] sm:$0xf0]  ;;  %v4004_v12 = vpop.permute.xlu1 %4003  ;;  %v3281_v47 = vor.u32 %v3710_v26, %v3280_v16  ;;  %v3285_v44 = vor.u32 %v3708_v28, %v3282_v29  ;;  %v5161_v52 = vor.u32 %v3642_v42, %v3012_v40 }
  0xee   :  { %508 = vst [vmem:[#allocation2 + $0x18] sm:$0xff] %v504_v0  ;;  %v3297_v53 = vor.u32 %v3714_v14, %v3296_v7  ;;  %v3301_v22 = vor.u32 %v3712_v2, %v3298_v15  ;;  %v4006_v23 = vunpack.i.h.bf16 %v4004_v12  ;;  %v4005_v24 = vunpack.i.l.bf16 %v4004_v12  ;;  %v3184_v62 = vld [vmem:[#allocation2 + $0x140] sm:$0xf]  ;;  %v3696_v14 = vld [vmem:[#allocation2 + $0x1a4] sm:$0xf]  ;;  %v5189_v28 = vpop.permute.xlu2 %4053 }
  0xef   :  { %v3234_v15 = vld [vmem:[#allocation2 + $0x1b0] sm:$0xf0]  ;;  %v3678_v36 = vld [vmem:[#allocation2 + $0x10c] sm:$0xf0]  ;;  %v3638_v40 = vld [vmem:[#allocation7 + $0x4] sm:$0xf] }
  0xf0   :  { %1304 = vmatpush.bf16.msra.mxu2 %v3297_v53  ;;  %1361 = vmatpush.bf16.msrb.mxu0 %v3301_v22  ;;  %v721_v20 = vsel %vm389_vm12, %v4000_v13, %v4005_v24  ;;  %v722_v17 = vsel %vm389_vm12, %v4001_v11, %v4006_v23  ;;  %v725_v18 = vsel %vm389_vm12, %v4005_v24, %v4000_v13  ;;  %v3218_v26 = vld [vmem:[#allocation2 + $0x190] sm:$0xf0]  ;;  %v3688_v33 = vld [vmem:[#allocation2 + $0x164] sm:$0xf] }
  0xf1   :  { %v726_v57 = vsel %vm389_vm12, %v4006_v23, %v4001_v11  ;;  %1282 = vmatpush.bf16.msra.mxu1 %v3217_v25  ;;  %v732_v45 = vsel %vm102_vm11, %v725_v18, 0.0  ;;  %v3185_v13 = vor.u32 %v3686_v63, %v3184_v62  ;;  %v3169_v24 = vor.u32 %v3682_v10, %v3168_v9  ;;  %v3692_v25 = vld [vmem:[#allocation2 + $0x184] sm:$0xf]  ;;  %v3002_v18 = vld [vmem:[#allocation7 + $0xc] sm:$0xf0] }
  0xf2   :  { %v734_v46 = vsel %vm102_vm11, %v726_v57, 0.0  ;;  %v737_v32 = vpack.c.bf16 %v732_v45, %v721_v20  ;;  %v3237_v29 = vor.u32 %v3696_v14, %v3234_v15  ;;  %v3221_v49 = vor.u32 %v3692_v25, %v3218_v26 }
  0xf3   :  { %v738_v50 = vpack.c.bf16 %v734_v46, %v722_v17  ;;  %v4014_v51 = vpop.permute.xlu0 %4013  ;;  %1273 = vmatmul.bf16.gmra.mxu0 %v5161_v52 }
  0xf4   :  { %1305 = vmatpush.bf16.msra.mxu2 %v3281_v47  ;;  %1362 = vmatpush.bf16.msrb.mxu0 %v3285_v44  ;;  %v4016_v59 = vunpack.i.h.bf16 %v4014_v51  ;;  %v4015_v21 = vunpack.i.l.bf16 %v4014_v51  ;;  %741 = vst [vmem:[#allocation2 + $0x1e8] sm:$0xff] %v737_v32  ;;  %v3202_v32 = vld [vmem:[#allocation2 + $0x170] sm:$0xf0]  ;;  %v3643_v51 = vld [vmem:[#allocation7 + $0x28] sm:$0xf0] }
  0xf5   :  { %1283 = vmatpush.bf16.msra.mxu1 %v3201_v37  ;;  %742 = vst [vmem:[#allocation2 + $0x1f8] sm:$0xff] %v738_v50  ;;  %v4019_v7 = vpop.permute.xlu1 %4018  ;;  %1330 = vmatmul.bf16.gmra.mxu3 %v5161_v52  ;;  %v5191_v50 = vor.u32 %v3638_v40, %v3002_v18  ;;  %v3170_v40 = vld [vmem:[#allocation2 + $0x130] sm:$0xf0] }
  0xf6   :  { %v720_v43 = vsel %vm389_vm12, %v4011_v31, %v4016_v59  ;;  %v724_v0 = vsel %vm389_vm12, %v4016_v59, %v4011_v31  ;;  %v719_v5 = vsel %vm389_vm12, %v4010_v61, %v4015_v21  ;;  %v723_v6 = vsel %vm389_vm12, %v4015_v21, %v4010_v61  ;;  %v3152_v61 = vld [vmem:[#allocation2 + $0x100] sm:$0xf]  ;;  %v5209_v15 = vpop.permute.xlu2 %4068 }
  0xf7   :  { %v730_v48 = vsel %vm102_vm11, %v724_v0, 0.0  ;;  %v728_v2 = vsel %vm102_vm11, %v723_v6, 0.0  ;;  %v4021_v60 = vunpack.i.h.bf16 %v4019_v7  ;;  %v4020_v8 = vunpack.i.l.bf16 %v4019_v7  ;;  %3310 = vmatmul.msk.bf16.vlgmr.msra.gmra.mxu2 %vm6143_vm14, %v5145_v38 }
  0xf8   :  { %1336 = vmatpush.bf16.msrb.mxu2 %v3269_v35  ;;  %v736_v55 = vpack.c.bf16 %v730_v48, %v720_v43  ;;  %v735_v11 = vpack.c.bf16 %v728_v2, %v719_v5  ;;  %v3153_v46 = vor.u32 %v3678_v36, %v3152_v61  ;;  %v3020_v35 = vld [vmem:[#allocation7 + $0x20] sm:$0xf]  ;;  %v4041_v43 = vunpack.i.h.bf16 %v5147_v39 }
  0xf9   :  { %v610_v12 = vsel %vm274_vm8, %v4021_v60, %v4026_v27  ;;  %v614_v53 = vsel %vm274_vm8, %v4026_v27, %v4021_v60  ;;  %v609_v22 = vsel %vm274_vm8, %v4020_v8, %v4025_v54  ;;  %v613_v16 = vsel %vm274_vm8, %v4025_v54, %v4020_v8  ;;  %1284 = vmatpush.bf16.msra.mxu1 %v3185_v13 }
  0xfa   :  { %740 = vst [vmem:[#allocation2 + $0x1d8] sm:$0xff] %v736_v55  ;;  %v618_v56 = vpack.c.bf16 %v610_v12, %v614_v53  ;;  %v617_v23 = vpack.c.bf16 %v609_v22, %v613_v16  ;;  %v4040_v0 = vunpack.i.l.bf16 %v5147_v39  ;;  %v3205_v48 = vor.u32 %v3688_v33, %v3202_v32  ;;  %v3684_v16 = vld [vmem:[#allocation2 + $0x144] sm:$0xf] }
  0xfb   :  { %739 = vst [vmem:[#allocation2 + $0x1c8] sm:$0xff] %v735_v11  ;;  %v4029_v31 = vpop.permute.xlu0 %4028  ;;  %v3272_v37 = vld [vmem:[#allocation2 + $0x1e8] sm:$0xf]  ;;  %v5207_v60 = vor.u32 %v3643_v51, %v3020_v35  ;;  %v4056_v39 = vunpack.i.h.bf16 %v5189_v28  ;;  %v4055_v12 = vunpack.i.l.bf16 %v5189_v28  ;;  %v3676_v32 = vld [vmem:[#allocation2 + $0x104] sm:$0xf] }
  0xfc   :  { %1337 = vmatpush.bf16.msrb.mxu2 %v3253_v58  ;;  %622 = vst [vmem:[#allocation2 + $0xf8] sm:$0xff] %v618_v56  ;;  %v4031_v42 = vunpack.i.h.bf16 %v4029_v31  ;;  %v4030_v20 = vunpack.i.l.bf16 %v4029_v31  ;;  %v3707_v17 = vld [vmem:[#allocation2 + $0x1f4] sm:$0xf0]  ;;  %v3186_v56 = vld [vmem:[#allocation2 + $0x150] sm:$0xf0] }
  0xfd   :  { %621 = vst [vmem:[#allocation2 + $0xe8] sm:$0xff] %v617_v23  ;;  %v4034_v57 = vpop.permute.xlu1 %4033  ;;  %1285 = vmatpush.bf16.msra.mxu1 %v3169_v24  ;;  %v3273_v45 = vor.u32 %v3707_v17, %v3272_v37  ;;  %v3680_v37 = vld [vmem:[#allocation2 + $0x124] sm:$0xf]  ;;  %v3154_v35 = vld [vmem:[#allocation2 + $0x110] sm:$0xf0] }
  0xfe   :  { %v4036_v47 = vunpack.i.h.bf16 %v4034_v57  ;;  %v4035_v44 = vunpack.i.l.bf16 %v4034_v57 }
  0xff   :  { %1393 = vmatpush.bf16.msrb.mxu3 %v3273_v45 }
 0x100   :  { %1338 = vmatpush.bf16.msrb.mxu2 %v3237_v29  ;;  %v681_v59 = vsel %vm348_vm10, %v4030_v20, %v4035_v44  ;;  %v682_v21 = vsel %vm348_vm10, %v4031_v42, %v4036_v47  ;;  %v685_v27 = vsel %vm348_vm10, %v4035_v44, %v4030_v20  ;;  %v686_v54 = vsel %vm348_vm10, %v4036_v47, %v4031_v42 }
 0x101   :  { %v3703_v58 = vld [vmem:[#allocation2 + $0x1d4] sm:$0xf0]  ;;  %v692_v62 = vsel %vm102_vm11, %v685_v27, 0.0  ;;  %v694_v63 = vsel %vm102_vm11, %v686_v54, 0.0  ;;  %1286 = vmatpush.bf16.msra.mxu1 %v3153_v46  ;;  %v3189_v42 = vor.u32 %v3684_v16, %v3186_v56  ;;  %v3173_v47 = vor.u32 %v3680_v37, %v3170_v40 }
 0x102   :  { %v3256_v5 = vld [vmem:[#allocation2 + $0x1c8] sm:$0xf]  ;;  %v697_v6 = vpack.c.bf16 %v692_v62, %v681_v59  ;;  %v698_v7 = vpack.c.bf16 %v694_v63, %v682_v21  ;;  %v3641_v59 = vld [vmem:[#allocation7 + $0x1c] sm:$0xf] }
 0x103   :  { %v4044_v2 = vpop.permute.xlu0 %4043  ;;  %v3675_v8 = vld [vmem:[#allocation2 + $0xf4] sm:$0xf0]  ;;  %v3146_v9 = vld [vmem:[#allocation2 + $0xf8] sm:$0xf0]  ;;  %v3257_v13 = vor.u32 %v3703_v58, %v3256_v5  ;;  %3312 = vmatmul.msk.bf16.vlgmr.msrb.gmra.mxu0 %vm6143_vm14, %v5145_v38  ;;  %v3014_v58 = vld [vmem:[#allocation7 + $0x24] sm:$0xf0] }
 0x104   :  { %1339 = vmatpush.bf16.msrb.mxu2 %v3221_v49  ;;  %v4046_v10 = vunpack.i.h.bf16 %v4044_v2  ;;  %v4045_v55 = vunpack.i.l.bf16 %v4044_v2  ;;  %v3144_v11 = vld [vmem:[#allocation2 + $0xe8] sm:$0xf]  ;;  %v3673_v14 = vld [vmem:[#allocation2 + $0xec] sm:$0xf]  ;;  %701 = vst [vmem:[#allocation2 + $0x1a8] sm:$0xff] %v697_v6  ;;  %1287 = vmatmul.bf16.vlgmr.msra.gmra.mxu1 %v5191_v50  ;;  %v5240_v2 = vor.u32 %v3641_v59, %v3014_v58 }
 0x105   :  { %v3145_v53 = vor.u32 %v3675_v8, %v3144_v11  ;;  %v3149_v22 = vor.u32 %v3673_v14, %v3146_v9  ;;  %702 = vst [vmem:[#allocation2 + $0x1b8] sm:$0xff] %v698_v7  ;;  %v4049_v29 = vpop.permute.xlu1 %4048  ;;  %1394 = vmatpush.bf16.msrb.mxu3 %v3257_v13  ;;  %v4071_v7 = vunpack.i.h.bf16 %v5209_v15 }
 0x106   :  { %v608_v23 = vsel %vm274_vm8, %v4041_v43, %v4046_v10  ;;  %v612_v24 = vsel %vm274_vm8, %v4046_v10, %v4041_v43  ;;  %v607_v25 = vsel %vm274_vm8, %v4040_v0, %v4045_v55  ;;  %v611_v26 = vsel %vm274_vm8, %v4045_v55, %v4040_v0  ;;  %v4084_v0 = vpop.permute.xlu2 %4083 }
 0x107   :  { %v616_v31 = vpack.c.bf16 %v608_v23, %v612_v24  ;;  %v615_v28 = vpack.c.bf16 %v607_v25, %v611_v26  ;;  %v4051_v61 = vunpack.i.h.bf16 %v4049_v29  ;;  %v4050_v36 = vunpack.i.l.bf16 %v4049_v29  ;;  %3311 = vmatmul.msk.bf16.gmra.mxu2 %vm6143_vm14, %v5207_v60  ;;  %1374 = vmatpush.bf16.msrb.mxu1 %v3145_v53 }
 0x108   :  { %1340 = vmatpush.bf16.msrb.mxu2 %v3205_v48  ;;  %1431 = vmatpush.bf16.msra.mxu0 %v3149_v22  ;;  %v3157_v43 = vor.u32 %v3676_v32, %v3154_v35  ;;  %v4070_v48 = vunpack.i.l.bf16 %v5209_v15 }
 0x109   :  { %620 = vst [vmem:[#allocation2 + $0xd8] sm:$0xff] %v616_v31  ;;  %v570_v20 = vsel %vm233_vm7, %v4051_v61, %v4056_v39  ;;  %v574_v17 = vsel %vm233_vm7, %v4056_v39, %v4051_v61  ;;  %v569_v18 = vsel %vm233_vm7, %v4050_v36, %v4055_v12  ;;  %v573_v57 = vsel %vm233_vm7, %v4055_v12, %v4050_v36 }
 0x10a   :  { %619 = vst [vmem:[#allocation2 + $0xc8] sm:$0xff] %v615_v28  ;;  %v581_v45 = vsel %vm99_vm5, %v574_v17, 0.0  ;;  %v579_v46 = vsel %vm99_vm5, %v573_v57, 0.0  ;;  %v4086_v31 = vunpack.i.h.bf16 %v4084_v0  ;;  %v4085_v28 = vunpack.i.l.bf16 %v4084_v0 }
 0x10b   :  { %v586_v44 = vpack.c.bf16 %v570_v20, %v581_v45  ;;  %v585_v49 = vpack.c.bf16 %v569_v18, %v579_v46  ;;  %v4059_v33 = vpop.permute.xlu0 %4058  ;;  %v3240_v51 = vld [vmem:[#allocation2 + $0x1a8] sm:$0xf] }
 0x10c   :  { %1341 = vmatpush.bf16.msrb.mxu2 %v3189_v42  ;;  %v4061_v21 = vunpack.i.h.bf16 %v4059_v33  ;;  %v4060_v27 = vunpack.i.l.bf16 %v4059_v33  ;;  %v3699_v54 = vld [vmem:[#allocation2 + $0x1b4] sm:$0xf0] }
 0x10d   :  { %590 = vst [vmem:[#allocation2 + $0xb8] sm:$0xff] %v586_v44  ;;  %v4064_v62 = vpop.permute.xlu1 %4063  ;;  %v3241_v63 = vor.u32 %v3699_v54, %v3240_v51 }
 0x10e   :  { %589 = vst [vmem:[#allocation2 + $0xa8] sm:$0xff] %v585_v49  ;;  %v4066_v5 = vunpack.i.h.bf16 %v4064_v62  ;;  %v4065_v6 = vunpack.i.l.bf16 %v4064_v62  ;;  %v4099_v32 = vpop.permute.xlu2 %4098 }
 0x10f   :  { %1395 = vmatpush.bf16.msrb.mxu3 %v3241_v63 }
 0x110   :  { %1342 = vmatpush.bf16.msrb.mxu2 %v3173_v47  ;;  %v3671_v8 = vld [vmem:[#allocation2 + $0xd4] sm:$0xf0]  ;;  %v3130_v9 = vld [vmem:[#allocation2 + $0xd8] sm:$0xf0]  ;;  %v679_v10 = vsel %vm348_vm10, %v4060_v27, %v4065_v6  ;;  %v680_v55 = vsel %vm348_vm10, %v4061_v21, %v4066_v5  ;;  %v683_v11 = vsel %vm348_vm10, %v4065_v6, %v4060_v27  ;;  %v684_v13 = vsel %vm348_vm10, %v4066_v5, %v4061_v21 }
 0x111   :  { %v3128_v14 = vld [vmem:[#allocation2 + $0xc8] sm:$0xf]  ;;  %v3669_v39 = vld [vmem:[#allocation2 + $0xcc] sm:$0xf]  ;;  %v688_v15 = vsel %vm102_vm11, %v683_v11, 0.0  ;;  %v690_v12 = vsel %vm102_vm11, %v684_v13, 0.0 }
 0x112   :  { %v3129_v53 = vor.u32 %v3671_v8, %v3128_v14  ;;  %v3133_v22 = vor.u32 %v3669_v39, %v3130_v9  ;;  %v695_v16 = vpack.c.bf16 %v688_v15, %v679_v10  ;;  %v696_v56 = vpack.c.bf16 %v690_v12, %v680_v55 }
 0x113   :  { %v4074_v23 = vpop.permute.xlu0 %4073  ;;  %3313 = vmatmul.msk.bf16.gmra.mxu0 %vm6143_vm14, %v5207_v60  ;;  %v4101_v15 = vunpack.i.h.bf16 %v4099_v32  ;;  %v4100_v12 = vunpack.i.l.bf16 %v4099_v32 }
 0x114   :  { %1343 = vmatpush.bf16.msrb.mxu2 %v3157_v43  ;;  %v4076_v24 = vunpack.i.h.bf16 %v4074_v23  ;;  %v4075_v25 = vunpack.i.l.bf16 %v4074_v23  ;;  %1375 = vmatpush.bf16.msrb.mxu1 %v3129_v53  ;;  %v3667_v26 = vld [vmem:[#allocation2 + $0xb4] sm:$0xf0]  ;;  %v3114_v29 = vld [vmem:[#allocation2 + $0xb8] sm:$0xf0]  ;;  %699 = vst [vmem:[#allocation2 + $0x188] sm:$0xff] %v695_v16 }
 0x115   :  { %1432 = vmatpush.bf16.msra.mxu0 %v3133_v22  ;;  %1292 = vmatmul.bf16.gmra.mxu1 %v5240_v2  ;;  %v3112_v61 = vld [vmem:[#allocation2 + $0xa8] sm:$0xf]  ;;  %v3665_v36 = vld [vmem:[#allocation2 + $0xac] sm:$0xf]  ;;  %700 = vst [vmem:[#allocation2 + $0x198] sm:$0xff] %v696_v56  ;;  %v4079_v17 = vpop.permute.xlu1 %4078 }
 0x116   :  { %v568_v37 = vsel %vm233_vm7, %v4071_v7, %v4076_v24  ;;  %v572_v40 = vsel %vm233_vm7, %v4076_v24, %v4071_v7  ;;  %v567_v42 = vsel %vm233_vm7, %v4070_v48, %v4075_v25  ;;  %v571_v20 = vsel %vm233_vm7, %v4075_v25, %v4070_v48  ;;  %v4114_v53 = vpop.permute.xlu2 %4113 }
 0x117   :  { %v577_v18 = vsel %vm99_vm5, %v572_v40, 0.0  ;;  %v575_v57 = vsel %vm99_vm5, %v571_v20, 0.0  ;;  %v4081_v45 = vunpack.i.h.bf16 %v4079_v17  ;;  %v4080_v46 = vunpack.i.l.bf16 %v4079_v17  ;;  %1344 = vmatmul.bf16.vlgmr.msrb.gmra.mxu2 %v5191_v50 }
 0x118   :  { %v584_v47 = vpack.c.bf16 %v568_v37, %v577_v18  ;;  %v583_v44 = vpack.c.bf16 %v567_v42, %v575_v57  ;;  %v3113_v49 = vor.u32 %v3667_v26, %v3112_v61  ;;  %v3117_v33 = vor.u32 %v3665_v36, %v3114_v29 }
 0x119   :  { %v650_v35 = vsel %vm6144_vm9, %v4081_v45, %v4086_v31  ;;  %v654_v51 = vsel %vm6144_vm9, %v4086_v31, %v4081_v45  ;;  %v649_v59 = vsel %vm6144_vm9, %v4080_v46, %v4085_v28  ;;  %v653_v21 = vsel %vm6144_vm9, %v4085_v28, %v4080_v46 }
 0x11a   :  { %588 = vst [vmem:[#allocation2 + $0x98] sm:$0xff] %v584_v47  ;;  %v658_v27 = vpack.c.bf16 %v654_v51, %v650_v35  ;;  %v657_v54 = vpack.c.bf16 %v653_v21, %v649_v59  ;;  %1376 = vmatpush.bf16.msrb.mxu1 %v3113_v49  ;;  %1433 = vmatpush.bf16.msra.mxu0 %v3117_v33  ;;  %v4116_v36 = vunpack.i.h.bf16 %v4114_v53  ;;  %v4115_v37 = vunpack.i.l.bf16 %v4114_v53 }
 0x11b   :  { %587 = vst [vmem:[#allocation2 + $0x88] sm:$0xff] %v583_v44  ;;  %v4089_v58 = vpop.permute.xlu0 %4088  ;;  %v3224_v62 = vld [vmem:[#allocation2 + $0x188] sm:$0xf] }
 0x11c   :  { %662 = vst [vmem:[#allocation2 + $0x178] sm:$0xff] %v658_v27  ;;  %v4091_v63 = vunpack.i.h.bf16 %v4089_v58  ;;  %v4090_v43 = vunpack.i.l.bf16 %v4089_v58  ;;  %v3695_v0 = vld [vmem:[#allocation2 + $0x194] sm:$0xf0] }
 0x11d   :  { %661 = vst [vmem:[#allocation2 + $0x168] sm:$0xff] %v657_v54  ;;  %v4094_v5 = vpop.permute.xlu1 %4093  ;;  %v3225_v6 = vor.u32 %v3695_v0, %v3224_v62 }
 0x11e   :  { %v4096_v7 = vunpack.i.h.bf16 %v4094_v5  ;;  %v4095_v48 = vunpack.i.l.bf16 %v4094_v5 }
 0x11f   :  { %1396 = vmatpush.bf16.msrb.mxu3 %v3225_v6 }
 0x120   :  { %v529_v8 = vsel %vm192_vm6, %v4090_v43, %v4095_v48  ;;  %v530_v9 = vsel %vm192_vm6, %v4091_v63, %v4096_v7  ;;  %v533_v10 = vsel %vm192_vm6, %v4095_v48, %v4090_v43  ;;  %v534_v55 = vsel %vm192_vm6, %v4096_v7, %v4091_v63 }
 0x121   :  { %v3663_v11 = vld [vmem:[#allocation2 + $0x94] sm:$0xf0]  ;;  %v3098_v13 = vld [vmem:[#allocation2 + $0x98] sm:$0xf0]  ;;  %v539_v14 = vsel %vm99_vm5, %v533_v10, 0.0  ;;  %v541_v39 = vsel %vm99_vm5, %v534_v55, 0.0  ;;  %v4129_v10 = vpop.permute.xlu2 %4128 }
 0x122   :  { %v3096_v22 = vld [vmem:[#allocation2 + $0x88] sm:$0xf]  ;;  %v3661_v16 = vld [vmem:[#allocation2 + $0x8c] sm:$0xf]  ;;  %v545_v56 = vpack.c.bf16 %v529_v8, %v539_v14  ;;  %v546_v23 = vpack.c.bf16 %v530_v9, %v541_v39 }
 0x123   :  { %v4104_v24 = vpop.permute.xlu0 %4103  ;;  %v3097_v25 = vor.u32 %v3663_v11, %v3096_v22  ;;  %v3691_v26 = vld [vmem:[#allocation2 + $0x174] sm:$0xf0]  ;;  %v3101_v29 = vor.u32 %v3661_v16, %v3098_v13  ;;  %v3176_v16 = vld [vmem:[#allocation2 + $0x128] sm:$0xf] }
 0x124   :  { %v4106_v31 = vunpack.i.h.bf16 %v4104_v24  ;;  %v4105_v28 = vunpack.i.l.bf16 %v4104_v24  ;;  %v3208_v61 = vld [vmem:[#allocation2 + $0x168] sm:$0xf]  ;;  %549 = vst [vmem:[#allocation2 + $0x68] sm:$0xff] %v545_v56  ;;  %v3683_v56 = vld [vmem:[#allocation2 + $0x134] sm:$0xf0] }
 0x125   :  { %1377 = vmatpush.bf16.msrb.mxu1 %v3097_v25  ;;  %v3209_v40 = vor.u32 %v3691_v26, %v3208_v61  ;;  %1434 = vmatpush.bf16.msra.mxu0 %v3101_v29  ;;  %550 = vst [vmem:[#allocation2 + $0x78] sm:$0xff] %v546_v23  ;;  %v4109_v57 = vpop.permute.xlu1 %4108  ;;  %v4131_v25 = vunpack.i.h.bf16 %v4129_v10  ;;  %v4130_v26 = vunpack.i.l.bf16 %v4129_v10  ;;  %v3274_v10 = vld [vmem:[#allocation2 + $0x1f8] sm:$0xf0] }
 0x126   :  { %v648_v42 = vsel %vm6144_vm9, %v4101_v15, %v4106_v31  ;;  %v652_v20 = vsel %vm6144_vm9, %v4106_v31, %v4101_v15  ;;  %v647_v17 = vsel %vm6144_vm9, %v4100_v12, %v4105_v28  ;;  %v651_v18 = vsel %vm6144_vm9, %v4105_v28, %v4100_v12 }
 0x127   :  { %v656_v45 = vpack.c.bf16 %v652_v20, %v648_v42  ;;  %v655_v46 = vpack.c.bf16 %v651_v18, %v647_v17  ;;  %v4111_v47 = vunpack.i.h.bf16 %v4109_v57  ;;  %v4110_v44 = vunpack.i.l.bf16 %v4109_v57  ;;  %1349 = vmatmul.bf16.gmra.mxu2 %v5240_v2  ;;  %1397 = vmatpush.bf16.msrb.mxu3 %v3209_v40  ;;  %v3651_v20 = vld [vmem:[#allocation2 + $0x34] sm:$0xf0]  ;;  %v3160_v57 = vld [vmem:[#allocation2 + $0x108] sm:$0xf] }
 0x128   :  { %v3177_v42 = vor.u32 %v3683_v56, %v3176_v16 }
 0x129   :  { %660 = vst [vmem:[#allocation2 + $0x158] sm:$0xff] %v656_v45  ;;  %v528_v49 = vsel %vm192_vm6, %v4111_v47, %v4116_v36  ;;  %v532_v33 = vsel %vm192_vm6, %v4116_v36, %v4111_v47  ;;  %v527_v32 = vsel %vm192_vm6, %v4110_v44, %v4115_v37  ;;  %v531_v35 = vsel %vm192_vm6, %v4115_v37, %v4110_v44  ;;  %v3679_v45 = vld [vmem:[#allocation2 + $0x114] sm:$0xf0] }
 0x12a   :  { %659 = vst [vmem:[#allocation2 + $0x148] sm:$0xff] %v655_v46  ;;  %v537_v51 = vsel %vm99_vm5, %v532_v33, 0.0  ;;  %v535_v59 = vsel %vm99_vm5, %v531_v35, 0.0  ;;  %v3048_v33 = vld [vmem:[#allocation2 + $0x28] sm:$0xf] }
 0x12b   :  { %v544_v21 = vpack.c.bf16 %v528_v49, %v537_v51  ;;  %v543_v27 = vpack.c.bf16 %v527_v32, %v535_v59  ;;  %v4119_v54 = vpop.permute.xlu0 %4118  ;;  %v3080_v58 = vld [vmem:[#allocation2 + $0x68] sm:$0xf]  ;;  %v3657_v62 = vld [vmem:[#allocation2 + $0x6c] sm:$0xf]  ;;  %v3050_v35 = vld [vmem:[#allocation2 + $0x38] sm:$0xf0] }
 0x12c   :  { %v4121_v63 = vunpack.i.h.bf16 %v4119_v54  ;;  %v4120_v43 = vunpack.i.l.bf16 %v4119_v54  ;;  %v3659_v0 = vld [vmem:[#allocation2 + $0x74] sm:$0xf0]  ;;  %v3082_v5 = vld [vmem:[#allocation2 + $0x78] sm:$0xf0]  ;;  %v3649_v32 = vld [vmem:[#allocation2 + $0x2c] sm:$0xf]  ;;  %v3161_v54 = vor.u32 %v3679_v45, %v3160_v57 }
 0x12d   :  { %548 = vst [vmem:[#allocation2 + $0x58] sm:$0xff] %v544_v21  ;;  %v4124_v6 = vpop.permute.xlu1 %4123  ;;  %v3081_v7 = vor.u32 %v3659_v0, %v3080_v58  ;;  %v3085_v48 = vor.u32 %v3657_v62, %v3082_v5  ;;  %v3049_v58 = vor.u32 %v3651_v20, %v3048_v33  ;;  %v3053_v62 = vor.u32 %v3649_v32, %v3050_v35  ;;  %v3645_v0 = vld [vmem:[#allocation2 + $0xc] sm:$0xf]  ;;  %v3034_v5 = vld [vmem:[#allocation2 + $0x18] sm:$0xf0] }
 0x12e   :  { %547 = vst [vmem:[#allocation2 + $0x48] sm:$0xff] %v543_v27  ;;  %v4126_v8 = vunpack.i.h.bf16 %v4124_v6  ;;  %v4125_v9 = vunpack.i.l.bf16 %v4124_v6  ;;  %v3705_v6 = vld [vmem:[#allocation2 + $0x1ec] sm:$0xf] }
 0x12f   :  { %1378 = vmatpush.bf16.msrb.mxu1 %v3081_v7  ;;  %1435 = vmatpush.bf16.msra.mxu0 %v3085_v48 }
 0x130   :  { %v3687_v55 = vld [vmem:[#allocation2 + $0x154] sm:$0xf0]  ;;  %v761_v11 = vsel %vm6145_vm13, %v4120_v43, %v4125_v9  ;;  %v762_v13 = vsel %vm6145_vm13, %v4121_v63, %v4126_v8  ;;  %v765_v14 = vsel %vm6145_vm13, %v4125_v9, %v4120_v43  ;;  %v766_v39 = vsel %vm6145_vm13, %v4126_v8, %v4121_v63  ;;  %v3032_v63 = vld [vmem:[#allocation2 + $0x8] sm:$0xf] }
 0x131   :  { %v3192_v15 = vld [vmem:[#allocation2 + $0x148] sm:$0xf]  ;;  %v772_v12 = vsel %vm102_vm11, %v765_v14, 0.0  ;;  %v774_v53 = vsel %vm102_vm11, %v766_v39, 0.0  ;;  %v3647_v43 = vld [vmem:[#allocation2 + $0x14] sm:$0xf0]  ;;  %v3037_v14 = vor.u32 %v3645_v0, %v3034_v5  ;;  %v3277_v39 = vor.u32 %v3705_v6, %v3274_v10 }
 0x132   :  { %v3193_v22 = vor.u32 %v3687_v55, %v3192_v15  ;;  %v777_v23 = vpack.c.bf16 %v772_v12, %v761_v11  ;;  %v778_v24 = vpack.c.bf16 %v774_v53, %v762_v13  ;;  %v3033_v55 = vor.u32 %v3647_v43, %v3032_v63  ;;  %v3701_v15 = vld [vmem:[#allocation2 + $0x1cc] sm:$0xf]  ;;  %v3258_v12 = vld [vmem:[#allocation2 + $0x1d8] sm:$0xf0] }
 0x133   :  { %v3685_v20 = vld [vmem:[#allocation2 + $0x14c] sm:$0xf] }
 0x134   :  { %v4134_v29 = vpop.permute.xlu0 %4133  ;;  %1398 = vmatpush.bf16.msrb.mxu3 %v3193_v22  ;;  %v3655_v31 = vld [vmem:[#allocation2 + $0x54] sm:$0xf0]  ;;  %v3066_v28 = vld [vmem:[#allocation2 + $0x58] sm:$0xf0]  ;;  %781 = vst [vmem:[#allocation2 + $0x228] sm:$0xff] %v777_v23  ;;  %v3261_v23 = vor.u32 %v3701_v15, %v3258_v12 }
 0x135   :  { %v4136_v61 = vunpack.i.h.bf16 %v4134_v29  ;;  %v4135_v36 = vunpack.i.l.bf16 %v4134_v29  ;;  %v3064_v37 = vld [vmem:[#allocation2 + $0x48] sm:$0xf]  ;;  %v3653_v40 = vld [vmem:[#allocation2 + $0x4c] sm:$0xf]  ;;  %782 = vst [vmem:[#allocation2 + $0x238] sm:$0xff] %v778_v24 }
 0x136   :  { %v3065_v17 = vor.u32 %v3655_v31, %v3064_v37  ;;  %v3069_v18 = vor.u32 %v3653_v40, %v3066_v28  ;;  %v3242_v29 = vld [vmem:[#allocation2 + $0x1b8] sm:$0xf0]  ;;  %v3693_v28 = vld [vmem:[#allocation2 + $0x18c] sm:$0xf] }
 0x137   :  { %v760_v46 = vsel %vm6145_vm13, %v4131_v25, %v4136_v61  ;;  %v764_v47 = vsel %vm6145_vm13, %v4136_v61, %v4131_v25  ;;  %v759_v44 = vsel %vm6145_vm13, %v4130_v26, %v4135_v36  ;;  %v763_v49 = vsel %vm6145_vm13, %v4135_v36, %v4130_v26  ;;  %v3697_v26 = vld [vmem:[#allocation2 + $0x1ac] sm:$0xf]  ;;  %v3226_v61 = vld [vmem:[#allocation2 + $0x198] sm:$0xf0] }
 0x138   :  { %v770_v51 = vsel %vm102_vm11, %v764_v47, 0.0  ;;  %v768_v59 = vsel %vm102_vm11, %v763_v49, 0.0  ;;  %1379 = vmatpush.bf16.msrb.mxu1 %v3065_v17  ;;  %1436 = vmatpush.bf16.msra.mxu0 %v3069_v18  ;;  %v3245_v31 = vor.u32 %v3697_v26, %v3242_v29  ;;  %v3229_v36 = vor.u32 %v3693_v28, %v3226_v61  ;;  %v3689_v37 = vld [vmem:[#allocation2 + $0x16c] sm:$0xf]  ;;  %v3210_v40 = vld [vmem:[#allocation2 + $0x178] sm:$0xf0] }
 0x139   :  { %v776_v21 = vpack.c.bf16 %v770_v51, %v760_v46  ;;  %v775_v27 = vpack.c.bf16 %v768_v59, %v759_v44  ;;  %1399 = vmatpush.bf16.msrb.mxu3 %v3177_v42  ;;  %v3213_v42 = vor.u32 %v3689_v37, %v3210_v40  ;;  %v3194_v17 = vld [vmem:[#allocation2 + $0x158] sm:$0xf0]  ;;  %v3677_v46 = vld [vmem:[#allocation2 + $0x10c] sm:$0xf] }
 0x13a   :  { %v3178_v18 = vld [vmem:[#allocation2 + $0x138] sm:$0xf0]  ;;  %v3197_v57 = vor.u32 %v3685_v20, %v3194_v17 }
 0x13b   :  { %780 = vst [vmem:[#allocation2 + $0x218] sm:$0xff] %v776_v21  ;;  %v3304_v7 = vld [vmem:[#allocation2 + $0x228] sm:$0xf]  ;;  %v3713_v48 = vld [vmem:[#allocation2 + $0x22c] sm:$0xf] }
 0x13c   :  { %779 = vst [vmem:[#allocation2 + $0x208] sm:$0xff] %v775_v27  ;;  %1380 = vmatpush.bf16.msrb.mxu1 %v3049_v58  ;;  %1437 = vmatpush.bf16.msra.mxu0 %v3053_v62  ;;  %v3715_v8 = vld [vmem:[#allocation2 + $0x234] sm:$0xf0]  ;;  %v3306_v9 = vld [vmem:[#allocation2 + $0x238] sm:$0xf0]  ;;  %v5354_v27 = vstv %s6138_s0  ;;  %s4589_s0 = smov [#allocation10]  }
 0x13d   :  { %1400 = vmatpush.bf16.msrb.mxu3 %v3161_v54  ;;  %v3305_v11 = vor.u32 %v3715_v8, %v3304_v7  ;;  %v3309_v13 = vor.u32 %v3713_v48, %v3306_v9  ;;  %v3162_v47 = vld [vmem:[#allocation2 + $0x118] sm:$0xf0]  ;;  %s2982_s14 = sshll.u32 %s4589_s0, 4  ;;  %s2983_s14 = int_to_ptr.vmem [resolvable:$true] %s2982_s14 }
 0x13e   :  { %v3165_v44 = vor.u32 %v3677_v46, %v3162_v47 }
 0x13f   :  { %1418 = vmatpush.bf16.msra.mxu2 %v3305_v11 }
 0x140   :  { %1381 = vmatpush.bf16.msrb.mxu1 %v3033_v55  ;;  %1438 = vmatpush.bf16.msra.mxu0 %v3037_v14 }
 0x141   :  { %1475 = vmatpush.bf16.msra.mxu3 %v3309_v13 }
 0x142   :  { %1401 = vmatmul.bf16.vlgmr.msrb.gmra.mxu3 %v5191_v50  ;;  %v3711_v53 = vld [vmem:[#allocation2 + $0x214] sm:$0xf0]  ;;  %v3290_v22 = vld [vmem:[#allocation2 + $0x218] sm:$0xf0] }
 0x143   :  { %1382 = vmatmul.bf16.vlgmr.msrb.gmra.mxu1 %v5111_v30  ;;  %v3288_v16 = vld [vmem:[#allocation2 + $0x208] sm:$0xf]  ;;  %v3709_v56 = vld [vmem:[#allocation2 + $0x20c] sm:$0xf]  ;;  %1439 = vmatmul.bf16.vlgmr.msra.gmra.mxu0 %v5111_v30 }
 0x144   :  { %1450 = vmatpush.bf16.msra.mxu1 %v3277_v39  ;;  %v3289_v24 = vor.u32 %v3711_v53, %v3288_v16  ;;  %v3293_v25 = vor.u32 %v3709_v56, %v3290_v22  ;;  %v3681_v30 = vld [vmem:[#allocation2 + $0x12c] sm:$0xf] }
 0x145   :  { %v3181_v45 = vor.u32 %v3681_v30, %v3178_v18 }
 0x146   :  { %1419 = vmatpush.bf16.msra.mxu2 %v3289_v24  ;;  %1476 = vmatpush.bf16.msra.mxu3 %v3293_v25 }
 0x148   :  { %1451 = vmatpush.bf16.msra.mxu1 %v3261_v23 }
 0x149   :  { %3314 = vmatmul.msk.bf16.vlgmr.msra.gmra.mxu2 %vm6143_vm14, %v5145_v38 }
 0x14c   :  { %1452 = vmatpush.bf16.msra.mxu1 %v3245_v31 }
 0x150   :  { %1453 = vmatpush.bf16.msra.mxu1 %v3229_v36 }
 0x152   :  { %1406 = vmatmul.bf16.gmra.mxu3 %v5240_v2 }
 0x153   :  { %1387 = vmatmul.bf16.gmra.mxu1 %v5161_v52  ;;  %1444 = vmatmul.bf16.gmra.mxu0 %v5161_v52 }
 0x154   :  { %1454 = vmatpush.bf16.msra.mxu1 %v3213_v42 }
 0x158   :  { %1455 = vmatpush.bf16.msra.mxu1 %v3197_v57 }
 0x159   :  { %3315 = vmatmul.msk.bf16.gmra.mxu2 %vm6143_vm14, %v5207_v60 }
 0x15c   :  { %1456 = vmatpush.bf16.msra.mxu1 %v3181_v45 }
 0x160   :  { %1457 = vmatpush.bf16.msra.mxu1 %v3165_v44  ;;  %v1269_v49 = vpop.f32.mrf.mxu0 }
 0x162   :  { %3316 = vmatmul.msk.bf16.vlgmr.msra.gmra.mxu3 %vm6143_vm14, %v5145_v38 }
 0x163   :  { %1458 = vmatmul.bf16.vlgmr.msra.gmra.mxu1 %v5191_v50 }
 0x167   :  { %v1326_v0 = vpop.f32.mrf.mxu3 }
 0x168   :  { %v1271_v52 = vpop.f32.mrf.mxu0 }
 0x16f   :  { %v1328_v16 = vpop.f32.mrf.mxu3 }
 0x170   :  { %v1274_v32 = vpop.f32.mrf.mxu0 }
 0x172   :  { %3317 = vmatmul.msk.bf16.gmra.mxu3 %vm6143_vm14, %v5207_v60 }
 0x173   :  { %1463 = vmatmul.bf16.gmra.mxu1 %v5240_v2 }
 0x178   :  { %v1276_v38 = vpop.f32.mrf.mxu0  ;;  %v1331_v17 = vpop.f32.mrf.mxu3 }
 0x17a   :  { %v1307_v33 = vpop.f32.mrf.mxu2 }
 0x180   :  { %v1364_v10 = vpop.f32.mrf.mxu0 }
 0x181   :  { %v1288_v51 = vpop.f32.mrf.mxu1 }
 0x182   :  { %v1309_v35 = vpop.f32.mrf.mxu2  ;;  %v1289_v59 = vadd.f32 %v1288_v51, %v1269_v49 }
 0x184   :  { %v1308_v21 = vadd.f32 %v1307_v33, %v1289_v59 }
 0x186   :  { %v1505_v58 = vmul.f32 %v5354_v27, %v1308_v21  ;;  %vm1488_vm15 = vcmp.gt.f32.partialorder %v1308_v21, 0.0 }
 0x188   :  { %v1521_v62 = vsel %vm1488_vm15, %v1308_v21, %v1505_v58  ;;  %v1366_v25 = vpop.f32.mrf.mxu0  ;;  %v1333_v21 = vpop.f32.mrf.mxu3 }
 0x189   :  { %v1290_v54 = vpop.f32.mrf.mxu1  ;;  %v1545_v48 = vsel %vm4666_vm2, %v1521_v62, 0.0  ;;  %v1537_v14 = vsel %vm4630_vm0, %v1521_v62, 0.0 }
 0x18a   :  { %v1312_v50 = vpop.f32.mrf.mxu2  ;;  %v1291_v60 = vadd.f32 %v1290_v54, %v1271_v52 }
 0x18c   :  { %v1310_v2 = vadd.f32 %v1309_v35, %v1291_v60 }
 0x18e   :  { %vm1492_vm14 = vcmp.gt.f32.partialorder %v1310_v2, 0.0  ;;  %v1509_v63 = vmul.f32 %v5354_v27, %v1310_v2 }
 0x190   :  { %v1525_v43 = vsel %vm1492_vm14, %v1310_v2, %v1509_v63  ;;  %v1369_v57 = vpop.f32.mrf.mxu0 }
 0x191   :  { %v4142_v7 = vpack.i.bf16 %v1525_v43, %v1521_v62  ;;  %v1547_v8 = vsel %vm4666_vm2, %v1525_v43, 0.0  ;;  %v1539_v11 = vsel %vm4630_vm0, %v1525_v43, 0.0 }
 0x192   :  { %v1314_v5 = vpop.f32.mrf.mxu2  ;;  %v1293_v6 = vpop.f32.mrf.mxu1  ;;  %v5362_v9 = vpack.i.bf16 %v1547_v8, %v1545_v48  ;;  %v4162_v12 = vpack.i.bf16 %v1539_v11, %v1537_v14 }
 0x193   :  { %4143 = vrot.lane.b32.xlu1 %v4142_v7, %s4587_s10  ;;  %4138 = vrot.lane.b32.xlu2 %v4142_v7, %s4580_s28  ;;  %v1294_v55 = vadd.f32 %v1293_v6, %v1274_v32 }
 0x194   :  { %4153 = vrot.lane.b32.xlu0 %v5362_v9, %s4583_s6 }
 0x195   :  { %v1313_v13 = vadd.f32 %v1312_v50, %v1294_v55 }
 0x197   :  { %v1513_v56 = vmul.f32 %v5354_v27, %v1313_v13  ;;  %vm1496_vm14 = vcmp.gt.f32.partialorder %v1313_v13, 0.0 }
 0x198   :  { %v1371_v58 = vpop.f32.mrf.mxu0 }
 0x199   :  { %v1529_v31 = vsel %vm1496_vm14, %v1313_v13, %v1513_v56 }
 0x19a   :  { %v1345_v39 = vpop.f32.mrf.mxu2  ;;  %v1295_v15 = vpop.f32.mrf.mxu1  ;;  %v1549_v47 = vsel %vm4666_vm2, %v1529_v31, 0.0  ;;  %v1541_v33 = vsel %vm4630_vm0, %v1529_v31, 0.0 }
 0x19b   :  { %v1346_v53 = vadd.f32 %v1345_v39, %v1326_v0  ;;  %v1296_v22 = vadd.f32 %v1295_v15, %v1276_v38  ;;  %4163 = vrot.lane.b32.xlu2 %v4162_v12, %s4586_s9  ;;  %4148 = vrot.lane.b32.xlu1 %v4162_v12, %s4582_s3 }
 0x19d   :  { %v1315_v23 = vadd.f32 %v1314_v5, %v1296_v22  ;;  %v1365_v24 = vadd.f32 %v1364_v10, %v1346_v53 }
 0x19f   :  { %vm1500_vm15 = vcmp.gt.f32.partialorder %v1315_v23, 0.0  ;;  %v1517_v26 = vmul.f32 %v5354_v27, %v1315_v23  ;;  %vm1489_vm9 = vcmp.gt.f32.partialorder %v1365_v24, 0.0  ;;  %v1506_v29 = vmul.f32 %v5354_v27, %v1365_v24 }
 0x1a1   :  { %v1533_v28 = vsel %vm1500_vm15, %v1315_v23, %v1517_v26  ;;  %v1522_v61 = vsel %vm1489_vm9, %v1365_v24, %v1506_v29 }
 0x1a2   :  { %v1705_v36 = vpack.c.bf16 %v1522_v61, %v1521_v62  ;;  %v1347_v37 = vpop.f32.mrf.mxu2  ;;  %v4172_v40 = vpack.i.bf16 %v1533_v28, %v1529_v31  ;;  %v1551_v18 = vsel %vm4666_vm2, %v1533_v28, 0.0  ;;  %v1543_v45 = vsel %vm4630_vm0, %v1533_v28, 0.0 }
 0x1a3   :  { %v1348_v42 = vadd.f32 %v1347_v37, %v1328_v16  ;;  %4168 = vrot.lane.b32.xlu2 %v5362_v9, %s4588_s11  ;;  %4158 = vrot.lane.b32.xlu1 %v4162_v12, %s4584_s7  ;;  %v4187_v52 = vpack.i.bf16 %v1551_v18, %v1549_v47  ;;  %v4197_v35 = vpack.i.bf16 %v1543_v45, %v1541_v33  ;;  %v1538_v63 = vsel %vm4644_vm1, %v1522_v61, 0.0 }
 0x1a4   :  { %1709 = vst [vmem:[#allocation2 + $0x100] sm:$0xff] %v1705_v36  ;;  %4173 = vrot.lane.b32.xlu0 %v4172_v40, %s4580_s28  ;;  %v1546_v48 = vsel %vm4680_vm3, %v1522_v61, 0.0 }
 0x1a5   :  { %v1367_v20 = vadd.f32 %v1366_v25, %v1348_v42 }
 0x1a7   :  { %vm1493_vm13 = vcmp.gt.f32.partialorder %v1367_v20, 0.0  ;;  %v1510_v30 = vmul.f32 %v5354_v27, %v1367_v20 }
 0x1a9   :  { %v1526_v46 = vsel %vm1493_vm13, %v1367_v20, %v1510_v30 }
 0x1aa   :  { %v1706_v44 = vpack.c.bf16 %v1526_v46, %v1525_v43  ;;  %v1350_v49 = vpop.f32.mrf.mxu2  ;;  %v1540_v43 = vsel %vm4644_vm1, %v1526_v46, 0.0  ;;  %v4212_v6 = vpack.i.bf16 %v1526_v46, %v1522_v61  ;;  %v1548_v8 = vsel %vm4680_vm3, %v1526_v46, 0.0 }
 0x1ab   :  { %v1351_v32 = vadd.f32 %v1350_v49, %v1331_v17  ;;  %4178 = vrot.lane.b32.xlu2 %v4172_v40, %s4587_s10  ;;  %4188 = vrot.lane.b32.xlu1 %v4187_v52, %s4583_s6  ;;  %v4222_v7 = vpack.i.bf16 %v1540_v43, %v1538_v63  ;;  %v4232_v55 = vpack.i.bf16 %v1548_v8, %v1546_v48 }
 0x1ac   :  { %1710 = vst [vmem:[#allocation2 + $0x110] sm:$0xff] %v1706_v44  ;;  %4198 = vrot.lane.b32.xlu0 %v4197_v35, %s4586_s9 }
 0x1ad   :  { %v1370_v51 = vadd.f32 %v1369_v57, %v1351_v32 }
 0x1af   :  { %vm1497_vm9 = vcmp.gt.f32.partialorder %v1370_v51, 0.0  ;;  %v1514_v59 = vmul.f32 %v5354_v27, %v1370_v51 }
 0x1b1   :  { %v5394_v38 = vsel %vm1497_vm9, %v1370_v51, %v1514_v59 }
 0x1b2   :  { %v1707_v50 = vpack.c.bf16 %v5394_v38, %v1529_v31  ;;  %v1352_v54 = vpop.f32.mrf.mxu2  ;;  %v1542_v13 = vsel %vm4644_vm1, %v5394_v38, 0.0  ;;  %v1550_v49 = vsel %vm4680_vm3, %v5394_v38, 0.0 }
 0x1b3   :  { %v1353_v60 = vadd.f32 %v1352_v54, %v1333_v21  ;;  %4203 = vrot.lane.b32.xlu1 %v4187_v52, %s4588_s11  ;;  %4183 = vrot.lane.b32.xlu2 %v4197_v35, %s4582_s3 }
 0x1b4   :  { %1711 = vst [vmem:[#allocation2 + $0x120] sm:$0xff] %v1707_v50  ;;  %4208 = vrot.lane.b32.xlu0 %v4187_v52, %s4585_s8 }
 0x1b5   :  { %v1372_v2 = vadd.f32 %v1371_v58, %v1353_v60 }
 0x1b7   :  { %vm1501_vm13 = vcmp.gt.f32.partialorder %v1372_v2, 0.0  ;;  %v1518_v62 = vmul.f32 %v5354_v27, %v1372_v2 }
 0x1b9   :  { %v5405_v0 = vsel %vm1501_vm13, %v1372_v2, %v1518_v62 }
 0x1ba   :  { %v1708_v5 = vpack.c.bf16 %v5405_v0, %v1533_v28  ;;  %v1544_v14 = vsel %vm4644_vm1, %v5405_v0, 0.0  ;;  %v4247_v23 = vpack.i.bf16 %v5405_v0, %v5394_v38  ;;  %v1552_v52 = vsel %vm4680_vm3, %v5405_v0, 0.0 }
 0x1bb   :  { %4193 = vrot.lane.b32.xlu2 %v4197_v35, %s4584_s7  ;;  %4213 = vrot.lane.b32.xlu1 %v4212_v6, %s4580_s28  ;;  %v4257_v15 = vpack.i.bf16 %v1544_v14, %v1542_v13  ;;  %v4312_v51 = vpack.i.bf16 %v1552_v52, %v1550_v49 }
 0x1bc   :  { %1712 = vst [vmem:[#allocation2 + $0x130] sm:$0xff] %v1708_v5  ;;  %4223 = vrot.lane.b32.xlu0 %v4222_v7, %s4582_s3 }
 0x1c0   :  { %v1383_v10 = vpop.f32.mrf.mxu1  ;;  %v1440_v40 = vpop.f32.mrf.mxu0 }
 0x1c3   :  { %4218 = vrot.lane.b32.xlu2 %v4212_v6, %s4587_s10  ;;  %4233 = vrot.lane.b32.xlu1 %v4232_v55, %s4583_s6 }
 0x1c4   :  { %4238 = vrot.lane.b32.xlu0 %v4222_v7, %s4586_s9 }
 0x1c5   :  { %v1402_v11 = vpop.f32.mrf.mxu3 }
 0x1c6   :  { %v1403_v12 = vadd.f32 %v1402_v11, %v1383_v10 }
 0x1c8   :  { %v1385_v39 = vpop.f32.mrf.mxu1  ;;  %v1442_v21 = vpop.f32.mrf.mxu0 }
 0x1cb   :  { %4228 = vrot.lane.b32.xlu2 %v4222_v7, %s4584_s7  ;;  %4258 = vrot.lane.b32.xlu1 %v4257_v15, %s4582_s3 }
 0x1cc   :  { %v1421_v53 = vpop.f32.mrf.mxu2  ;;  %4243 = vrot.lane.b32.xlu0 %v4232_v55, %s4588_s11 }
 0x1cd   :  { %v1404_v22 = vpop.f32.mrf.mxu3  ;;  %v1422_v16 = vadd.f32 %v1421_v53, %v1403_v12 }
 0x1ce   :  { %v1405_v24 = vadd.f32 %v1404_v22, %v1385_v39 }
 0x1cf   :  { %v1507_v25 = vmul.f32 %v5354_v27, %v1422_v16  ;;  %vm1490_vm14 = vcmp.gt.f32.partialorder %v1422_v16, 0.0 }
 0x1d0   :  { %v1388_v56 = vpop.f32.mrf.mxu1  ;;  %v1445_v10 = vpop.f32.mrf.mxu0 }
 0x1d1   :  { %v1523_v61 = vsel %vm1490_vm14, %v1422_v16, %v1507_v25 }
 0x1d2   :  { %v1865_v30 = vsel %vm4630_vm0, %v1523_v61, 0.0  ;;  %v1873_v18 = vsel %vm4666_vm2, %v1523_v61, 0.0 }
 0x1d3   :  { %4248 = vrot.lane.b32.xlu2 %v4247_v23, %s4580_s28  ;;  %4278 = vrot.lane.b32.xlu1 %v4232_v55, %s4585_s8 }
 0x1d4   :  { %v1423_v26 = vpop.f32.mrf.mxu2  ;;  %4253 = vrot.lane.b32.xlu0 %v4247_v23, %s4587_s10 }
 0x1d5   :  { %v1407_v29 = vpop.f32.mrf.mxu3  ;;  %v1424_v31 = vadd.f32 %v1423_v26, %v1405_v24 }
 0x1d6   :  { %v1408_v47 = vadd.f32 %v1407_v29, %v1388_v56 }
 0x1d7   :  { %vm1494_vm15 = vcmp.gt.f32.partialorder %v1424_v31, 0.0  ;;  %v1511_v28 = vmul.f32 %v5354_v27, %v1424_v31 }
 0x1d8   :  { %v1390_v36 = vpop.f32.mrf.mxu1  ;;  %v1447_v23 = vpop.f32.mrf.mxu0 }
 0x1d9   :  { %v1527_v37 = vsel %vm1494_vm15, %v1424_v31, %v1511_v28 }
 0x1da   :  { %v5434_v42 = vpack.i.bf16 %v1527_v37, %v1523_v61  ;;  %v1867_v20 = vsel %vm4630_vm0, %v1527_v37, 0.0  ;;  %v1875_v17 = vsel %vm4666_vm2, %v1527_v37, 0.0 }
 0x1db   :  { %4303 = vrot.lane.b32.xlu1 %v4257_v15, %s4586_s9  ;;  %v5447_v45 = vpack.i.bf16 %v1867_v20, %v1865_v30  ;;  %v5449_v46 = vpack.i.bf16 %v1875_v17, %v1873_v18 }
 0x1dc   :  { %v1426_v57 = vpop.f32.mrf.mxu2  ;;  %4283 = vrot.lane.b32.xlu2 %v5434_v42, %s4587_s10  ;;  %4263 = vrot.lane.b32.xlu0 %v4257_v15, %s4584_s7 }
 0x1dd   :  { %v1409_v44 = vpop.f32.mrf.mxu3  ;;  %v1427_v32 = vadd.f32 %v1426_v57, %v1408_v47 }
 0x1de   :  { %v1410_v59 = vadd.f32 %v1409_v44, %v1390_v36 }
 0x1df   :  { %v1515_v54 = vmul.f32 %v5354_v27, %v1427_v32  ;;  %vm1498_vm9 = vcmp.gt.f32.partialorder %v1427_v32, 0.0 }
 0x1e0   :  { %v1459_v33 = vpop.f32.mrf.mxu1 }
 0x1e1   :  { %v1460_v35 = vadd.f32 %v1459_v33, %v1440_v40  ;;  %v1531_v43 = vsel %vm1498_vm9, %v1427_v32, %v1515_v54 }
 0x1e2   :  { %v1869_v15 = vsel %vm4630_vm0, %v1531_v43, 0.0  ;;  %v1877_v29 = vsel %vm4666_vm2, %v1531_v43, 0.0 }
 0x1e3   :  { %4313 = vrot.lane.b32.xlu1 %v4312_v51, %s4585_s8 }
 0x1e4   :  { %v1428_v50 = vpop.f32.mrf.mxu2  ;;  %4288 = vrot.lane.b32.xlu2 %v5447_v45, %s4584_s7  ;;  %4268 = vrot.lane.b32.xlu0 %v4312_v51, %s4583_s6 }
 0x1e5   :  { %v1478_v58 = vpop.f32.mrf.mxu3  ;;  %v1429_v38 = vadd.f32 %v1428_v50, %v1410_v59 }
 0x1e6   :  { %v1479_v60 = vadd.f32 %v1478_v58, %v1460_v35 }
 0x1e7   :  { %vm1502_vm13 = vcmp.gt.f32.partialorder %v1429_v38, 0.0  ;;  %v1519_v2 = vmul.f32 %v5354_v27, %v1429_v38 }
 0x1e8   :  { %vm1491_vm14 = vcmp.gt.f32.partialorder %v1479_v60, 0.0  ;;  %v1508_v62 = vmul.f32 %v5354_v27, %v1479_v60  ;;  %v1461_v63 = vpop.f32.mrf.mxu1 }
 0x1e9   :  { %v1535_v0 = vsel %vm1502_vm13, %v1429_v38, %v1519_v2  ;;  %v1462_v6 = vadd.f32 %v1461_v63, %v1442_v21 }
 0x1ea   :  { %v5465_v5 = vsel %vm1491_vm14, %v1479_v60, %v1508_v62  ;;  %v4317_v7 = vpack.i.bf16 %v1535_v0, %v1531_v43  ;;  %v1871_v13 = vsel %vm4630_vm0, %v1535_v0, 0.0  ;;  %v1879_v24 = vsel %vm4666_vm2, %v1535_v0, 0.0 }
 0x1eb   :  { %v2033_v48 = vpack.c.bf16 %v5465_v5, %v1523_v61  ;;  %v5482_v22 = vpack.i.bf16 %v1871_v13, %v1869_v15  ;;  %v5497_v61 = vpack.i.bf16 %v1879_v24, %v1877_v29  ;;  %v1866_v52 = vsel %vm4644_vm1, %v5465_v5, 0.0 }
 0x1ec   :  { %4298 = vrot.lane.b32.xlu2 %v5449_v46, %s4583_s6  ;;  %4318 = vrot.lane.b32.xlu1 %v4317_v7, %s4587_s10  ;;  %v1874_v2 = vsel %vm4680_vm3, %v5465_v5, 0.0 }
 0x1ed   :  { %2037 = vst [vmem:[#allocation2 + $0x108] sm:$0xff] %v2033_v48  ;;  %v1480_v8 = vpop.f32.mrf.mxu3  ;;  %4273 = vrot.lane.b32.xlu0 %v5362_v9, %s4585_s8  ;;  %v5473_v11 = vpop.permute.xlu2 %4138 }
 0x1ee   :  { %v1481_v55 = vadd.f32 %v1480_v8, %v1462_v6 }
 0x1f0   :  { %vm1495_vm15 = vcmp.gt.f32.partialorder %v1481_v55, 0.0  ;;  %v1512_v14 = vmul.f32 %v5354_v27, %v1481_v55  ;;  %v1464_v39 = vpop.f32.mrf.mxu1 }
 0x1f1   :  { %v1465_v53 = vadd.f32 %v1464_v39, %v1445_v10 }
 0x1f2   :  { %v5480_v12 = vsel %vm1495_vm15, %v1481_v55, %v1512_v14 }
 0x1f3   :  { %v2034_v9 = vpack.c.bf16 %v5480_v12, %v1527_v37  ;;  %v1868_v33 = vsel %vm4644_vm1, %v5480_v12, 0.0  ;;  %v1876_v62 = vsel %vm4680_vm3, %v5480_v12, 0.0 }
 0x1f4   :  { %4308 = vrot.lane.b32.xlu2 %v4312_v51, %s4588_s11  ;;  %4328 = vrot.lane.b32.xlu1 %v5482_v22, %s4584_s7  ;;  %v5522_v35 = vpack.i.bf16 %v1868_v33, %v1866_v52  ;;  %v4347_v51 = vpack.i.bf16 %v5480_v12, %v5465_v5 }
 0x1f5   :  { %2038 = vst [vmem:[#allocation2 + $0x118] sm:$0xff] %v2034_v9  ;;  %v1483_v16 = vpop.f32.mrf.mxu3  ;;  %4293 = vrot.lane.b32.xlu0 %v5447_v45, %s4586_s9  ;;  %v5490_v3 = vpop.permute.xlu2 %4163 }
 0x1f6   :  { %v1484_v56 = vadd.f32 %v1483_v16, %v1465_v53 }
 0x1f8   :  { %vm1499_vm0 = vcmp.gt.f32.partialorder %v1484_v56, 0.0  ;;  %v1516_v25 = vmul.f32 %v5354_v27, %v1484_v56  ;;  %v1466_v26 = vpop.f32.mrf.mxu1 }
 0x1f9   :  { %v1467_v28 = vadd.f32 %v1466_v26, %v1447_v23 }
 0x1fa   :  { %v1532_v31 = vsel %vm1499_vm0, %v1484_v56, %v1516_v25 }
 0x1fb   :  { %v2035_v36 = vpack.c.bf16 %v1532_v31, %v1531_v43  ;;  %v1870_v44 = vsel %vm4644_vm1, %v1532_v31, 0.0  ;;  %v1878_v38 = vsel %vm4680_vm3, %v1532_v31, 0.0  ;;  %v5557_v43 = vpack.i.bf16 %v1876_v62, %v1874_v2 }
 0x1fc   :  { %4338 = vrot.lane.b32.xlu1 %v5497_v61, %s4583_s6 }
 0x1fd   :  { %2039 = vst [vmem:[#allocation2 + $0x128] sm:$0xff] %v2035_v36  ;;  %v1485_v37 = vpop.f32.mrf.mxu3  ;;  %4323 = vrot.lane.b32.xlu0 %v4317_v7, %s4580_s28  ;;  %v5502_v20 = vpop.permute.xlu2 %4168 }
 0x1fe   :  { %v1486_v40 = vadd.f32 %v1485_v37, %v1467_v28 }
 0x200   :  { %vm1503_vm9 = vcmp.gt.f32.partialorder %v1486_v40, 0.0  ;;  %v1520_v17 = vmul.f32 %v5354_v27, %v1486_v40 }
 0x202   :  { %v1536_v34 = vsel %vm1503_vm9, %v1486_v40, %v1520_v17  ;;  %v4141_v40 = vunpack.i.h.bf16 %v5473_v11  ;;  %v4140_v17 = vunpack.i.l.bf16 %v5473_v11 }
 0x203   :  { %v2036_v30 = vpack.c.bf16 %v1536_v34, %v1535_v0  ;;  %v4367_v18 = vpack.i.bf16 %v1536_v34, %v1532_v31  ;;  %v1872_v49 = vsel %vm4644_vm1, %v1536_v34, 0.0  ;;  %v1880_v60 = vsel %vm4680_vm3, %v1536_v34, 0.0 }
 0x204   :  { %4343 = vrot.lane.b32.xlu1 %v5497_v61, %s4585_s8  ;;  %v4372_v32 = vpack.i.bf16 %v1872_v49, %v1870_v44  ;;  %v5555_v63 = vpack.i.bf16 %v1880_v60, %v1878_v38  ;;  %v4166_v34 = vunpack.i.h.bf16 %v5490_v3  ;;  %vm6154_vm1 = vcmp.lt.s32.totalorder %v4627_v1, 111 }
 0x205   :  { %2040 = vst [vmem:[#allocation2 + $0x138] sm:$0xff] %v2036_v30  ;;  %4368 = vrot.lane.b32.xlu2 %v4367_v18, %s4587_s10  ;;  %4333 = vrot.lane.b32.xlu0 %v5482_v22, %s4586_s9  ;;  %v4144_v57 = vpop.permute.xlu1 %4143  ;;  %v5510_v47 = vpop.permute.xlu2 %4178  ;;  %vm6155_vm2 = vmmov %vm6154_vm1 }
 0x206   :  { %v5534_v50 = vpop.permute.xlu0 %4153  ;;  %v4146_v5 = vunpack.i.h.bf16 %v4144_v57  ;;  %v4145_v7 = vunpack.i.l.bf16 %v4144_v57  ;;  %vm6156_vm3 = vmmov %vm6154_vm1 }
 0x207   :  { %vm6157_vm13 = vmmov %vm6154_vm1 }
 0x208   :  { %vm6158_vm14 = vmmov %vm6154_vm1 }
 0x209   :  { %vm6159_vm15 = vmmov %vm6154_vm1 }
 0x20a   :  { %vm6160_vm0 = vmmov %vm6154_vm1 }
 0x20b   :  { %vm6161_vm9 = vmmov %vm6160_vm0 }
 0x20c   :  { %4358 = vrot.lane.b32.xlu1 %v5522_v35, %s4586_s9 }
 0x20d   :  { %4373 = vrot.lane.b32.xlu2 %v4372_v32, %s4584_s7  ;;  %4348 = vrot.lane.b32.xlu0 %v4347_v51, %s4587_s10  ;;  %v5530_v59 = vpop.permute.xlu1 %4148  ;;  %v5532_v21 = vpop.permute.xlu2 %4183 }
 0x20e   :  { %v4151_v30 = vunpack.i.h.bf16 %v5530_v59 }
 0x214   :  { %4378 = vrot.lane.b32.xlu1 %v4372_v32, %s4586_s9 }
 0x215   :  { %4388 = vrot.lane.b32.xlu2 %v5449_v46, %s4585_s8  ;;  %4353 = vrot.lane.b32.xlu0 %v5522_v35, %s4584_s7  ;;  %v4159_v19 = vpop.permute.xlu1 %4158  ;;  %v5541_v54 = vpop.permute.xlu2 %4193 }
 0x216   :  { %v5543_v58 = vpop.permute.xlu0 %4173  ;;  %v4161_v56 = vunpack.i.h.bf16 %v4159_v19  ;;  %v4160_v23 = vunpack.i.l.bf16 %v4159_v19 }
 0x217   :  { %v4176_v49 = vunpack.i.h.bf16 %v5543_v58  ;;  %v4175_v52 = vunpack.i.l.bf16 %v5543_v58 }
 0x21c   :  { %4383 = vrot.lane.b32.xlu1 %v4367_v18, %s4580_s28  ;;  %v4150_v18 = vunpack.i.l.bf16 %v5530_v59 }
 0x21d   :  { %4403 = vrot.lane.b32.xlu2 %v5555_v63, %s4583_s6  ;;  %4363 = vrot.lane.b32.xlu0 %v5557_v43, %s4583_s6  ;;  %v5564_v0 = vpop.permute.xlu1 %4188  ;;  %v4219_v6 = vpop.permute.xlu2 %4218 }
 0x21e   :  { %v5566_v48 = vpop.permute.xlu0 %4198  ;;  %v4221_v41 = vunpack.i.h.bf16 %v4219_v6  ;;  %v4220_v8 = vunpack.i.l.bf16 %v4219_v6 }
 0x220   :  { %v1802_v10 = vsel %vm389_vm12, %v4146_v5, %v4221_v41  ;;  %v1806_v55 = vsel %vm389_vm12, %v4221_v41, %v4146_v5  ;;  %v1801_v13 = vsel %vm389_vm12, %v4145_v7, %v4220_v8  ;;  %v1805_v14 = vsel %vm389_vm12, %v4220_v8, %v4145_v7 }
 0x221   :  { %v1812_v39 = vsel %vm102_vm11, %v1806_v55, 0.0  ;;  %v1810_v15 = vsel %vm102_vm11, %v1805_v14, 0.0 }
 0x222   :  { %v1818_v12 = vpack.c.bf16 %v1812_v39, %v1802_v10  ;;  %v1817_v53 = vpack.c.bf16 %v1810_v15, %v1801_v13 }
 0x224   :  { %4398 = vrot.lane.b32.xlu1 %v5434_v42, %s4580_s28  ;;  %1822 = vst [vmem:[#allocation2 + $0x1d0] sm:$0xff] %v1818_v12 }
 0x225   :  { %4408 = vrot.lane.b32.xlu2 %v5555_v63, %s4585_s8  ;;  %4393 = vrot.lane.b32.xlu0 %v5557_v43, %s4585_s8  ;;  %1821 = vst [vmem:[#allocation2 + $0x1c0] sm:$0xff] %v1817_v53  ;;  %v5586_v9 = vpop.permute.xlu1 %4203  ;;  %v4229_v16 = vpop.permute.xlu2 %4228 }
 0x226   :  { %v5588_v24 = vpop.permute.xlu0 %4208  ;;  %v4231_v25 = vunpack.i.h.bf16 %v4229_v16  ;;  %v4230_v26 = vunpack.i.l.bf16 %v4229_v16 }
 0x228   :  { %v1690_v42 = vsel %vm274_vm8, %v4161_v56, %v4231_v25  ;;  %v1694_v29 = vsel %vm274_vm8, %v4231_v25, %v4161_v56  ;;  %v1689_v31 = vsel %vm274_vm8, %v4160_v23, %v4230_v26  ;;  %v1693_v28 = vsel %vm274_vm8, %v4230_v26, %v4160_v23 }
 0x229   :  { %v1698_v36 = vpack.c.bf16 %v1690_v42, %v1694_v29  ;;  %v1697_v37 = vpack.c.bf16 %v1689_v31, %v1693_v28  ;;  %v4155_v31 = vunpack.i.l.bf16 %v5534_v50 }
 0x22b   :  { %1702 = vst [vmem:[#allocation2 + $0xd0] sm:$0xff] %v1698_v36 }
 0x22c   :  { %4433 = vrot.lane.b32.xlu1 %v4372_v32, %s4582_s3  ;;  %1701 = vst [vmem:[#allocation2 + $0xc0] sm:$0xff] %v1697_v37 }
 0x22d   :  { %4413 = vrot.lane.b32.xlu2 %v4347_v51, %s4580_s28  ;;  %4418 = vrot.lane.b32.xlu0 %v5482_v22, %s4582_s3  ;;  %v4214_v57 = vpop.permute.xlu1 %4213  ;;  %v4249_v44 = vpop.permute.xlu2 %4248 }
 0x22e   :  { %v4216_v33 = vunpack.i.h.bf16 %v4214_v57  ;;  %v4215_v11 = vunpack.i.l.bf16 %v4214_v57  ;;  %v4224_v32 = vpop.permute.xlu0 %4223  ;;  %v4251_v38 = vunpack.i.h.bf16 %v4249_v44  ;;  %v4250_v60 = vunpack.i.l.bf16 %v4249_v44 }
 0x22f   :  { %v4226_v19 = vunpack.i.h.bf16 %v4224_v32  ;;  %v4225_v51 = vunpack.i.l.bf16 %v4224_v32 }
 0x230   :  { %v1610_v22 = vsel %vm192_vm6, %v4141_v40, %v4216_v33  ;;  %v1614_v2 = vsel %vm192_vm6, %v4216_v33, %v4141_v40  ;;  %v1609_v59 = vsel %vm192_vm6, %v4140_v17, %v4215_v11  ;;  %v1613_v62 = vsel %vm192_vm6, %v4215_v11, %v4140_v17 }
 0x231   :  { %v1619_v58 = vsel %vm99_vm5, %v1614_v2, 0.0  ;;  %v1617_v6 = vsel %vm99_vm5, %v1613_v62, 0.0  ;;  %v1570_v5 = vsel %vm151_vm4, %v4151_v30, %v4226_v19  ;;  %v1574_v7 = vsel %vm151_vm4, %v4226_v19, %v4151_v30 }
 0x232   :  { %v1626_v41 = vpack.c.bf16 %v1610_v22, %v1619_v58  ;;  %v1625_v8 = vpack.c.bf16 %v1609_v59, %v1617_v6  ;;  %v1579_v10 = vsel %vm99_vm5, %v1574_v7, 0.0  ;;  %v1569_v55 = vsel %vm151_vm4, %v4150_v18, %v4225_v51 }
 0x233   :  { %v1586_v13 = vpack.c.bf16 %v1570_v5, %v1579_v10  ;;  %v1573_v14 = vsel %vm151_vm4, %v4225_v51, %v4150_v18  ;;  %v1612_v39 = vsel %vm192_vm6, %v4176_v49, %v4251_v38  ;;  %v1616_v15 = vsel %vm192_vm6, %v4251_v38, %v4176_v49 }
 0x234   :  { %4438 = vrot.lane.b32.xlu1 %v5497_v61, %s4588_s11  ;;  %1630 = vst [vmem:[#allocation2 + $0x50] sm:$0xff] %v1626_v41  ;;  %v1577_v12 = vsel %vm99_vm5, %v1573_v14, 0.0  ;;  %v1623_v53 = vsel %vm99_vm5, %v1616_v15, 0.0  ;;  %v1611_v16 = vsel %vm192_vm6, %v4175_v52, %v4250_v60  ;;  %v1615_v56 = vsel %vm192_vm6, %v4250_v60, %v4175_v52 }
 0x235   :  { %4423 = vrot.lane.b32.xlu2 %v5447_v45, %s4582_s3  ;;  %4428 = vrot.lane.b32.xlu0 %v5522_v35, %s4582_s3  ;;  %v4156_v61 = vunpack.i.h.bf16 %v5534_v50  ;;  %1629 = vst [vmem:[#allocation2 + $0x40] sm:$0xff] %v1625_v8  ;;  %v1585_v23 = vpack.c.bf16 %v1569_v55, %v1577_v12  ;;  %v1628_v25 = vpack.c.bf16 %v1612_v39, %v1623_v53  ;;  %v1621_v26 = vsel %vm99_vm5, %v1615_v56, 0.0  ;;  %v4234_v42 = vpop.permute.xlu1 %4233 }
 0x236   :  { %v5652_v29 = vpop.permute.xlu2 %4283  ;;  %1590 = vst [vmem:[#allocation2 + $0x10] sm:$0xff] %v1586_v13  ;;  %v1627_v28 = vpack.c.bf16 %v1611_v16, %v1621_v26  ;;  %v4236_v36 = vunpack.i.h.bf16 %v4234_v42  ;;  %v4235_v45 = vunpack.i.l.bf16 %v4234_v42  ;;  %v4239_v37 = vpop.permute.xlu0 %4238  ;;  %v4165_v35 = vunpack.i.l.bf16 %v5490_v3 }
 0x237   :  { %1589 = vst [vmem:[#allocation2] sm:$0xff] %v1585_v23  ;;  %v4241_v40 = vunpack.i.h.bf16 %v4239_v37  ;;  %v4240_v17 = vunpack.i.l.bf16 %v4239_v37  ;;  %v4186_v59 = vunpack.i.h.bf16 %v5532_v21  ;;  %v4185_v62 = vunpack.i.l.bf16 %v5532_v21 }
 0x238   :  { %1632 = vst [vmem:[#allocation2 + $0x70] sm:$0xff] %v1628_v25  ;;  %v1650_v30 = vsel %vm233_vm7, %v4156_v61, %v4236_v36  ;;  %v1654_v18 = vsel %vm233_vm7, %v4236_v36, %v4156_v61  ;;  %v1649_v50 = vsel %vm233_vm7, %v4155_v31, %v4235_v45  ;;  %v1653_v57 = vsel %vm233_vm7, %v4235_v45, %v4155_v31 }
 0x239   :  { %1631 = vst [vmem:[#allocation2 + $0x60] sm:$0xff] %v1627_v28  ;;  %v1659_v44 = vsel %vm99_vm5, %v1654_v18, 0.0  ;;  %v1657_v49 = vsel %vm99_vm5, %v1653_v57, 0.0  ;;  %v1762_v52 = vsel %vm348_vm10, %v4166_v34, %v4241_v40  ;;  %v1766_v33 = vsel %vm348_vm10, %v4241_v40, %v4166_v34 }
 0x23a   :  { %v1666_v11 = vpack.c.bf16 %v1650_v30, %v1659_v44  ;;  %v1665_v32 = vpack.c.bf16 %v1649_v50, %v1657_v49  ;;  %v1772_v19 = vsel %vm102_vm11, %v1766_v33, 0.0  ;;  %v1761_v51 = vsel %vm348_vm10, %v4165_v35, %v4240_v17 }
 0x23b   :  { %v1778_v38 = vpack.c.bf16 %v1772_v19, %v1762_v52  ;;  %v1765_v60 = vsel %vm348_vm10, %v4240_v17, %v4165_v35  ;;  %v4171_v5 = vunpack.i.h.bf16 %v5502_v20  ;;  %v4181_v31 = vunpack.i.h.bf16 %v5510_v47 }
 0x23c   :  { %4453 = vrot.lane.b32.xlu1 %v5557_v43, %s4588_s11  ;;  %1670 = vst [vmem:[#allocation2 + $0x90] sm:$0xff] %v1666_v11  ;;  %v1770_v3 = vsel %vm102_vm11, %v1765_v60, 0.0  ;;  %v4180_v28 = vunpack.i.l.bf16 %v5510_v47  ;;  %v4196_v57 = vunpack.i.h.bf16 %v5541_v54  ;;  %v4195_v44 = vunpack.i.l.bf16 %v5541_v54 }
 0x23d   :  { %4443 = vrot.lane.b32.xlu2 %v5555_v63, %s4588_s11  ;;  %4448 = vrot.lane.b32.xlu0 %v5449_v46, %s4588_s11  ;;  %1669 = vst [vmem:[#allocation2 + $0x80] sm:$0xff] %v1665_v32  ;;  %v1777_v34 = vpack.c.bf16 %v1770_v3, %v1761_v51  ;;  %v4259_v2 = vpop.permute.xlu1 %4258  ;;  %v4170_v63 = vunpack.i.l.bf16 %v5502_v20  ;;  %v4201_v49 = vunpack.i.h.bf16 %v5566_v48  ;;  %v4200_v52 = vunpack.i.l.bf16 %v5566_v48 }
 0x23e   :  { %v5690_v22 = vpop.permute.xlu2 %4288  ;;  %1782 = vst [vmem:[#allocation2 + $0x190] sm:$0xff] %v1778_v38  ;;  %v4244_v43 = vpop.permute.xlu0 %4243  ;;  %v4261_v58 = vunpack.i.h.bf16 %v4259_v2  ;;  %v4260_v6 = vunpack.i.l.bf16 %v4259_v2  ;;  %v4206_v32 = vunpack.i.h.bf16 %v5586_v9  ;;  %v4205_v19 = vunpack.i.l.bf16 %v5586_v9 }
 0x23f   :  { %1781 = vst [vmem:[#allocation2 + $0x180] sm:$0xff] %v1777_v34  ;;  %v4246_v7 = vunpack.i.h.bf16 %v4244_v43  ;;  %v4245_v46 = vunpack.i.l.bf16 %v4244_v43 }
 0x240   :  { %v1572_v41 = vsel %vm151_vm4, %v4186_v59, %v4261_v58  ;;  %v1576_v8 = vsel %vm151_vm4, %v4261_v58, %v4186_v59  ;;  %v1571_v21 = vsel %vm151_vm4, %v4185_v62, %v4260_v6  ;;  %v1575_v10 = vsel %vm151_vm4, %v4260_v6, %v4185_v62 }
 0x241   :  { %v1842_v55 = vsel %vm6154_vm1, %v4171_v5, %v4246_v7  ;;  %v1846_v20 = vsel %vm6155_vm2, %v4246_v7, %v4171_v5  ;;  %v1841_v13 = vsel %vm6156_vm3, %v4170_v63, %v4245_v46  ;;  %v1845_v14 = vsel %vm6157_vm13, %v4245_v46, %v4170_v63 }
 0x242   :  { %v1852_v39 = vsel %vm102_vm11, %v1846_v20, 0.0  ;;  %v1850_v15 = vsel %vm102_vm11, %v1845_v14, 0.0  ;;  %v1583_v12 = vsel %vm99_vm5, %v1576_v8, 0.0  ;;  %v1581_v53 = vsel %vm99_vm5, %v1575_v10, 0.0 }
 0x243   :  { %v1858_v16 = vpack.c.bf16 %v1852_v39, %v1842_v55  ;;  %v1857_v56 = vpack.c.bf16 %v1850_v15, %v1841_v13  ;;  %v1588_v61 = vpack.c.bf16 %v1572_v41, %v1583_v12  ;;  %v1587_v23 = vpack.c.bf16 %v1571_v21, %v1581_v53 }
 0x244   :  { %v4211_v15 = vunpack.i.h.bf16 %v5588_v24  ;;  %v4210_v12 = vunpack.i.l.bf16 %v5588_v24  ;;  %vm6162_vm1 = vcmp.lt.s32.totalorder %v4627_v1, 127 }
 0x245   :  { %1862 = vst [vmem:[#allocation2 + $0x210] sm:$0xff] %v1858_v16  ;;  %v5722_v26 = vpop.permute.xlu1 %4278  ;;  %vm6163_vm2 = vmmov %vm6162_vm1 }
 0x246   :  { %v5720_v25 = vpop.permute.xlu2 %4298  ;;  %1861 = vst [vmem:[#allocation2 + $0x200] sm:$0xff] %v1857_v56  ;;  %v4254_v42 = vpop.permute.xlu0 %4253  ;;  %vm6164_vm3 = vmmov %vm6162_vm1 }
 0x247   :  { %1592 = vst [vmem:[#allocation2 + $0x30] sm:$0xff] %v1588_v61  ;;  %v4256_v36 = vunpack.i.h.bf16 %v4254_v42  ;;  %v4255_v45 = vunpack.i.l.bf16 %v4254_v42  ;;  %vm6165_vm13 = vmmov %vm6162_vm1 }
 0x248   :  { %1591 = vst [vmem:[#allocation2 + $0x20] sm:$0xff] %v1587_v23 }
 0x249   :  { %v1804_v37 = vsel %vm389_vm12, %v4181_v31, %v4256_v36  ;;  %v1808_v35 = vsel %vm389_vm12, %v4256_v36, %v4181_v31  ;;  %v1803_v40 = vsel %vm389_vm12, %v4180_v28, %v4255_v45  ;;  %v1807_v17 = vsel %vm389_vm12, %v4255_v45, %v4180_v28 }
 0x24a   :  { %v1816_v30 = vsel %vm102_vm11, %v1808_v35, 0.0  ;;  %v1814_v47 = vsel %vm102_vm11, %v1807_v17, 0.0  ;;  %v4191_v45 = vunpack.i.h.bf16 %v5564_v0 }
 0x24b   :  { %v1820_v18 = vpack.c.bf16 %v1816_v30, %v1804_v37  ;;  %v1819_v50 = vpack.c.bf16 %v1814_v47, %v1803_v40  ;;  %v4190_v37 = vunpack.i.l.bf16 %v5564_v0 }
 0x24d   :  { %1824 = vst [vmem:[#allocation2 + $0x1f0] sm:$0xff] %v1820_v18  ;;  %v4304_v11 = vpop.permute.xlu1 %4303 }
 0x24e   :  { %v4309_v33 = vpop.permute.xlu2 %4308  ;;  %1823 = vst [vmem:[#allocation2 + $0x1e0] sm:$0xff] %v1819_v50  ;;  %v4264_v60 = vpop.permute.xlu0 %4263  ;;  %v4306_v2 = vunpack.i.h.bf16 %v4304_v11  ;;  %v4305_v59 = vunpack.i.l.bf16 %v4304_v11 }
 0x24f   :  { %v4311_v51 = vunpack.i.h.bf16 %v4309_v33  ;;  %v4310_v38 = vunpack.i.l.bf16 %v4309_v33  ;;  %v4266_v3 = vunpack.i.h.bf16 %v4264_v60  ;;  %v4265_v34 = vunpack.i.l.bf16 %v4264_v60  ;;  %v3788_v60 = vld [vmem:[#allocation2 + $0x20c] sm:$0xf0] }
 0x250   :  { %v1764_v21 = vsel %vm348_vm10, %v4201_v49, %v4306_v2  ;;  %v1768_v10 = vsel %vm348_vm10, %v4306_v2, %v4201_v49  ;;  %v1763_v55 = vsel %vm348_vm10, %v4200_v52, %v4305_v59  ;;  %v1767_v14 = vsel %vm348_vm10, %v4305_v59, %v4200_v52  ;;  %v3780_v49 = vld [vmem:[#allocation2 + $0x1cc] sm:$0xf0]  ;;  %v3600_v2 = vld [vmem:[#allocation2 + $0x200] sm:$0xf] }
 0x251   :  { %v1844_v54 = vsel %vm6158_vm14, %v4206_v32, %v4311_v51  ;;  %v1848_v48 = vsel %vm6159_vm15, %v4311_v51, %v4206_v32  ;;  %v1843_v62 = vsel %vm6160_vm0, %v4205_v19, %v4310_v38  ;;  %v1847_v9 = vsel %vm6161_vm9, %v4310_v38, %v4205_v19  ;;  %vm6166_vm14 = vmmov %vm6162_vm1 }
 0x252   :  { %v1856_v43 = vsel %vm102_vm11, %v1848_v48, 0.0  ;;  %v1854_v58 = vsel %vm102_vm11, %v1847_v9, 0.0  ;;  %v1692_v6 = vsel %vm274_vm8, %v4196_v57, %v4266_v3  ;;  %v1696_v5 = vsel %vm274_vm8, %v4266_v3, %v4196_v57  ;;  %vm6167_vm15 = vmmov %vm6162_vm1 }
 0x253   :  { %v1860_v63 = vpack.c.bf16 %v1856_v43, %v1844_v54  ;;  %v1859_v7 = vpack.c.bf16 %v1854_v58, %v1843_v62  ;;  %v1700_v46 = vpack.c.bf16 %v1692_v6, %v1696_v5  ;;  %v1691_v41 = vsel %vm274_vm8, %v4195_v44, %v4265_v34  ;;  %vm6168_vm0 = vmmov %vm6162_vm1 }
 0x254   :  { %v1695_v8 = vsel %vm274_vm8, %v4265_v34, %v4195_v44  ;;  %v1776_v13 = vsel %vm102_vm11, %v1768_v10, 0.0  ;;  %v3784_v39 = vld [vmem:[#allocation2 + $0x1ec] sm:$0xf0]  ;;  %v1774_v16 = vsel %vm102_vm11, %v1767_v14, 0.0  ;;  %v3568_v44 = vld [vmem:[#allocation2 + $0x1c0] sm:$0xf]  ;;  %v4281_v9 = vunpack.i.h.bf16 %v5722_v26  ;;  %vm6169_vm9 = vmmov %vm6168_vm0 }
 0x255   :  { %1864 = vst [vmem:[#allocation2 + $0x230] sm:$0xff] %v1860_v63  ;;  %v1699_v20 = vpack.c.bf16 %v1691_v41, %v1695_v8  ;;  %v1780_v53 = vpack.c.bf16 %v1776_v13, %v1764_v21  ;;  %v4314_v56 = vpop.permute.xlu1 %4313  ;;  %v3584_v61 = vld [vmem:[#allocation2 + $0x1e0] sm:$0xf]  ;;  %v1779_v23 = vpack.c.bf16 %v1774_v16, %v1763_v55  ;;  %v3569_v3 = vor.u32 %v3780_v49, %v3568_v44 }
 0x256   :  { %1863 = vst [vmem:[#allocation2 + $0x220] sm:$0xff] %v1859_v7  ;;  %v4269_v42 = vpop.permute.xlu0 %4268  ;;  %v4316_v31 = vunpack.i.h.bf16 %v4314_v56  ;;  %v4315_v28 = vunpack.i.l.bf16 %v4314_v56  ;;  %v3585_v36 = vor.u32 %v3784_v39, %v3584_v61  ;;  %v4280_v43 = vunpack.i.l.bf16 %v5722_v26  ;;  %v3748_v39 = vld [vmem:[#allocation2 + $0xcc] sm:$0xf0]  ;;  %v3440_v56 = vld [vmem:[#allocation2 + $0xc0] sm:$0xf] }
 0x257   :  { %1704 = vst [vmem:[#allocation2 + $0xf0] sm:$0xff] %v1700_v46  ;;  %v4271_v35 = vunpack.i.h.bf16 %v4269_v42  ;;  %v4270_v24 = vunpack.i.l.bf16 %v4269_v42  ;;  %v3601_v26 = vor.u32 %v3788_v60, %v3600_v2  ;;  %v3746_v61 = vld [vmem:[#allocation2 + $0xc4] sm:$0xf] }
 0x258   :  { %1703 = vst [vmem:[#allocation2 + $0xe0] sm:$0xff] %v1699_v20  ;;  %v1732_v40 = vsel %vm6162_vm1, %v4211_v15, %v4316_v31  ;;  %v1736_v17 = vsel %vm6163_vm2, %v4316_v31, %v4211_v15  ;;  %v1731_v30 = vsel %vm6164_vm3, %v4210_v12, %v4315_v28  ;;  %v1735_v47 = vsel %vm6165_vm13, %v4315_v28, %v4210_v12  ;;  %vm6171_vm2 = vmmov %vm6168_vm0 }
 0x259   :  { %1784 = vst [vmem:[#allocation2 + $0x1b0] sm:$0xff] %v1780_v53  ;;  %v1652_v0 = vsel %vm233_vm7, %v4191_v45, %v4271_v35  ;;  %v1656_v18 = vsel %vm233_vm7, %v4271_v35, %v4191_v45  ;;  %v1651_v50 = vsel %vm233_vm7, %v4190_v37, %v4270_v24  ;;  %v1655_v57 = vsel %vm233_vm7, %v4270_v24, %v4190_v37  ;;  %v3536_v24 = vld [vmem:[#allocation2 + $0x180] sm:$0xf]  ;;  %vm6172_vm3 = vmmov %vm6168_vm0 }
 0x25a   :  { %1783 = vst [vmem:[#allocation2 + $0x1a0] sm:$0xff] %v1779_v23  ;;  %v1663_v52 = vsel %vm99_vm5, %v1656_v18, 0.0  ;;  %v1661_v33 = vsel %vm99_vm5, %v1655_v57, 0.0  ;;  %v1740_v11 = vpack.c.bf16 %v1736_v17, %v1732_v40  ;;  %2688 = vmatpush.bf16.msrb.mxu0 %v3585_v36  ;;  %v1739_v51 = vpack.c.bf16 %v1735_v47, %v1731_v30  ;;  %v3442_v23 = vld [vmem:[#allocation2 + $0xd0] sm:$0xf0]  ;;  %vm6173_vm13 = vmmov %vm6168_vm0 }
 0x25b   :  { %v1668_v32 = vpack.c.bf16 %v1652_v0, %v1663_v52  ;;  %v1667_v19 = vpack.c.bf16 %v1651_v50, %v1661_v33  ;;  %v3772_v40 = vld [vmem:[#allocation2 + $0x18c] sm:$0xf0]  ;;  %v3441_v0 = vor.u32 %v3748_v39, %v3440_v56  ;;  %v3445_v18 = vor.u32 %v3746_v61, %v3442_v23  ;;  %v3392_v39 = vld [vmem:[#allocation2 + $0x60] sm:$0xf] }
 0x25c   :  { %v3792_v38 = vld [vmem:[#allocation2 + $0x22c] sm:$0xf0]  ;;  %1744 = vst [vmem:[#allocation2 + $0x170] sm:$0xff] %v1740_v11  ;;  %vm6170_vm1 = vcmask 261120  }
 0x25d   :  { %v3616_v34 = vld [vmem:[#allocation2 + $0x220] sm:$0xf]  ;;  %1672 = vst [vmem:[#allocation2 + $0xb0] sm:$0xff] %v1668_v32 }
 0x25e   :  { %v3752_v59 = vld [vmem:[#allocation2 + $0xec] sm:$0xf0]  ;;  %v3458_v54 = vld [vmem:[#allocation2 + $0xf0] sm:$0xf0]  ;;  %v4319_v48 = vpop.permute.xlu1 %4318  ;;  %v3617_v62 = vor.u32 %v3792_v38, %v3616_v34  ;;  %1671 = vst [vmem:[#allocation2 + $0xa0] sm:$0xff] %v1667_v19  ;;  %2689 = vmatpush.bf16.msrb.mxu0 %v3569_v3  ;;  %v3537_v34 = vor.u32 %v3772_v40, %v3536_v24 }
 0x25f   :  { %v4369_v58 = vpop.permute.xlu2 %4368  ;;  %v4274_v6 = vpop.permute.xlu0 %4273  ;;  %v3456_v5 = vld [vmem:[#allocation2 + $0xe0] sm:$0xf]  ;;  %v3750_v63 = vld [vmem:[#allocation2 + $0xe4] sm:$0xf]  ;;  %v4321_v7 = vunpack.i.h.bf16 %v4319_v48  ;;  %v4320_v46 = vunpack.i.l.bf16 %v4319_v48  ;;  %1743 = vst [vmem:[#allocation2 + $0x160] sm:$0xff] %v1739_v51 }
 0x260   :  { %v4371_v41 = vunpack.i.h.bf16 %v4369_v58  ;;  %v4370_v8 = vunpack.i.l.bf16 %v4369_v58  ;;  %v4276_v21 = vunpack.i.h.bf16 %v4274_v6  ;;  %v4275_v10 = vunpack.i.l.bf16 %v4274_v6  ;;  %2713 = vmatpush.bf16.msrb.mxu1 %v3617_v62  ;;  %v3776_v14 = vld [vmem:[#allocation2 + $0x1ac] sm:$0xf0]  ;;  %v3488_v24 = vld [vmem:[#allocation2 + $0x120] sm:$0xf]  ;;  %v5842_v40 = vld [vmem:[#allocation2 + $0x1c4] sm:$0xf] }
 0x261   :  { %v3457_v55 = vor.u32 %v3752_v59, %v3456_v5  ;;  %v3461_v20 = vor.u32 %v3750_v63, %v3458_v54  ;;  %v3552_v13 = vld [vmem:[#allocation2 + $0x1a0] sm:$0xf]  ;;  %v3740_v62 = vld [vmem:[#allocation2 + $0x8c] sm:$0xf0]  ;;  %v3738_v63 = vld [vmem:[#allocation2 + $0x84] sm:$0xf] }
 0x262   :  { %v1729_v15 = vsel %vm6166_vm14, %v4275_v10, %v4280_v43  ;;  %v1730_v12 = vsel %vm6167_vm15, %v4276_v21, %v4281_v9  ;;  %v1733_v53 = vsel %vm6168_vm0, %v4280_v43, %v4275_v10  ;;  %v1734_v16 = vsel %vm6169_vm9, %v4281_v9, %v4276_v21  ;;  %v3408_v5 = vld [vmem:[#allocation2 + $0x80] sm:$0xf]  ;;  %v3736_v21 = vld [vmem:[#allocation2 + $0x6c] sm:$0xf0]  ;;  %v3394_v10 = vld [vmem:[#allocation2 + $0x70] sm:$0xf0] }
 0x263   :  { %v1737_v42 = vpack.c.bf16 %v1733_v53, %v1729_v15  ;;  %v1738_v31 = vpack.c.bf16 %v1734_v16, %v1730_v12  ;;  %2669 = vmatpush.bf16.msrb.mxu2 %v3457_v55  ;;  %2726 = vmatpush.bf16.msrb.mxu3 %v3461_v20  ;;  %v2132_v28 = vsel %vm389_vm12, %v4321_v7, %v4371_v41  ;;  %v3768_v17 = vld [vmem:[#allocation2 + $0x16c] sm:$0xf0]  ;;  %v3328_v55 = vld [vmem:[#allocation9 + $0x8] sm:$0xf]  ;;  %v3734_v12 = vld [vmem:[#allocation2 + $0x64] sm:$0xf] }
 0x264   :  { %v2136_v36 = vsel %vm389_vm12, %v4371_v41, %v4321_v7  ;;  %v2131_v45 = vsel %vm389_vm12, %v4320_v46, %v4370_v8  ;;  %v2135_v37 = vsel %vm389_vm12, %v4370_v8, %v4320_v46  ;;  %v3553_v35 = vor.u32 %v3776_v14, %v3552_v13  ;;  %2714 = vmatpush.bf16.msrb.mxu1 %v3601_v26  ;;  %v3744_v50 = vld [vmem:[#allocation2 + $0xac] sm:$0xf0]  ;;  %v3426_v3 = vld [vmem:[#allocation2 + $0xb0] sm:$0xf0]  ;;  %v3718_v53 = vld [vmem:[#allocation9 + $0x10] sm:$0xf0] }
 0x265   :  { %1741 = vst [vmem:[#allocation2 + $0x140] sm:$0xff] %v1737_v42  ;;  %v2144_v30 = vsel %vm102_vm11, %v2136_v36, 0.0  ;;  %v2142_v47 = vsel %vm102_vm11, %v2135_v37, 0.0  ;;  %v3424_v52 = vld [vmem:[#allocation2 + $0xa0] sm:$0xf]  ;;  %v3409_v20 = vor.u32 %v3740_v62, %v3408_v5  ;;  %v5838_v61 = vor.u32 %v3718_v53, %v3328_v55  ;;  %vm6174_vm14 = vmmov %vm6168_vm0 }
 0x266   :  { %1742 = vst [vmem:[#allocation2 + $0x150] sm:$0xff] %v1738_v31  ;;  %v2148_v57 = vpack.c.bf16 %v2144_v30, %v2132_v28  ;;  %v2147_v44 = vpack.c.bf16 %v2142_v47, %v2131_v45  ;;  %2690 = vmatpush.bf16.msrb.mxu0 %v3553_v35  ;;  %v4329_v49 = vpop.permute.xlu1 %4328  ;;  %v3742_v33 = vld [vmem:[#allocation2 + $0xa4] sm:$0xf]  ;;  %v3425_v38 = vor.u32 %v3744_v50, %v3424_v52  ;;  %v3520_v60 = vld [vmem:[#allocation2 + $0x160] sm:$0xf]  ;;  %vm6175_vm15 = vmmov %vm6170_vm1 }
 0x267   :  { %2670 = vmatpush.bf16.msrb.mxu2 %v3441_v0  ;;  %2727 = vmatpush.bf16.msrb.mxu3 %v3445_v18  ;;  %v4374_v11 = vpop.permute.xlu2 %4373  ;;  %v5822_v32 = vpop.permute.xlu0 %4293  ;;  %v4331_v19 = vunpack.i.h.bf16 %v4329_v49  ;;  %v4330_v51 = vunpack.i.l.bf16 %v4329_v49  ;;  %v3521_v54 = vor.u32 %v3768_v17, %v3520_v60  ;;  %v3429_v48 = vor.u32 %v3742_v33, %v3426_v3  ;;  %v3410_v7 = vld [vmem:[#allocation2 + $0x90] sm:$0xf0]  ;;  %v3760_v31 = vld [vmem:[#allocation2 + $0x12c] sm:$0xf0]  ;;  %v3376_v36 = vld [vmem:[#allocation2 + $0x40] sm:$0xf] }
 0x268   :  { %2152 = vst [vmem:[#allocation2 + $0x1f8] sm:$0xff] %v2148_v57  ;;  %v4376_v2 = vunpack.i.h.bf16 %v4374_v11  ;;  %v4375_v59 = vunpack.i.l.bf16 %v4374_v11  ;;  %v3413_v13 = vor.u32 %v3738_v63, %v3410_v7  ;;  %v3393_v23 = vor.u32 %v3736_v21, %v3392_v39  ;;  %v3732_v28 = vld [vmem:[#allocation2 + $0x4c] sm:$0xf0]  ;;  %3630 = vmatmul.msk.bf16.vlgmr.msrb.gmra.mxu1 %vm6170_vm1, %v5838_v61  ;;  %v3730_v45 = vld [vmem:[#allocation2 + $0x44] sm:$0xf] }
 0x269   :  { %2151 = vst [vmem:[#allocation2 + $0x1e8] sm:$0xff] %v2147_v44  ;;  %v3397_v42 = vor.u32 %v3734_v12, %v3394_v10  ;;  %v3378_v37 = vld [vmem:[#allocation2 + $0x50] sm:$0xf0]  ;;  %v3756_v35 = vld [vmem:[#allocation2 + $0x10c] sm:$0xf0]  ;;  %v3489_v30 = vor.u32 %v3760_v31, %v3488_v24  ;;  %v3377_v44 = vor.u32 %v3732_v28, %v3376_v36  ;;  %v4285_v31 = vunpack.i.l.bf16 %v5652_v29 }
 0x26a   :  { %2691 = vmatpush.bf16.msrb.mxu0 %v3537_v34  ;;  %v2020_v9 = vsel %vm274_vm8, %v4331_v19, %v4376_v2  ;;  %v2024_v43 = vsel %vm274_vm8, %v4376_v2, %v4331_v19  ;;  %v2019_v58 = vsel %vm274_vm8, %v4330_v51, %v4375_v59  ;;  %v2023_v6 = vsel %vm274_vm8, %v4375_v59, %v4330_v51  ;;  %v5844_v17 = vld [vmem:[#allocation2 + $0x1d0] sm:$0xf0]  ;;  %v3472_v47 = vld [vmem:[#allocation2 + $0x100] sm:$0xf]  ;;  %v3728_v50 = vld [vmem:[#allocation2 + $0x2c] sm:$0xf0] }
 0x26b   :  { %v2028_v46 = vpack.c.bf16 %v2020_v9, %v2024_v43  ;;  %v2027_v41 = vpack.c.bf16 %v2019_v58, %v2023_v6  ;;  %2671 = vmatpush.bf16.msrb.mxu2 %v3425_v38  ;;  %2728 = vmatpush.bf16.msrb.mxu3 %v3429_v48  ;;  %v3360_v18 = vld [vmem:[#allocation2 + $0x20] sm:$0xf]  ;;  %v3362_v57 = vld [vmem:[#allocation2 + $0x30] sm:$0xf0]  ;;  %v3381_v49 = vor.u32 %v3730_v45, %v3378_v37  ;;  %v3726_v33 = vld [vmem:[#allocation2 + $0x24] sm:$0xf]  ;;  %v4286_v34 = vunpack.i.h.bf16 %v5652_v29 }
 0x26c   :  { %v3504_v8 = vld [vmem:[#allocation2 + $0x140] sm:$0xf]  ;;  %v3618_v11 = vld [vmem:[#allocation2 + $0x230] sm:$0xf0]  ;;  %v3790_v38 = vld [vmem:[#allocation2 + $0x224] sm:$0xf]  ;;  %v3573_v43 = vor.u32 %v5842_v40, %v5844_v17  ;;  %v3365_v21 = vor.u32 %v3726_v33, %v3362_v57  ;;  %v4291_v28 = vunpack.i.h.bf16 %v5690_v22  ;;  %v4296_v57 = vunpack.i.h.bf16 %v5822_v32 }
 0x26d   :  { %2032 = vst [vmem:[#allocation2 + $0xf8] sm:$0xff] %v2028_v46  ;;  %v3764_v14 = vld [vmem:[#allocation2 + $0x14c] sm:$0xf0]  ;;  %v3716_v60 = vld [vmem:[#allocation9 + $0x4] sm:$0xf]  ;;  %v3621_v10 = vor.u32 %v3790_v38, %v3618_v11  ;;  %v4295_v33 = vunpack.i.l.bf16 %v5822_v32 }
 0x26e   :  { %2031 = vst [vmem:[#allocation2 + $0xe8] sm:$0xff] %v2027_v41  ;;  %2692 = vmatpush.bf16.msrb.mxu0 %v3521_v54  ;;  %v5832_v26 = vpop.permute.xlu1 %4338  ;;  %v3505_v15 = vor.u32 %v3764_v14, %v3504_v8  ;;  %v3322_v3 = vld [vmem:[#allocation9 + $0xc] sm:$0xf0]  ;;  %v3473_v54 = vor.u32 %v3756_v35, %v3472_v47  ;;  %v3724_v62 = vld [vmem:[#allocation2 + $0xc] sm:$0xf0]  ;;  %v3361_v8 = vor.u32 %v3728_v50, %v3360_v18 }
 0x26f   :  { %2672 = vmatpush.bf16.msrb.mxu2 %v3409_v20  ;;  %2729 = vmatpush.bf16.msrb.mxu3 %v3413_v13  ;;  %v5834_v16 = vpop.permute.xlu2 %4388  ;;  %v5836_v56 = vpop.permute.xlu0 %4323  ;;  %v3344_v48 = vld [vmem:[#allocation2] sm:$0xf]  ;;  %v3346_v9 = vld [vmem:[#allocation2 + $0x10] sm:$0xf0]  ;;  %v4341_v58 = vunpack.i.h.bf16 %v5832_v26  ;;  %v4340_v6 = vunpack.i.l.bf16 %v5832_v26  ;;  %v3722_v7 = vld [vmem:[#allocation2 + $0x4] sm:$0xf]  ;;  %v5855_v55 = vor.u32 %v3716_v60, %v3322_v3 }
 0x270   :  { %v3786_v46 = vld [vmem:[#allocation2 + $0x204] sm:$0xf]  ;;  %v3602_v41 = vld [vmem:[#allocation2 + $0x210] sm:$0xf0]  ;;  %v3320_v14 = vld [vmem:[#allocation9] sm:$0xf]  ;;  %v3345_v47 = vor.u32 %v3724_v62, %v3344_v48 }
 0x271   :  { %v3782_v20 = vld [vmem:[#allocation2 + $0x1e4] sm:$0xf]  ;;  %v3586_v13 = vld [vmem:[#allocation2 + $0x1f0] sm:$0xf0]  ;;  %v3592_v53 = vld [vmem:[#allocation2 + $0x1e8] sm:$0xf] }
 0x272   :  { %2693 = vmatpush.bf16.msrb.mxu0 %v3505_v15  ;;  %v3340_v18 = vld [vmem:[#allocation9 + $0x20] sm:$0xf]  ;;  %v3721_v50 = vld [vmem:[#allocation9 + $0x28] sm:$0xf0]  ;;  %v3770_v29 = vld [vmem:[#allocation2 + $0x184] sm:$0xf] }
 0x273   :  { %2673 = vmatpush.bf16.msrb.mxu2 %v3393_v23  ;;  %2730 = vmatpush.bf16.msrb.mxu3 %v3397_v42  ;;  %v3785_v23 = vld [vmem:[#allocation2 + $0x1f4] sm:$0xf0]  ;;  %v3717_v42 = vld [vmem:[#allocation9 + $0x8] sm:$0xf0] }
 0x274   :  { %v3753_v0 = vld [vmem:[#allocation2 + $0xf4] sm:$0xf0]  ;;  %v3466_v35 = vld [vmem:[#allocation2 + $0xf8] sm:$0xf0] }
 0x275   :  { %v3464_v52 = vld [vmem:[#allocation2 + $0xe8] sm:$0xf]  ;;  %v3751_v37 = vld [vmem:[#allocation2 + $0xec] sm:$0xf] }
 0x276   :  { %2694 = vmatpush.bf16.msrb.mxu0 %v3489_v30  ;;  %v5846_v19 = vpop.permute.xlu1 %4343  ;;  %v3465_v51 = vor.u32 %v3753_v0, %v3464_v52  ;;  %v3349_v0 = vor.u32 %v3722_v7, %v3346_v9  ;;  %v5873_v52 = vor.u32 %v3717_v42, %v3320_v14  ;;  %v5877_v38 = vor.u32 %v3751_v37, %v3466_v35  ;;  %v3719_v35 = vld [vmem:[#allocation9 + $0x1c] sm:$0xf] }
 0x277   :  { %2674 = vmatpush.bf16.msrb.mxu2 %v3377_v44  ;;  %2731 = vmatpush.bf16.msrb.mxu3 %v3381_v49  ;;  %v4404_v2 = vpop.permute.xlu2 %4403  ;;  %v5849_v59 = vpop.permute.xlu0 %4333  ;;  %v3605_v44 = vor.u32 %v3786_v46, %v3602_v41  ;;  %v3589_v49 = vor.u32 %v3782_v20, %v3586_v13  ;;  %v4346_v11 = vunpack.i.h.bf16 %v5846_v19  ;;  %v4345_v3 = vunpack.i.l.bf16 %v5846_v19 }
 0x278   :  { %v4406_v5 = vunpack.i.h.bf16 %v4404_v2  ;;  %v4405_v63 = vunpack.i.l.bf16 %v4404_v2  ;;  %2783 = vmatpush.bf16.msra.mxu1 %v3465_v51  ;;  %v3593_v51 = vor.u32 %v3785_v23, %v3592_v53  ;;  %v5880_v9 = vor.u32 %v3721_v50, %v3340_v18 }
 0x27a   :  { %v1979_v39 = vsel %vm233_vm7, %v4340_v6, %v4405_v63  ;;  %v1980_v26 = vsel %vm233_vm7, %v4341_v58, %v4406_v5  ;;  %v1983_v15 = vsel %vm233_vm7, %v4405_v63, %v4340_v6  ;;  %v1984_v12 = vsel %vm233_vm7, %v4406_v5, %v4341_v58  ;;  %2695 = vmatpush.bf16.msrb.mxu0 %v3473_v54 }
 0x27b   :  { %v1989_v36 = vsel %vm99_vm5, %v1983_v15, 0.0  ;;  %v1991_v45 = vsel %vm99_vm5, %v1984_v12, 0.0  ;;  %2675 = vmatpush.bf16.msrb.mxu2 %v3361_v8  ;;  %2732 = vmatpush.bf16.msrb.mxu3 %v3365_v21  ;;  %v4290_v63 = vunpack.i.l.bf16 %v5690_v22  ;;  %v3554_v15 = vld [vmem:[#allocation2 + $0x1b0] sm:$0xf0]  ;;  %v3332_v22 = vld [vmem:[#allocation9 + $0x18] sm:$0xf] }
 0x27c   :  { %v1995_v24 = vpack.c.bf16 %v1979_v39, %v1989_v36  ;;  %v1996_v30 = vpack.c.bf16 %v1980_v26, %v1991_v45  ;;  %v3774_v26 = vld [vmem:[#allocation2 + $0x1a4] sm:$0xf]  ;;  %3631 = vmatmul.msk.bf16.gmra.mxu1 %vm6175_vm15, %v5880_v9 }
 0x27d   :  { %2696 = vmatmul.bf16.vlgmr.msrb.gmra.mxu0 %v5855_v55 }
 0x27e   :  { %2770 = vmatpush.bf16.msra.mxu0 %v3621_v10  ;;  %1999 = vst [vmem:[#allocation2 + $0xa8] sm:$0xff] %v1995_v24  ;;  %v4359_v60 = vpop.permute.xlu1 %4358  ;;  %v3334_v24 = vld [vmem:[#allocation9 + $0x24] sm:$0xf0] }
 0x27f   :  { %2000 = vst [vmem:[#allocation2 + $0xb8] sm:$0xff] %v1996_v30  ;;  %2676 = vmatpush.bf16.msrb.mxu2 %v3345_v47  ;;  %2733 = vmatpush.bf16.msrb.mxu3 %v3349_v0  ;;  %v4409_v2 = vpop.permute.xlu2 %4408  ;;  %v4349_v54 = vpop.permute.xlu0 %4348  ;;  %v4361_v48 = vunpack.i.h.bf16 %v4359_v60  ;;  %v4360_v62 = vunpack.i.l.bf16 %v4359_v60  ;;  %v4336_v30 = vunpack.i.h.bf16 %v5849_v59  ;;  %v4335_v0 = vunpack.i.l.bf16 %v5849_v59 }
 0x280   :  { %v4411_v32 = vunpack.i.h.bf16 %v4409_v2  ;;  %v4410_v58 = vunpack.i.l.bf16 %v4409_v2  ;;  %v4351_v6 = vunpack.i.h.bf16 %v4349_v54  ;;  %v4350_v5 = vunpack.i.l.bf16 %v4349_v54 }
 0x281   :  { %v2090_v19 = vsel %vm348_vm10, %v4296_v57, %v4361_v48  ;;  %v2094_v7 = vsel %vm348_vm10, %v4361_v48, %v4296_v57  ;;  %v2089_v46 = vsel %vm348_vm10, %v4295_v33, %v4360_v62 }
 0x282   :  { %2771 = vmatpush.bf16.msra.mxu0 %v3605_v44  ;;  %v2059_v41 = vsel %vm6171_vm2, %v4345_v3, %v4410_v58  ;;  %v2060_v8 = vsel %vm6172_vm3, %v4346_v11, %v4411_v32  ;;  %v2063_v21 = vsel %vm6173_vm13, %v4410_v58, %v4345_v3  ;;  %v2064_v10 = vsel %vm6174_vm14, %v4411_v32, %v4346_v11  ;;  %v3766_v58 = vld [vmem:[#allocation2 + $0x164] sm:$0xf] }
 0x283   :  { %2745 = vmatpush.bf16.msra.mxu2 %v3589_v49  ;;  %2802 = vmatpush.bf16.msra.mxu3 %v3593_v51  ;;  %v2067_v20 = vpack.c.bf16 %v2063_v21, %v2059_v41  ;;  %v2068_v13 = vpack.c.bf16 %v2064_v10, %v2060_v8  ;;  %v2130_v14 = vsel %vm389_vm12, %v4286_v34, %v4351_v6  ;;  %v2100_v42 = vsel %vm102_vm11, %v2094_v7, 0.0  ;;  %v3720_v41 = vld [vmem:[#allocation9 + $0x20] sm:$0xf0]  ;;  %v3762_v21 = vld [vmem:[#allocation2 + $0x144] sm:$0xf] }
 0x284   :  { %2677 = vmatmul.bf16.vlgmr.msrb.gmra.mxu2 %v5873_v52  ;;  %v2134_v39 = vsel %vm389_vm12, %v4351_v6, %v4286_v34  ;;  %2734 = vmatmul.bf16.vlgmr.msrb.gmra.mxu3 %v5873_v52  ;;  %v2129_v53 = vsel %vm389_vm12, %v4285_v31, %v4350_v5  ;;  %v2133_v23 = vsel %vm389_vm12, %v4350_v5, %v4285_v31  ;;  %v3538_v34 = vld [vmem:[#allocation2 + $0x190] sm:$0xf0]  ;;  %vm6179_vm12 = vmmov %vm6168_vm0 }
 0x285   :  { %v2140_v12 = vsel %vm102_vm11, %v2134_v39, 0.0  ;;  %2071 = vst [vmem:[#allocation2 + $0x168] sm:$0xff] %v2067_v20  ;;  %v2138_v45 = vsel %vm102_vm11, %v2133_v23, 0.0  ;;  %v2106_v37 = vpack.c.bf16 %v2100_v42, %v2090_v19  ;;  %v2093_v31 = vsel %vm348_vm10, %v4360_v62, %v4295_v33  ;;  %v3522_v6 = vld [vmem:[#allocation2 + $0x170] sm:$0xf0] }
 0x286   :  { %2840 = vmatpush.bf16.msrb.mxu0 %v5877_v38  ;;  %v2146_v36 = vpack.c.bf16 %v2140_v12, %v2130_v14  ;;  %2072 = vst [vmem:[#allocation2 + $0x178] sm:$0xff] %v2068_v13  ;;  %v2145_v40 = vpack.c.bf16 %v2138_v45, %v2129_v53  ;;  %v2098_v17 = vsel %vm102_vm11, %v2093_v31, 0.0  ;;  %v4379_v47 = vpop.permute.xlu1 %4378  ;;  %v3541_v11 = vor.u32 %v3770_v29, %v3538_v34  ;;  %v3506_v10 = vld [vmem:[#allocation2 + $0x150] sm:$0xf0] }
 0x287   :  { %2746 = vmatpush.bf16.msra.mxu2 %v3573_v43  ;;  %v3557_v43 = vor.u32 %v3774_v26, %v3554_v15  ;;  %v2105_v18 = vpack.c.bf16 %v2098_v17, %v2089_v46  ;;  %v4354_v50 = vpop.permute.xlu0 %4353  ;;  %v4381_v57 = vunpack.i.h.bf16 %v4379_v47  ;;  %v4380_v44 = vunpack.i.l.bf16 %v4379_v47  ;;  %2110 = vst [vmem:[#allocation2 + $0x198] sm:$0xff] %v2106_v37  ;;  %v5962_v42 = vpop.permute.xlu2 %4413  ;;  %v3758_v47 = vld [vmem:[#allocation2 + $0x124] sm:$0xf] }
 0x288   :  { %2150 = vst [vmem:[#allocation2 + $0x1d8] sm:$0xff] %v2146_v36  ;;  %v4356_v49 = vunpack.i.h.bf16 %v4354_v50  ;;  %v4355_v33 = vunpack.i.l.bf16 %v4354_v50  ;;  %v5929_v51 = vor.u32 %v3719_v35, %v3334_v24  ;;  %v3525_v20 = vor.u32 %v3766_v58, %v3522_v6 }
 0x289   :  { %2149 = vst [vmem:[#allocation2 + $0x1c8] sm:$0xff] %v2145_v40  ;;  %v2092_v60 = vsel %vm348_vm10, %v4336_v30, %v4381_v57  ;;  %v2096_v3 = vsel %vm348_vm10, %v4381_v57, %v4336_v30  ;;  %v2091_v59 = vsel %vm348_vm10, %v4335_v0, %v4380_v44  ;;  %v2095_v2 = vsel %vm348_vm10, %v4380_v44, %v4335_v0  ;;  %v3490_v0 = vld [vmem:[#allocation2 + $0x130] sm:$0xf0]  ;;  %vm6178_vm10 = vmmov %vm6168_vm0 }
 0x28a   :  { %2109 = vst [vmem:[#allocation2 + $0x188] sm:$0xff] %v2105_v18  ;;  %v2018_v54 = vsel %vm274_vm8, %v4291_v28, %v4356_v49  ;;  %v2022_v48 = vsel %vm274_vm8, %v4356_v49, %v4291_v28  ;;  %v2017_v62 = vsel %vm274_vm8, %v4290_v63, %v4355_v33  ;;  %v2021_v32 = vsel %vm274_vm8, %v4355_v33, %v4290_v63  ;;  %v3754_v18 = vld [vmem:[#allocation2 + $0x104] sm:$0xf]  ;;  %v3432_v33 = vld [vmem:[#allocation2 + $0xa8] sm:$0xf]  ;;  %vm6177_vm8 = vmmov %vm6168_vm0 }
 0x28b   :  { %2747 = vmatpush.bf16.msra.mxu2 %v3557_v43  ;;  %v2026_v5 = vpack.c.bf16 %v2018_v54, %v2022_v48  ;;  %v2025_v19 = vpack.c.bf16 %v2017_v62, %v2021_v32  ;;  %v2104_v7 = vsel %vm102_vm11, %v2096_v3, 0.0  ;;  %v2102_v46 = vsel %vm102_vm11, %v2095_v2, 0.0  ;;  %v3745_v48 = vld [vmem:[#allocation2 + $0xb4] sm:$0xf0] }
 0x28c   :  { %v2108_v8 = vpack.c.bf16 %v2104_v7, %v2092_v60  ;;  %v2107_v28 = vpack.c.bf16 %v2102_v46, %v2091_v59  ;;  %v4301_v63 = vunpack.i.h.bf16 %v5720_v25  ;;  %v5957_v14 = vor.u32 %v3720_v41, %v3332_v22  ;;  %v3434_v7 = vld [vmem:[#allocation2 + $0xb8] sm:$0xf0] }
 0x28d   :  { %2030 = vst [vmem:[#allocation2 + $0xd8] sm:$0xff] %v2026_v5  ;;  %2701 = vmatmul.bf16.gmra.mxu0 %v5929_v51  ;;  %v4326_v39 = vunpack.i.h.bf16 %v5836_v56  ;;  %v4325_v26 = vunpack.i.l.bf16 %v5836_v56  ;;  %v4300_v23 = vunpack.i.l.bf16 %v5720_v25  ;;  %v3509_v36 = vor.u32 %v3762_v21, %v3506_v10  ;;  %v5972_v25 = vld [vmem:[#allocation2 + $0x110] sm:$0xf0] }
 0x28e   :  { %2029 = vst [vmem:[#allocation2 + $0xc8] sm:$0xff] %v2025_v19  ;;  %v4384_v13 = vpop.permute.xlu1 %4383  ;;  %v3493_v58 = vor.u32 %v3758_v47, %v3490_v0  ;;  %v3477_v19 = vor.u32 %v3754_v18, %v5972_v25  ;;  %v4391_v46 = vunpack.i.h.bf16 %v5834_v16  ;;  %v4390_v22 = vunpack.i.l.bf16 %v5834_v16  ;;  %v3773_v0 = vld [vmem:[#allocation2 + $0x194] sm:$0xf0] }
 0x28f   :  { %2748 = vmatpush.bf16.msra.mxu2 %v3541_v11  ;;  %2112 = vst [vmem:[#allocation2 + $0x1b8] sm:$0xff] %v2108_v8  ;;  %v4364_v15 = vpop.permute.xlu0 %4363  ;;  %v4386_v12 = vunpack.i.h.bf16 %v4384_v13  ;;  %v4385_v53 = vunpack.i.l.bf16 %v4384_v13  ;;  %v3781_v43 = vld [vmem:[#allocation2 + $0x1d4] sm:$0xf0]  ;;  %v3743_v11 = vld [vmem:[#allocation2 + $0xac] sm:$0xf]  ;;  %v4416_v21 = vunpack.i.h.bf16 %v5962_v42  ;;  %v4415_v10 = vunpack.i.l.bf16 %v5962_v42 }
 0x290   :  { %2111 = vst [vmem:[#allocation2 + $0x1a8] sm:$0xff] %v2107_v28  ;;  %v4366_v29 = vunpack.i.h.bf16 %v4364_v15  ;;  %v4365_v34 = vunpack.i.l.bf16 %v4364_v15  ;;  %v3576_v17 = vld [vmem:[#allocation2 + $0x1c8] sm:$0xf]  ;;  %v3433_v16 = vor.u32 %v3745_v48, %v3432_v33  ;;  %v5999_v15 = vor.u32 %v3743_v11, %v3434_v7 }
 0x291   :  { %v1940_v45 = vsel %vm192_vm6, %v4326_v39, %v4386_v12  ;;  %v1944_v37 = vsel %vm192_vm6, %v4386_v12, %v4326_v39  ;;  %v1939_v56 = vsel %vm192_vm6, %v4325_v26, %v4385_v53  ;;  %v1943_v31 = vsel %vm192_vm6, %v4385_v53, %v4325_v26  ;;  %v3544_v47 = vld [vmem:[#allocation2 + $0x188] sm:$0xf] }
 0x292   :  { %v1978_v35 = vsel %vm233_vm7, %v4301_v63, %v4366_v29  ;;  %v1982_v24 = vsel %vm233_vm7, %v4366_v29, %v4301_v63  ;;  %v1977_v30 = vsel %vm233_vm7, %v4300_v23, %v4365_v34  ;;  %v1981_v40 = vsel %vm233_vm7, %v4365_v34, %v4300_v23  ;;  %vm6176_vm7 = vmmov %vm6168_vm0 }
 0x293   :  { %2749 = vmatpush.bf16.msra.mxu2 %v3525_v20  ;;  %v1987_v50 = vsel %vm99_vm5, %v1982_v24, 0.0  ;;  %v1985_v57 = vsel %vm99_vm5, %v1981_v40, 0.0  ;;  %v1951_v44 = vsel %vm99_vm5, %v1944_v37, 0.0  ;;  %v1949_v49 = vsel %vm99_vm5, %v1943_v31, 0.0 }
 0x294   :  { %2682 = vmatmul.bf16.gmra.mxu2 %v5957_v14  ;;  %2739 = vmatmul.bf16.gmra.mxu3 %v5957_v14  ;;  %v1994_v60 = vpack.c.bf16 %v1978_v35, %v1987_v50  ;;  %v1993_v3 = vpack.c.bf16 %v1977_v30, %v1985_v57  ;;  %v1956_v59 = vpack.c.bf16 %v1940_v45, %v1951_v44  ;;  %v3749_v2 = vld [vmem:[#allocation2 + $0xd4] sm:$0xf0]  ;;  %v3450_v54 = vld [vmem:[#allocation2 + $0xd8] sm:$0xf0]  ;;  %vm6181_vm0 = vcmp.lt.s32.totalorder %v4627_v1, 111 }
 0x295   :  { %v1955_v62 = vpack.c.bf16 %v1939_v56, %v1949_v49  ;;  %v3577_v32 = vor.u32 %v3781_v43, %v3576_v17  ;;  %v3448_v6 = vld [vmem:[#allocation2 + $0xc8] sm:$0xf]  ;;  %v3747_v5 = vld [vmem:[#allocation2 + $0xcc] sm:$0xf]  ;;  %vm6182_vm9 = vmmov %vm6181_vm0 }
 0x296   :  { %1998 = vst [vmem:[#allocation2 + $0x98] sm:$0xff] %v1994_v60  ;;  %v4399_v41 = vpop.permute.xlu1 %4398  ;;  %v3449_v8 = vor.u32 %v3749_v2, %v3448_v6  ;;  %v5995_v28 = vor.u32 %v3747_v5, %v3450_v54  ;;  %v3777_v34 = vld [vmem:[#allocation2 + $0x1b4] sm:$0xf0]  ;;  %v3545_v2 = vor.u32 %v3773_v0, %v3544_v47  ;;  %vm6184_vm2 = vmmov %vm6181_vm0 }
 0x297   :  { %2750 = vmatpush.bf16.msra.mxu2 %v3509_v36  ;;  %1997 = vst [vmem:[#allocation2 + $0x88] sm:$0xff] %v1993_v3  ;;  %2803 = vmatpush.bf16.msra.mxu3 %v3577_v32  ;;  %v4394_v63 = vpop.permute.xlu0 %4393  ;;  %v4401_v20 = vunpack.i.h.bf16 %v4399_v41  ;;  %v4400_v13 = vunpack.i.l.bf16 %v4399_v41  ;;  %v3560_v29 = vld [vmem:[#allocation2 + $0x1a8] sm:$0xf]  ;;  %v6009_v36 = vpop.permute.xlu2 %4423  ;;  %v3769_v6 = vld [vmem:[#allocation2 + $0x174] sm:$0xf0]  ;;  %vm6187_vm3 = vmmov %vm6181_vm0 }
 0x298   :  { %1960 = vst [vmem:[#allocation2 + $0x78] sm:$0xff] %v1956_v59  ;;  %v4396_v39 = vunpack.i.h.bf16 %v4394_v63  ;;  %v4395_v26 = vunpack.i.l.bf16 %v4394_v63  ;;  %2784 = vmatpush.bf16.msra.mxu1 %v3449_v8  ;;  %2841 = vmatpush.bf16.msrb.mxu0 %v5995_v28  ;;  %v3561_v43 = vor.u32 %v3777_v34, %v3560_v29  ;;  %vm6188_vm13 = vmmov %vm6181_vm0 }
 0x299   :  { %1959 = vst [vmem:[#allocation2 + $0x68] sm:$0xff] %v1955_v62  ;;  %v1938_v12 = vsel %vm192_vm6, %v4401_v20, %v4416_v21  ;;  %v1942_v53 = vsel %vm192_vm6, %v4416_v21, %v4401_v20  ;;  %v1937_v23 = vsel %vm192_vm6, %v4400_v13, %v4415_v10  ;;  %v1941_v42 = vsel %vm192_vm6, %v4415_v10, %v4400_v13  ;;  %vm6180_vm6 = vmmov %vm6170_vm1 }
 0x29a   :  { %v2058_v45 = vsel %vm6176_vm7, %v4391_v46, %v4396_v39  ;;  %v2062_v37 = vsel %vm6177_vm8, %v4396_v39, %v4391_v46  ;;  %v2057_v56 = vsel %vm6178_vm10, %v4390_v22, %v4395_v26  ;;  %v2061_v31 = vsel %vm6179_vm12, %v4395_v26, %v4390_v22  ;;  %vm6183_vm1 = vmmov %vm6181_vm0 }
 0x29b   :  { %2751 = vmatpush.bf16.msra.mxu2 %v3493_v58  ;;  %v2066_v25 = vpack.c.bf16 %v2062_v37, %v2058_v45  ;;  %v2065_v35 = vpack.c.bf16 %v2061_v31, %v2057_v56  ;;  %v1947_v24 = vsel %vm99_vm5, %v1942_v53, 0.0  ;;  %v1945_v30 = vsel %vm99_vm5, %v1941_v42, 0.0  ;;  %2804 = vmatpush.bf16.msra.mxu3 %v3561_v43  ;;  %v3528_v58 = vld [vmem:[#allocation2 + $0x168] sm:$0xf]  ;;  %vm6189_vm14 = vmmov %vm6181_vm0 }
 0x29c   :  { %v1954_v40 = vpack.c.bf16 %v1938_v12, %v1947_v24  ;;  %v1953_v17 = vpack.c.bf16 %v1937_v23, %v1945_v30  ;;  %2785 = vmatpush.bf16.msra.mxu1 %v3433_v16  ;;  %2842 = vmatpush.bf16.msrb.mxu0 %v5999_v15  ;;  %v3529_v39 = vor.u32 %v3769_v6, %v3528_v58  ;;  %v4426_v53 = vunpack.i.h.bf16 %v6009_v36 }
 0x29d   :  { %2070 = vst [vmem:[#allocation2 + $0x158] sm:$0xff] %v2066_v25  ;;  %v3741_v18 = vld [vmem:[#allocation2 + $0x94] sm:$0xf0]  ;;  %v3418_v50 = vld [vmem:[#allocation2 + $0x98] sm:$0xf0]  ;;  %3632 = vmatmul.msk.bf16.vlgmr.msra.gmra.mxu0 %vm6180_vm6, %v5838_v61  ;;  %v4425_v23 = vunpack.i.l.bf16 %v6009_v36 }
 0x29e   :  { %2069 = vst [vmem:[#allocation2 + $0x148] sm:$0xff] %v2065_v35  ;;  %v4434_v57 = vpop.permute.xlu1 %4433  ;;  %v3416_v44 = vld [vmem:[#allocation2 + $0x88] sm:$0xf]  ;;  %v3739_v49 = vld [vmem:[#allocation2 + $0x8c] sm:$0xf] }
 0x29f   :  { %2752 = vmatpush.bf16.msra.mxu2 %v3477_v19  ;;  %1958 = vst [vmem:[#allocation2 + $0x58] sm:$0xff] %v1954_v40  ;;  %v4419_v33 = vpop.permute.xlu0 %4418  ;;  %v4436_v11 = vunpack.i.h.bf16 %v4434_v57  ;;  %v4435_v60 = vunpack.i.l.bf16 %v4434_v57  ;;  %v3417_v3 = vor.u32 %v3741_v18, %v3416_v44  ;;  %v6027_v59 = vor.u32 %v3739_v49, %v3418_v50  ;;  %v3737_v32 = vld [vmem:[#allocation2 + $0x74] sm:$0xf0]  ;;  %2805 = vmatpush.bf16.msra.mxu3 %v3545_v2  ;;  %v3402_v41 = vld [vmem:[#allocation2 + $0x78] sm:$0xf0]  ;;  %v4444_v63 = vpop.permute.xlu2 %4443 }
 0x2a0   :  { %1957 = vst [vmem:[#allocation2 + $0x48] sm:$0xff] %v1953_v17  ;;  %v4421_v54 = vunpack.i.h.bf16 %v4419_v33  ;;  %v4420_v48 = vunpack.i.l.bf16 %v4419_v33  ;;  %v3400_v62 = vld [vmem:[#allocation2 + $0x68] sm:$0xf]  ;;  %v3735_v22 = vld [vmem:[#allocation2 + $0x6c] sm:$0xf]  ;;  %v4446_v37 = vunpack.i.h.bf16 %v4444_v63  ;;  %v4445_v56 = vunpack.i.l.bf16 %v4444_v63 }
 0x2a1   :  { %2786 = vmatpush.bf16.msra.mxu1 %v3417_v3  ;;  %2843 = vmatpush.bf16.msrb.mxu0 %v6027_v59  ;;  %v3401_v10 = vor.u32 %v3737_v32, %v3400_v62  ;;  %v6043_v16 = vor.u32 %v3735_v22, %v3402_v41  ;;  %v3761_v57 = vld [vmem:[#allocation2 + $0x134] sm:$0xf0] }
 0x2a2   :  { %v1900_v5 = vsel %vm151_vm4, %v4421_v54, %v4436_v11  ;;  %v1904_v19 = vsel %vm151_vm4, %v4436_v11, %v4421_v54  ;;  %v1899_v7 = vsel %vm151_vm4, %v4420_v48, %v4435_v60  ;;  %v1903_v46 = vsel %vm151_vm4, %v4435_v60, %v4420_v48  ;;  %v3496_v48 = vld [vmem:[#allocation2 + $0x128] sm:$0xf] }
 0x2a3   :  { %v1911_v8 = vsel %vm99_vm5, %v1904_v19, 0.0  ;;  %v1909_v21 = vsel %vm99_vm5, %v1903_v46, 0.0  ;;  %2806 = vmatpush.bf16.msra.mxu3 %v3529_v39  ;;  %v3497_v6 = vor.u32 %v3761_v57, %v3496_v48  ;;  %v3757_v19 = vld [vmem:[#allocation2 + $0x114] sm:$0xf0] }
 0x2a4   :  { %2753 = vmatmul.bf16.vlgmr.msra.gmra.mxu2 %v5855_v55  ;;  %v1916_v20 = vpack.c.bf16 %v1900_v5, %v1911_v8  ;;  %v1915_v13 = vpack.c.bf16 %v1899_v7, %v1909_v21  ;;  %v3765_v26 = vld [vmem:[#allocation2 + $0x154] sm:$0xf0] }
 0x2a5   :  { %2787 = vmatpush.bf16.msra.mxu1 %v3401_v10  ;;  %v3512_v12 = vld [vmem:[#allocation2 + $0x148] sm:$0xf]  ;;  %2844 = vmatpush.bf16.msrb.mxu0 %v6043_v16 }
 0x2a6   :  { %1920 = vst [vmem:[#allocation2 + $0x38] sm:$0xff] %v1916_v20  ;;  %v4439_v42 = vpop.permute.xlu1 %4438  ;;  %v3513_v29 = vor.u32 %v3765_v26, %v3512_v12  ;;  %v3733_v34 = vld [vmem:[#allocation2 + $0x54] sm:$0xf0]  ;;  %v3386_v45 = vld [vmem:[#allocation2 + $0x58] sm:$0xf0] }
 0x2a7   :  { %1919 = vst [vmem:[#allocation2 + $0x28] sm:$0xff] %v1915_v13  ;;  %v4429_v31 = vpop.permute.xlu0 %4428  ;;  %v4441_v25 = vunpack.i.h.bf16 %v4439_v42  ;;  %v4440_v35 = vunpack.i.l.bf16 %v4439_v42  ;;  %v3384_v24 = vld [vmem:[#allocation2 + $0x48] sm:$0xf]  ;;  %v3731_v30 = vld [vmem:[#allocation2 + $0x4c] sm:$0xf] }
 0x2a8   :  { %v4431_v40 = vunpack.i.h.bf16 %v4429_v31  ;;  %v4430_v17 = vunpack.i.l.bf16 %v4429_v31  ;;  %v3385_v43 = vor.u32 %v3733_v34, %v3384_v24  ;;  %v6048_v36 = vor.u32 %v3731_v30, %v3386_v45  ;;  %2807 = vmatpush.bf16.msra.mxu3 %v3513_v29  ;;  %v3480_v20 = vld [vmem:[#allocation2 + $0x108] sm:$0xf]  ;;  %v3783_v30 = vld [vmem:[#allocation2 + $0x1ec] sm:$0xf] }
 0x2a9   :  { %v2172_v47 = vsel %vm6181_vm0, %v4441_v25, %v4446_v37  ;;  %v2176_v0 = vsel %vm6182_vm9, %v4446_v37, %v4441_v25  ;;  %v2171_v18 = vsel %vm6183_vm1, %v4440_v35, %v4445_v56  ;;  %v2175_v50 = vsel %vm6184_vm2, %v4445_v56, %v4440_v35  ;;  %v3594_v25 = vld [vmem:[#allocation2 + $0x1f8] sm:$0xf0] }
 0x2aa   :  { %v1898_v44 = vsel %vm151_vm4, %v4426_v53, %v4431_v40  ;;  %v1902_v49 = vsel %vm151_vm4, %v4431_v40, %v4426_v53  ;;  %v1897_v33 = vsel %vm151_vm4, %v4425_v23, %v4430_v17  ;;  %v1901_v11 = vsel %vm151_vm4, %v4430_v17, %v4425_v23  ;;  %2788 = vmatpush.bf16.msra.mxu1 %v3385_v43  ;;  %vm6185_vm4 = vmmov %vm6180_vm6 }
 0x2ab   :  { %v1907_v60 = vsel %vm99_vm5, %v1902_v49, 0.0  ;;  %v1905_v3 = vsel %vm99_vm5, %v1901_v11, 0.0  ;;  %v2184_v2 = vsel %vm102_vm11, %v2176_v0, 0.0  ;;  %v2182_v54 = vsel %vm102_vm11, %v2175_v50, 0.0  ;;  %2845 = vmatpush.bf16.msrb.mxu0 %v6048_v36  ;;  %vm6186_vm5 = vmmov %vm6181_vm0  ;;  %v3779_v49 = vld [vmem:[#allocation2 + $0x1cc] sm:$0xf] }
 0x2ac   :  { %v1914_v62 = vpack.c.bf16 %v1898_v44, %v1907_v60  ;;  %v1913_v32 = vpack.c.bf16 %v1897_v33, %v1905_v3  ;;  %v2188_v58 = vpack.c.bf16 %v2184_v2, %v2172_v47  ;;  %v2187_v5 = vpack.c.bf16 %v2182_v54, %v2171_v18  ;;  %2808 = vmatpush.bf16.msra.mxu3 %v3497_v6  ;;  %v3578_v33 = vld [vmem:[#allocation2 + $0x1d8] sm:$0xf0]  ;;  %v3775_v54 = vld [vmem:[#allocation2 + $0x1ac] sm:$0xf]  ;;  %vm6191_vm15 = vmmov %vm6185_vm4 }
 0x2ad   :  { %v3729_v7 = vld [vmem:[#allocation2 + $0x34] sm:$0xf0]  ;;  %v3370_v46 = vld [vmem:[#allocation2 + $0x38] sm:$0xf0]  ;;  %3633 = vmatmul.msk.bf16.gmra.mxu0 %vm6185_vm4, %v5880_v9  ;;  %v3481_v53 = vor.u32 %v3757_v19, %v3480_v20  ;;  %v3597_v50 = vor.u32 %v3783_v30, %v3594_v25  ;;  %v3581_v11 = vor.u32 %v3779_v49, %v3578_v33  ;;  %vm6192_vm7 = vmmov %vm6185_vm4 }
 0x2ae   :  { %1918 = vst [vmem:[#allocation2 + $0x18] sm:$0xff] %v1914_v62  ;;  %v4454_v22 = vpop.permute.xlu1 %4453  ;;  %v3368_v41 = vld [vmem:[#allocation2 + $0x28] sm:$0xf]  ;;  %v3727_v8 = vld [vmem:[#allocation2 + $0x2c] sm:$0xf]  ;;  %vm6193_vm8 = vmmov %vm6185_vm4 }
 0x2af   :  { %1917 = vst [vmem:[#allocation2 + $0x8] sm:$0xff] %v1913_v32  ;;  %v4449_v21 = vpop.permute.xlu0 %4448  ;;  %v4456_v10 = vunpack.i.h.bf16 %v4454_v22  ;;  %v4455_v63 = vunpack.i.l.bf16 %v4454_v22  ;;  %v3369_v13 = vor.u32 %v3729_v7, %v3368_v41  ;;  %v6077_v39 = vor.u32 %v3727_v8, %v3370_v46  ;;  %v3562_v60 = vld [vmem:[#allocation2 + $0x1b8] sm:$0xf0]  ;;  %v3767_v46 = vld [vmem:[#allocation2 + $0x16c] sm:$0xf] }
 0x2b0   :  { %2192 = vst [vmem:[#allocation2 + $0x238] sm:$0xff] %v2188_v58  ;;  %v4451_v26 = vunpack.i.h.bf16 %v4449_v21  ;;  %v4450_v12 = vunpack.i.l.bf16 %v4449_v21  ;;  %2809 = vmatpush.bf16.msra.mxu3 %v3481_v53  ;;  %v3565_v6 = vor.u32 %v3775_v54, %v3562_v60  ;;  %v3546_v19 = vld [vmem:[#allocation2 + $0x198] sm:$0xf0]  ;;  %v3763_v41 = vld [vmem:[#allocation2 + $0x14c] sm:$0xf]  ;;  %v4457_v53 = vld [vmem:[#allocation4] sm:$0xff] }
 0x2b1   :  { %2191 = vst [vmem:[#allocation2 + $0x228] sm:$0xff] %v2187_v5  ;;  %2789 = vmatpush.bf16.msra.mxu1 %v3369_v13  ;;  %2846 = vmatpush.bf16.msrb.mxu0 %v6077_v39  ;;  %v3771_v5 = vld [vmem:[#allocation2 + $0x18c] sm:$0xf]  ;;  %v3530_v22 = vld [vmem:[#allocation2 + $0x178] sm:$0xf0] }
 0x2b2   :  { %v2170_v23 = vsel %vm6186_vm5, %v4451_v26, %v4456_v10  ;;  %v2174_v42 = vsel %vm6187_vm3, %v4456_v10, %v4451_v26  ;;  %v2169_v29 = vsel %vm6188_vm13, %v4450_v12, %v4455_v63  ;;  %v2173_v34 = vsel %vm6189_vm14, %v4455_v63, %v4450_v12  ;;  %v3514_v8 = vld [vmem:[#allocation2 + $0x158] sm:$0xf0]  ;;  %v3759_v10 = vld [vmem:[#allocation2 + $0x12c] sm:$0xf] }
 0x2b3   :  { %v2180_v45 = vsel %vm102_vm11, %v2174_v42, 0.0  ;;  %v2178_v37 = vsel %vm102_vm11, %v2173_v34, 0.0  ;;  %2810 = vmatmul.bf16.vlgmr.msra.gmra.mxu3 %v5855_v55  ;;  %vm6190_vm11 = vmmov %vm6185_vm4  ;;  %v3549_v7 = vor.u32 %v3771_v5, %v3546_v19  ;;  %v3517_v21 = vor.u32 %v3763_v41, %v3514_v8  ;;  %v3482_v20 = vld [vmem:[#allocation2 + $0x118] sm:$0xf0]  ;;  %v4458_v34 = vld [vmem:[#allocation4 + $0x10] sm:$0xff] }
 0x2b4   :  { %2758 = vmatmul.bf16.gmra.mxu2 %v5929_v51  ;;  %v2186_v56 = vpack.c.bf16 %v2180_v45, %v2170_v23  ;;  %v2185_v31 = vpack.c.bf16 %v2178_v37, %v2169_v29 }
 0x2b5   :  { %v3725_v35 = vld [vmem:[#allocation2 + $0x14] sm:$0xf0]  ;;  %v3354_v24 = vld [vmem:[#allocation2 + $0x18] sm:$0xf0] }
 0x2b6   :  { %2190 = vst [vmem:[#allocation2 + $0x218] sm:$0xff] %v2186_v56  ;;  %v3352_v1 = vld [vmem:[#allocation2 + $0x8] sm:$0xf]  ;;  %v3723_v40 = vld [vmem:[#allocation2 + $0xc] sm:$0xf] }
 0x2b7   :  { %2189 = vst [vmem:[#allocation2 + $0x208] sm:$0xff] %v2185_v31  ;;  %v3353_v17 = vor.u32 %v3725_v35, %v3352_v1  ;;  %v3793_v43 = vld [vmem:[#allocation2 + $0x234] sm:$0xf0]  ;;  %v3357_v47 = vor.u32 %v3723_v40, %v3354_v24  ;;  %v3626_v0 = vld [vmem:[#allocation2 + $0x238] sm:$0xf0]  ;;  %v4459_v1 = vld [vmem:[#allocation4 + $0x20] sm:$0xff] }
 0x2b8   :  { %v3624_v4 = vld [vmem:[#allocation2 + $0x228] sm:$0xf]  ;;  %v3791_v18 = vld [vmem:[#allocation2 + $0x22c] sm:$0xf] }
 0x2b9   :  { %2790 = vmatpush.bf16.msra.mxu1 %v3353_v17  ;;  %v3625_v57 = vor.u32 %v3793_v43, %v3624_v4  ;;  %2847 = vmatpush.bf16.msrb.mxu0 %v3357_v47  ;;  %v3629_v44 = vor.u32 %v3791_v18, %v3626_v0 }
 0x2bb   :  { %2827 = vmatpush.bf16.msrb.mxu2 %v3625_v57  ;;  %2884 = vmatpush.bf16.msrb.mxu3 %v3629_v44  ;;  %v4460_v44 = vld [vmem:[#allocation4 + $0x30] sm:$0xff] }
 0x2bc   :  { %2791 = vmatmul.bf16.vlgmr.msra.gmra.mxu1 %v5873_v52 }
 0x2bd   :  { %2859 = vmatpush.bf16.msrb.mxu1 %v3597_v50  ;;  %v3789_v3 = vld [vmem:[#allocation2 + $0x214] sm:$0xf0]  ;;  %v3610_v2 = vld [vmem:[#allocation2 + $0x218] sm:$0xf0]  ;;  %2848 = vmatmul.bf16.vlgmr.msrb.gmra.mxu0 %v5873_v52  ;;  %v3533_v52 = vor.u32 %v3767_v46, %v3530_v22 }
 0x2be   :  { %v3608_v48 = vld [vmem:[#allocation2 + $0x208] sm:$0xf]  ;;  %v3787_v62 = vld [vmem:[#allocation2 + $0x20c] sm:$0xf]  ;;  %v4462_v22 = vld [vmem:[#allocation4 + $0x18] sm:$0xff] }
 0x2bf   :  { %v3609_v32 = vor.u32 %v3789_v3, %v3608_v48  ;;  %v3613_v58 = vor.u32 %v3787_v62, %v3610_v2  ;;  %v4461_v62 = vld [vmem:[#allocation4 + $0x8] sm:$0xff] }
 0x2c1   :  { %2860 = vmatpush.bf16.msrb.mxu1 %v3581_v11  ;;  %2828 = vmatpush.bf16.msrb.mxu2 %v3609_v32 }
 0x2c2   :  { %2885 = vmatpush.bf16.msrb.mxu3 %v3613_v58 }
 0x2c3   :  { %2815 = vmatmul.bf16.gmra.mxu3 %v5929_v51 }
 0x2c4   :  { %3634 = vmatmul.msk.bf16.vlgmr.msrb.gmra.mxu2 %vm6190_vm11, %v5838_v61 }
 0x2c5   :  { %3794 = vmatpush.bf16.msra.mxu2 %v5877_v38  ;;  %2861 = vmatpush.bf16.msrb.mxu1 %v3565_v6  ;;  %v3498_v38 = vld [vmem:[#allocation2 + $0x138] sm:$0xf0] }
 0x2c6   :  { %v3501_v63 = vor.u32 %v3759_v10, %v3498_v38 }
 0x2c9   :  { %3795 = vmatpush.bf16.msra.mxu2 %v5995_v28  ;;  %2862 = vmatpush.bf16.msrb.mxu1 %v3549_v7  ;;  %v3755_v28 = vld [vmem:[#allocation2 + $0x10c] sm:$0xf] }
 0x2ca   :  { %v3485_v13 = vor.u32 %v3755_v28, %v3482_v20 }
 0x2cc   :  { %2796 = vmatmul.bf16.gmra.mxu1 %v5957_v14 }
 0x2cd   :  { %3796 = vmatpush.bf16.msra.mxu2 %v5999_v15  ;;  %2863 = vmatpush.bf16.msrb.mxu1 %v3533_v52 }
 0x2d1   :  { %3797 = vmatpush.bf16.msra.mxu2 %v6027_v59  ;;  %2864 = vmatpush.bf16.msrb.mxu1 %v3517_v21 }
 0x2d3   :  { %3636 = vmatmul.msk.bf16.vlgmr.msrb.gmra.mxu3 %vm6192_vm7, %v5838_v61 }
 0x2d4   :  { %3635 = vmatmul.msk.bf16.gmra.mxu2 %vm6191_vm15, %v5880_v9 }
 0x2d5   :  { %3798 = vmatpush.bf16.msra.mxu2 %v6043_v16  ;;  %2865 = vmatpush.bf16.msrb.mxu1 %v3501_v63 }
 0x2d9   :  { %3799 = vmatpush.bf16.msra.mxu2 %v6048_v36  ;;  %2866 = vmatpush.bf16.msrb.mxu1 %v3485_v13  ;;  %v4463_v13 = vld [vmem:[#allocation4 + $0x28] sm:$0xff] }
 0x2dc   :  { %2867 = vmatmul.bf16.vlgmr.msrb.gmra.mxu1 %v5855_v55 }
 0x2dd   :  { %3800 = vmatpush.bf16.msra.mxu2 %v6077_v39 }
 0x2e1   :  { %3801 = vmatpush.bf16.msra.mxu2 %v3357_v47 }
 0x2e3   :  { %3637 = vmatmul.msk.bf16.gmra.mxu3 %vm6193_vm8, %v5880_v9 }
 0x2e4   :  { %2853 = vmatmul.bf16.vlgmr.msra.gmra.mxu2 %v5957_v14 }
 0x2e5   :  { %v2716_v59 = vpop.f32.mrf.mxu1 }
 0x2ec   :  { %2872 = vmatmul.bf16.gmra.mxu1 %v5929_v51 }
 0x2ed   :  { %v2718_v36 = vpop.f32.mrf.mxu1 }
 0x2f9   :  { %v2721_v37 = vpop.f32.mrf.mxu1 }
 0x2fa   :  { %v2697_v15 = vpop.f32.mrf.mxu0 }
 0x301   :  { %v2723_v0 = vpop.f32.mrf.mxu1 }
 0x302   :  { %v2699_v16 = vpop.f32.mrf.mxu0 }
 0x307   :  { %v2678_v26 = vpop.f32.mrf.mxu2  ;;  %v2735_v45 = vpop.f32.mrf.mxu3 }
 0x308   :  { %v2698_v61 = vadd.f32 %v2697_v15, %v2678_v26 }
 0x30a   :  { %v2717_v12 = vadd.f32 %v2716_v59, %v2698_v61  ;;  %v2702_v29 = vpop.f32.mrf.mxu0 }
 0x30c   :  { %v2897_v23 = vadd.f32 %v4457_v53, %v2717_v12 }
 0x30e   :  { %vm2905_vm10 = vcmp.gt.f32.partialorder %v2897_v23, 0.0  ;;  %v2913_v55 = vmul.f32 %v2897_v23, %v5354_v27 }
 0x30f   :  { %v2680_v39 = vpop.f32.mrf.mxu2  ;;  %v2737_v43 = vpop.f32.mrf.mxu3 }
 0x310   :  { %v2700_v42 = vadd.f32 %v2699_v16, %v2680_v39  ;;  %v2921_v14 = vsel %vm2905_vm10, %v2897_v23, %v2913_v55  ;;  %v4464_v55 = vld [vmem:[#allocation4 + $0x38] sm:$0xff] }
 0x311   :  { %2929 = vst [vmem:[#allocation10] sm:$0xff] %v2921_v14 }
 0x312   :  { %v2719_v9 = vadd.f32 %v2718_v36, %v2700_v42  ;;  %v2704_v24 = vpop.f32.mrf.mxu0 }
 0x314   :  { %v2899_v51 = vadd.f32 %v4458_v34, %v2719_v9 }
 0x316   :  { %vm2907_vm12 = vcmp.gt.f32.partialorder %v2899_v51, 0.0  ;;  %v2915_v56 = vmul.f32 %v2899_v51, %v5354_v27 }
 0x317   :  { %v2683_v31 = vpop.f32.mrf.mxu2  ;;  %v2740_v3 = vpop.f32.mrf.mxu3 }
 0x318   :  { %v2703_v25 = vadd.f32 %v2702_v29, %v2683_v31  ;;  %v2923_v35 = vsel %vm2907_vm12, %v2899_v51, %v2915_v56 }
 0x319   :  { %2931 = vst [vmem:[#allocation10 + $0x10] sm:$0xff] %v2923_v35 }
 0x31a   :  { %v2722_v30 = vadd.f32 %v2721_v37, %v2703_v25  ;;  %v2773_v50 = vpop.f32.mrf.mxu0  ;;  %v4465_v37 = vld [vmem:[#allocation4 + $0x40] sm:$0xff] }
 0x31c   :  { %v2901_v40 = vadd.f32 %v4459_v1, %v2722_v30 }
 0x31e   :  { %vm2909_vm6 = vcmp.gt.f32.partialorder %v2901_v40, 0.0  ;;  %v2917_v17 = vmul.f32 %v2901_v40, %v5354_v27 }
 0x31f   :  { %v2685_v47 = vpop.f32.mrf.mxu2  ;;  %v2742_v7 = vpop.f32.mrf.mxu3 }
 0x320   :  { %v2705_v4 = vadd.f32 %v2704_v24, %v2685_v47  ;;  %v2925_v18 = vsel %vm2909_vm6, %v2901_v40, %v2917_v17  ;;  %v4466_v17 = vld [vmem:[#allocation4 + $0x50] sm:$0xff] }
 0x321   :  { %2933 = vst [vmem:[#allocation10 + $0x20] sm:$0xff] %v2925_v18 }
 0x322   :  { %v2724_v57 = vadd.f32 %v2723_v0, %v2705_v4  ;;  %v2775_v48 = vpop.f32.mrf.mxu0 }
 0x324   :  { %v2903_v49 = vadd.f32 %v4460_v44, %v2724_v57 }
 0x326   :  { %vm2911_vm0 = vcmp.gt.f32.partialorder %v2903_v49, 0.0  ;;  %v2919_v33 = vmul.f32 %v2903_v49, %v5354_v27 }
 0x327   :  { %v2754_v11 = vpop.f32.mrf.mxu2 }
 0x328   :  { %v2927_v60 = vsel %vm2911_vm0, %v2903_v49, %v2919_v33  ;;  %v2755_v2 = vadd.f32 %v2754_v11, %v2735_v45  ;;  %v4467_v33 = vld [vmem:[#allocation4 + $0x60] sm:$0xff] }
 0x329   :  { %2935 = vst [vmem:[#allocation10 + $0x30] sm:$0xff] %v2927_v60 }
 0x32a   :  { %v2774_v54 = vadd.f32 %v2773_v50, %v2755_v2  ;;  %v2778_v41 = vpop.f32.mrf.mxu0 }
 0x32c   :  { %v2898_v32 = vadd.f32 %v4461_v62, %v2774_v54  ;;  %v4468_v62 = vld [vmem:[#allocation4 + $0x48] sm:$0xff] }
 0x32e   :  { %vm2906_vm9 = vcmp.gt.f32.partialorder %v2898_v32, 0.0  ;;  %v2914_v58 = vmul.f32 %v2898_v32, %v5354_v27 }
 0x32f   :  { %v2756_v6 = vpop.f32.mrf.mxu2 }
 0x330   :  { %v2922_v5 = vsel %vm2906_vm9, %v2898_v32, %v2914_v58  ;;  %v2757_v19 = vadd.f32 %v2756_v6, %v2737_v43 }
 0x331   :  { %2930 = vst [vmem:[#allocation10 + $0x8] sm:$0xff] %v2922_v5 }
 0x332   :  { %v2776_v46 = vadd.f32 %v2775_v48, %v2757_v19  ;;  %v2780_v26 = vpop.f32.mrf.mxu0 }
 0x334   :  { %v2900_v52 = vadd.f32 %v4462_v22, %v2776_v46  ;;  %v4469_v22 = vld [vmem:[#allocation4 + $0x70] sm:$0xff] }
 0x336   :  { %vm2908_vm1 = vcmp.gt.f32.partialorder %v2900_v52, 0.0  ;;  %v2916_v8 = vmul.f32 %v2900_v52, %v5354_v27  ;;  %v2811_v63 = vpop.f32.mrf.mxu3 }
 0x337   :  { %v2759_v21 = vpop.f32.mrf.mxu2 }
 0x338   :  { %v2924_v38 = vsel %vm2908_vm1, %v2900_v52, %v2916_v8  ;;  %v2760_v10 = vadd.f32 %v2759_v21, %v2740_v3 }
 0x339   :  { %2932 = vst [vmem:[#allocation10 + $0x18] sm:$0xff] %v2924_v38  ;;  %v2792_v28 = vpop.f32.mrf.mxu1 }
 0x33a   :  { %v2779_v20 = vadd.f32 %v2778_v41, %v2760_v10  ;;  %v2812_v14 = vadd.f32 %v2811_v63, %v2792_v28  ;;  %v2849_v0 = vpop.f32.mrf.mxu0  ;;  %v4470_v63 = vld [vmem:[#allocation4 + $0x58] sm:$0xff] }
 0x33c   :  { %v2902_v15 = vadd.f32 %v4463_v13, %v2779_v20 }
 0x33e   :  { %vm2910_vm2 = vcmp.gt.f32.partialorder %v2902_v15, 0.0  ;;  %v2918_v59 = vmul.f32 %v2902_v15, %v5354_v27  ;;  %v2813_v36 = vpop.f32.mrf.mxu3 }
 0x33f   :  { %v2761_v16 = vpop.f32.mrf.mxu2 }
 0x340   :  { %v2926_v61 = vsel %vm2910_vm2, %v2902_v15, %v2918_v59  ;;  %v2762_v12 = vadd.f32 %v2761_v16, %v2742_v7 }
 0x341   :  { %2934 = vst [vmem:[#allocation10 + $0x28] sm:$0xff] %v2926_v61  ;;  %v2794_v23 = vpop.f32.mrf.mxu1 }
 0x342   :  { %v2781_v53 = vadd.f32 %v2780_v26, %v2762_v12  ;;  %v2814_v35 = vadd.f32 %v2813_v36, %v2794_v23  ;;  %v2851_v6 = vpop.f32.mrf.mxu0  ;;  %v4471_v12 = vld [vmem:[#allocation4 + $0x68] sm:$0xff] }
 0x344   :  { %v2904_v39 = vadd.f32 %v4464_v55, %v2781_v53 }
 0x346   :  { %vm2912_vm4 = vcmp.gt.f32.partialorder %v2904_v39, 0.0  ;;  %v2920_v42 = vmul.f32 %v2904_v39, %v5354_v27  ;;  %v2816_v51 = vpop.f32.mrf.mxu3 }
 0x347   :  { %v2830_v9 = vpop.f32.mrf.mxu2 }
 0x348   :  { %v2928_v29 = vsel %vm2912_vm4, %v2904_v39, %v2920_v42  ;;  %v2831_v34 = vadd.f32 %v2830_v9, %v2812_v14  ;;  %v4472_v9 = vld [vmem:[#allocation4 + $0x78] sm:$0xff] }
 0x349   :  { %2936 = vst [vmem:[#allocation10 + $0x38] sm:$0xff] %v2928_v29  ;;  %v2797_v45 = vpop.f32.mrf.mxu1 }
 0x34a   :  { %v2937_v56 = vadd.f32 %v4465_v37, %v2831_v34  ;;  %v2817_v18 = vadd.f32 %v2816_v51, %v2797_v45 }
 0x34c   :  { %vm2945_vm5 = vcmp.gt.f32.partialorder %v2937_v56, 0.0  ;;  %v2953_v31 = vmul.f32 %v2937_v56, %v5354_v27 }
 0x34e   :  { %v2961_v25 = vsel %vm2945_vm5, %v2937_v56, %v2953_v31  ;;  %v2818_v1 = vpop.f32.mrf.mxu3 }
 0x34f   :  { %2970 = vst [vmem:[#allocation10 + $0x40] sm:$0xff] %v2961_v25  ;;  %v2832_v24 = vpop.f32.mrf.mxu2 }
 0x350   :  { %v2833_v30 = vadd.f32 %v2832_v24, %v2814_v35 }
 0x351   :  { %v2799_v40 = vpop.f32.mrf.mxu1 }
 0x352   :  { %v2939_v43 = vadd.f32 %v4466_v17, %v2833_v30  ;;  %v2819_v48 = vadd.f32 %v2818_v1, %v2799_v40 }
 0x354   :  { %vm2947_vm3 = vcmp.gt.f32.partialorder %v2939_v43, 0.0  ;;  %v2955_v47 = vmul.f32 %v2939_v43, %v5354_v27 }
 0x356   :  { %v2963_v4 = vsel %vm2947_vm3, %v2939_v43, %v2955_v47  ;;  %v2887_v44 = vpop.f32.mrf.mxu3 }
 0x357   :  { %2972 = vst [vmem:[#allocation10 + $0x50] sm:$0xff] %v2963_v4  ;;  %v2835_v50 = vpop.f32.mrf.mxu2 }
 0x358   :  { %v2836_v57 = vadd.f32 %v2835_v50, %v2817_v18 }
 0x359   :  { %v2868_v49 = vpop.f32.mrf.mxu1 }
 0x35a   :  { %v2941_v11 = vadd.f32 %v4467_v33, %v2836_v57  ;;  %v2869_v60 = vadd.f32 %v2868_v49, %v2849_v0 }
 0x35c   :  { %vm2949_vm13 = vcmp.gt.f32.partialorder %v2941_v11, 0.0  ;;  %v2957_v3 = vmul.f32 %v2941_v11, %v5354_v27  ;;  %v2888_v2 = vadd.f32 %v2887_v44, %v2869_v60 }
 0x35e   :  { %v2965_v54 = vsel %vm2949_vm13, %v2941_v11, %v2957_v3  ;;  %v2938_v32 = vadd.f32 %v4468_v62, %v2888_v2  ;;  %v2889_v7 = vpop.f32.mrf.mxu3 }
 0x35f   :  { %2974 = vst [vmem:[#allocation10 + $0x60] sm:$0xff] %v2965_v54  ;;  %v2837_v58 = vpop.f32.mrf.mxu2 }
 0x360   :  { %v2838_v5 = vadd.f32 %v2837_v58, %v2819_v48  ;;  %vm2946_vm14 = vcmp.gt.f32.partialorder %v2938_v32, 0.0  ;;  %v2954_v19 = vmul.f32 %v2938_v32, %v5354_v27 }
 0x361   :  { %v2870_v46 = vpop.f32.mrf.mxu1 }
 0x362   :  { %v2943_v52 = vadd.f32 %v4469_v22, %v2838_v5  ;;  %v2962_v41 = vsel %vm2946_vm14, %v2938_v32, %v2954_v19  ;;  %v2871_v8 = vadd.f32 %v2870_v46, %v2851_v6 }
 0x363   :  { %2971 = vst [vmem:[#allocation10 + $0x48] sm:$0xff] %v2962_v41 }
 0x364   :  { %vm2951_vm11 = vcmp.gt.f32.partialorder %v2943_v52, 0.0  ;;  %v2959_v21 = vmul.f32 %v2943_v52, %v5354_v27  ;;  %v2890_v38 = vadd.f32 %v2889_v7, %v2871_v8 }
 0x366   :  { %v2967_v10 = vsel %vm2951_vm11, %v2943_v52, %v2959_v21  ;;  %v2940_v20 = vadd.f32 %v4470_v63, %v2890_v38  ;;  %v2892_v59 = vpop.f32.mrf.mxu3 }
 0x367   :  { %2976 = vst [vmem:[#allocation10 + $0x70] sm:$0xff] %v2967_v10  ;;  %v2854_v28 = vpop.f32.mrf.mxu2 }
 0x368   :  { %vm2948_vm15 = vcmp.gt.f32.partialorder %v2940_v20, 0.0  ;;  %v2956_v13 = vmul.f32 %v2940_v20, %v5354_v27 }
 0x369   :  { %v2873_v15 = vpop.f32.mrf.mxu1 }
 0x36a   :  { %v2964_v16 = vsel %vm2948_vm15, %v2940_v20, %v2956_v13  ;;  %v2874_v26 = vadd.f32 %v2873_v15, %v2854_v28 }
 0x36b   :  { %2973 = vst [vmem:[#allocation10 + $0x58] sm:$0xff] %v2964_v16 }
 0x36c   :  { %v2893_v61 = vadd.f32 %v2892_v59, %v2874_v26 }
 0x36e   :  { %v2942_v36 = vadd.f32 %v4471_v12, %v2893_v61  ;;  %v2894_v14 = vpop.f32.mrf.mxu3 }
 0x36f   :  { %v2856_v23 = vpop.f32.mrf.mxu2 }
 0x370   :  { %vm2950_vm7 = vcmp.gt.f32.partialorder %v2942_v36, 0.0  ;;  %v2958_v53 = vmul.f32 %v2942_v36, %v5354_v27 }
 0x371   :  { %v2875_v55 = vpop.f32.mrf.mxu1 }
 0x372   :  { %v2966_v39 = vsel %vm2950_vm7, %v2942_v36, %v2958_v53  ;;  %v2876_v42 = vadd.f32 %v2875_v55, %v2856_v23 }
 0x373   :  { %2975 = vst [vmem:[#allocation10 + $0x68] sm:$0xff] %v2966_v39 }
 0x374   :  { %v2895_v29 = vadd.f32 %v2894_v14, %v2876_v42 }
 0x376   :  { %v2944_v34 = vadd.f32 %v4472_v9, %v2895_v29 }
 0x378   :  { %vm2952_vm8 = vcmp.gt.f32.partialorder %v2944_v34, 0.0  ;;  %v2960_v51 = vmul.f32 %v2944_v34, %v5354_v27 }
 0x37a   :  { %v2968_v45 = vsel %vm2952_vm8, %v2944_v34, %v2960_v51 }
 0x37b   :  { %2977 = vst [vmem:[#allocation10 + $0x78] sm:$0xff] %v2968_v45 }
 0x37c   :  { %2990 = dma.vmem_to_hbm [thread:$0]  %s2983_s14, 2048, %s2985_s17, [#allocation6], %s4579_s27, %s4579_s27, %s4580_s28  }
 0x37d   :  { %4573 = dma.done.wait [#allocation6], 2048  }
 0x37e   :  { %4574 = vsyncadd [#allocation6], 4294965248 }
 0x37f   :  { %2995 = vsyncpa [#allocation5], 1 }
 0x380   :  { %2996 = vsyncpa [#allocation8], 1 }
 0x381   :  { %2997 = vsyncpa [#allocation6], 1 }

</bundles_post_ra>
